<compile_context>
chip_gen: v7x
topology: tpu7x:2x2x1
jax: 0.10.0
libtpu: 0.0.40
codegen_flags: <defaults>
</compile_context>

<pallas_src>
import math

import jax
import jax.numpy as jnp
from jax.experimental import pallas as pl
from jax.experimental.pallas import tpu as pltpu


# ---------------------------------------------------------------------------
# Fused kernel (one batch element per grid step; everything stays in VMEM)
# ---------------------------------------------------------------------------

def _make_kernel(H, W):
    H2, W2 = H // 2, W // 2          # after pool1
    H3, W3 = H // 4, W // 4          # after pool2
    HW4 = H2 * W2                    # rows per 2x2-window-position group
    C1, C2, C3 = 32, 64, 128

    def kernel(p1_ref, w1_ref, b1_ref, w2_ref, b2_ref, w3_ref, b3_ref,
               w4_ref, b4_ref, o_ref,
               pad2_ref, im2_ref, pad3_ref, im3_ref):
        f32 = jnp.float32

        # ---- conv1 (1->32): one im2col matmul + bias + ReLU ----------------
        # p1_ref rows are ordered (window-pos a,b | block bh,bw) so pool1 is a
        # plain elementwise max over four aligned row blocks.
        y1 = jnp.dot(p1_ref[0], w1_ref[...],
                     preferred_element_type=f32)                 # (H*W, 32)
        y1 = jnp.maximum(y1 + b1_ref[...], 0.0)

        # ---- maxpool1 (2x2, stride 2): VPU max over 4 row blocks -----------
        pool1 = jnp.maximum(
            jnp.maximum(y1[0 * HW4:1 * HW4, :], y1[1 * HW4:2 * HW4, :]),
            jnp.maximum(y1[2 * HW4:3 * HW4, :], y1[3 * HW4:4 * HW4, :]))
        # pool1: (H2*W2, 32), rows in row-major (h, w) order.

        # ---- in-kernel ConstantPad2d(1): memset scratch + write interior ---
        pad2_ref[...] = jnp.zeros_like(pad2_ref)
        for h in range(H2):
            pad2_ref[1 + h, 1:1 + W2, :] = pool1[h * W2:(h + 1) * W2, :]

        # ---- conv2 (32->64): build (H2*W2, 9*32) im2col in VMEM, one matmul
        for k in range(9):
            dy, dx = k // 3, k % 3
            for h in range(H2):
                im2_ref[h * W2:(h + 1) * W2, k * C1:(k + 1) * C1] = \
                    pad2_ref[dy + h, dx:dx + W2, :]
        y2 = jnp.dot(im2_ref[...], w2_ref[...],
                     preferred_element_type=f32)                 # (H2*W2, 64)
        y2 = jnp.maximum(y2 + b2_ref[...], 0.0)

        # ---- maxpool2 (2x2, stride 2), writing straight into padded conv3 in
        pad3_ref[...] = jnp.zeros_like(pad3_ref)
        for ho in range(H3):
            r = jnp.maximum(y2[(2 * ho) * W2:(2 * ho + 1) * W2, :],
                            y2[(2 * ho + 1) * W2:(2 * ho + 2) * W2, :])  # (W2, 64)
            for wo in range(W3):
                pad3_ref[1 + ho, 1 + wo, :] = jnp.maximum(r[2 * wo, :],
                                                          r[2 * wo + 1, :])

        # ---- conv3 (64->128): (H3*W3, 9*64) im2col in VMEM, one matmul -----
        for k in range(9):
            dy, dx = k // 3, k % 3
            for h in range(H3):
                im3_ref[h * W3:(h + 1) * W3, k * C2:(k + 1) * C2] = \
                    pad3_ref[dy + h, dx:dx + W3, :]
        y3 = jnp.dot(im3_ref[...], w3_ref[...],
                     preferred_element_type=f32)                 # (H3*W3, 128)
        y3 = jnp.maximum(y3 + b3_ref[...], 0.0)

        # ---- fconv 1x1 (128->1), fused epilogue: VPU multiply + lane reduce
        out = jnp.sum(y3 * w4_ref[...], axis=-1, keepdims=True) + b4_ref[...]
        o_ref[0] = out                                           # (H3*W3, 1)

    return kernel


# ---------------------------------------------------------------------------
# Forward wrapper: tiny XLA glue (layout + layer-1 im2col) + one pallas_call
# ---------------------------------------------------------------------------

@jax.jit
def video_comperator_forward(x_nchw, w1, b1, w2, b2, w3, b3, w4, b4):
    """Matches VideoComperator.forward (use_dcn=False).

    x_nchw: (N, 1, H, W) float32, weights in HWIO. Returns (N, 1, H//4, W//4).
    """
    N, C, H, W = x_nchw.shape
    assert C == 1 and H % 4 == 0 and W % 4 == 0
    H2, W2, H3, W3 = H // 2, W // 2, H // 4, W // 4

    # Layer-1 im2col patches (Cin=1), rows in 2x2-window-position-major order
    # so the in-kernel maxpool1 needs no shuffles.  (Tiny: H*W*9 floats/image.)
    x = x_nchw[:, 0, :, :]                                   # (N, H, W)
    xpad = jnp.pad(x, ((0, 0), (1, 1), (1, 1)))              # (N, H+2, W+2)
    taps = jnp.stack([xpad[:, dy:dy + H, dx:dx + W]
                      for dy in range(3) for dx in range(3)], axis=-1)
    p1 = (taps.reshape(N, H2, 2, W2, 2, 9)                   # (n,bh,a,bw,b,k)
              .transpose(0, 2, 4, 1, 3, 5)                   # (n,a,b,bh,bw,k)
              .reshape(N, H * W, 9))

    # Weights / biases in im2col layout: HWIO -> (9*Cin, Cout), bias (1, Cout)
    w1r = w1.reshape(9, 32)
    w2r = w2.reshape(9 * 32, 64)
    w3r = w3.reshape(9 * 64, 128)
    w4r = w4.reshape(1, 128)
    b1r, b2r = b1.reshape(1, 32), b2.reshape(1, 64)
    b3r, b4r = b3.reshape(1, 128), b4.reshape(1, 1)

    out = pl.pallas_call(
        _make_kernel(H, W),
        out_shape=jax.ShapeDtypeStruct((N, H3 * W3, 1), jnp.float32),
        grid=(N,),
        in_specs=[
            pl.BlockSpec((1, H * W, 9), lambda n: (n, 0, 0)),
            pl.BlockSpec((9, 32), lambda n: (0, 0)),
            pl.BlockSpec((1, 32), lambda n: (0, 0)),
            pl.BlockSpec((9 * 32, 64), lambda n: (0, 0)),
            pl.BlockSpec((1, 64), lambda n: (0, 0)),
            pl.BlockSpec((9 * 64, 128), lambda n: (0, 0)),
            pl.BlockSpec((1, 128), lambda n: (0, 0)),
            pl.BlockSpec((1, 128), lambda n: (0, 0)),
            pl.BlockSpec((1, 1), lambda n: (0, 0)),
        ],
        out_specs=pl.BlockSpec((1, H3 * W3, 1), lambda n: (n, 0, 0)),
        scratch_shapes=[
            pltpu.VMEM((H2 + 2, W2 + 2, 32), jnp.float32),   # padded pool1
            pltpu.VMEM((H2 * W2, 9 * 32), jnp.float32),      # conv2 im2col
            pltpu.VMEM((H3 + 2, W3 + 2, 64), jnp.float32),   # padded pool2
            pltpu.VMEM((H3 * W3, 9 * 64), jnp.float32),      # conv3 im2col
        ],
        compiler_params=pltpu.CompilerParams(
            dimension_semantics=("parallel",)),
    )(p1, w1r, b1r, w2r, b2r, w3r, b3r, w4r, b4r)

    return out.reshape(N, H3, W3)[:, None, :, :]             # -> (N,1,H3,W3)


# ---------------------------------------------------------------------------
# Pure-JAX reference (XLA convs) for correctness checking
# ---------------------------------------------------------------------------

def reference_forward(x_nchw, w1, b1, w2, b2, w3, b3, w4, b4):
    x = jnp.transpose(x_nchw, (0, 2, 3, 1))
    dn = ("NHWC", "HWIO", "NHWC")

    def conv(t, w, b, p):
        return jax.lax.conv_general_dilated(t, w, (1, 1), p,
                                            dimension_numbers=dn) + b

    def pool(t):
        return jax.lax.reduce_window(t, -jnp.inf, jax.lax.max,
                                     (1, 2, 2, 1), (1, 2, 2, 1), "VALID")

    y = jax.nn.relu(conv(x, w1, b1, [(1, 1), (1, 1)]))
    y = pool(y)
    y = jax.nn.relu(conv(y, w2, b2, [(1, 1), (1, 1)]))
    y = pool(y)
    y = jax.nn.relu(conv(y, w3, b3, [(1, 1), (1, 1)]))
    y = conv(y, w4, b4, [(0, 0), (0, 0)])
    return jnp.transpose(y, (0, 3, 1, 2))


# ---------------------------------------------------------------------------
# Deterministic parameter init (xavier_uniform weights, zero biases — like
# VideoComperator.reset_parameters, but with JAX PRNG instead of torch RNG).
# ---------------------------------------------------------------------------

def xavier_uniform(key, shape):
    kh, kw, cin, cout = shape                       # HWIO
    fan_in, fan_out = cin * kh * kw, cout * kh * kw
    bound = math.sqrt(6.0 / (fan_in + fan_out))
    return jax.random.uniform(key, shape, jnp.float32, -bound, bound)


if __name__ == "__main__":
    key = jax.random.PRNGKey(0)
    k_in, k1, k2, k3, k4 = jax.random.split(key, 5)

    N, H, W = 2, 16, 16
    # PyTorch-style NCHW similarity matrix: (N, 1, H, W)
    sim_matrix = jax.random.uniform(k_in, (N, 1, H, W), jnp.float32)

    w1 = xavier_uniform(k1, (3, 3, 1, 32));    b1 = jnp.zeros((32,), jnp.float32)
    w2 = xavier_uniform(k2, (3, 3, 32, 64));   b2 = jnp.zeros((64,), jnp.float32)
    w3 = xavier_uniform(k3, (3, 3, 64, 128));  b3 = jnp.zeros((128,), jnp.float32)
    w4 = xavier_uniform(k4, (1, 1, 128, 1));   b4 = jnp.zeros((1,), jnp.float32)

    # TODO(synk): the use_dcn=True (DeformableConv2d) branch is external to the
    # module and is not implemented; this covers the default use_dcn=False path.

    out = video_comperator_forward(sim_matrix, w1, b1, w2, b2, w3, b3, w4, b4)
    out = jax.block_until_ready(out)
    assert out.shape == (N, 1, H // 4, W // 4), out.shape

    ref = jax.block_until_ready(
        reference_forward(sim_matrix, w1, b1, w2, b2, w3, b3, w4, b4))
    err = float(jnp.max(jnp.abs(out - ref)))
    assert err < 5e-4, f"max abs error vs reference: {err}"

    print("KERNEL_OK")
</pallas_src>

<mosaic_0001>
module attributes {stable_mosaic.version = 11 : i64} {
  func.func @kernel(%arg0: i32, %arg1: memref<1x256x9xf32, #tpu.memory_space<vmem>>, %arg2: memref<9x32xf32, #tpu.memory_space<vmem>>, %arg3: memref<1x32xf32, #tpu.memory_space<vmem>>, %arg4: memref<288x64xf32, #tpu.memory_space<vmem>>, %arg5: memref<1x64xf32, #tpu.memory_space<vmem>>, %arg6: memref<576x128xf32, #tpu.memory_space<vmem>>, %arg7: memref<1x128xf32, #tpu.memory_space<vmem>>, %arg8: memref<1x128xf32, #tpu.memory_space<vmem>>, %arg9: memref<1x1xf32, #tpu.memory_space<vmem>>, %arg10: memref<1x16x1xf32, #tpu.memory_space<vmem>>, %arg11: memref<10x10x32xf32, #tpu.memory_space<vmem>>, %arg12: memref<64x288xf32, #tpu.memory_space<vmem>>, %arg13: memref<6x6x64xf32, #tpu.memory_space<vmem>>, %arg14: memref<16x576xf32, #tpu.memory_space<vmem>>) attributes {dimension_semantics = [#tpu.dimension_semantics<parallel>], iteration_bounds = array<i64: 2>, scalar_prefetch = 0 : i64, scratch_operands = 4 : i64, tpu.core_type = #tpu.core_type<tc>, window_params = [{transform_indices = @transform_0, window_bounds = array<i64: 1, 256, 9>}, {pipeline_mode = #tpu.pipeline_mode<synchronous>, transform_indices = @transform_1, window_bounds = array<i64: 9, 32>}, {pipeline_mode = #tpu.pipeline_mode<synchronous>, transform_indices = @transform_2, window_bounds = array<i64: 1, 32>}, {pipeline_mode = #tpu.pipeline_mode<synchronous>, transform_indices = @transform_3, window_bounds = array<i64: 288, 64>}, {pipeline_mode = #tpu.pipeline_mode<synchronous>, transform_indices = @transform_4, window_bounds = array<i64: 1, 64>}, {pipeline_mode = #tpu.pipeline_mode<synchronous>, transform_indices = @transform_5, window_bounds = array<i64: 576, 128>}, {pipeline_mode = #tpu.pipeline_mode<synchronous>, transform_indices = @transform_6, window_bounds = array<i64: 1, 128>}, {pipeline_mode = #tpu.pipeline_mode<synchronous>, transform_indices = @transform_7, window_bounds = array<i64: 1, 128>}, {pipeline_mode = #tpu.pipeline_mode<synchronous>, transform_indices = @transform_8, window_bounds = array<i64: 1, 1>}, {transform_indices = @transform_9, window_bounds = array<i64: 1, 16, 1>}]} {
    %c0 = arith.constant 0 : index
    %c0_0 = arith.constant 0 : index
    %c0_1 = arith.constant 0 : index
    %0 = vector.load %arg1[%c0, %c0_0, %c0_1] : memref<1x256x9xf32, #tpu.memory_space<vmem>>, vector<1x256x9xf32>
    %1 = vector.shape_cast %0 : vector<1x256x9xf32> to vector<256x9xf32>
    %c0_2 = arith.constant 0 : index
    %c0_3 = arith.constant 0 : index
    %2 = vector.load %arg2[%c0_2, %c0_3] : memref<9x32xf32, #tpu.memory_space<vmem>>, vector<9x32xf32>
    %cst = arith.constant dense<0.000000e+00> : vector<256x32xf32>
    %3 = tpu.matmul %1, %2, %cst {dimension_numbers = #tpu.dot_dimension_numbers<[1], [0], [0], [1], [0, 0, 1, 1], [], []>} : vector<256x9xf32>, vector<9x32xf32>, vector<256x32xf32> -> vector<256x32xf32>
    %c0_4 = arith.constant 0 : index
    %c0_5 = arith.constant 0 : index
    %4 = vector.load %arg3[%c0_4, %c0_5] : memref<1x32xf32, #tpu.memory_space<vmem>>, vector<1x32xf32>
    %5 = vector.broadcast %4 : vector<1x32xf32> to vector<256x32xf32>
    %6 = arith.addf %3, %5 : vector<256x32xf32>
    %cst_6 = arith.constant 0.000000e+00 : f32
    %7 = vector.broadcast %cst_6 : f32 to vector<256x32xf32>
    %8 = arith.maximumf %6, %7 : vector<256x32xf32>
    %9 = vector.extract_strided_slice %8 {offsets = [0, 0], sizes = [64, 32], strides = [1, 1]} : vector<256x32xf32> to vector<64x32xf32>
    %10 = vector.extract_strided_slice %8 {offsets = [64, 0], sizes = [64, 32], strides = [1, 1]} : vector<256x32xf32> to vector<64x32xf32>
    %11 = arith.maximumf %9, %10 : vector<64x32xf32>
    %12 = vector.extract_strided_slice %8 {offsets = [128, 0], sizes = [64, 32], strides = [1, 1]} : vector<256x32xf32> to vector<64x32xf32>
    %13 = vector.extract_strided_slice %8 {offsets = [192, 0], sizes = [64, 32], strides = [1, 1]} : vector<256x32xf32> to vector<64x32xf32>
    %14 = arith.maximumf %12, %13 : vector<64x32xf32>
    %15 = arith.maximumf %11, %14 : vector<64x32xf32>
    %cst_7 = arith.constant 0.000000e+00 : f32
    %16 = vector.broadcast %cst_7 : f32 to vector<10x10x32xf32>
    %c0_8 = arith.constant 0 : index
    %c0_9 = arith.constant 0 : index
    %c0_10 = arith.constant 0 : index
    %17 = vector.load %arg11[%c0_8, %c0_9, %c0_10] : memref<10x10x32xf32, #tpu.memory_space<vmem>>, vector<10x10x32xf32>
    tpu.vector_store %arg11[%c0_8, %c0_9, %c0_10], %16 {strides = array<i32>} : memref<10x10x32xf32, #tpu.memory_space<vmem>>, vector<10x10x32xf32>,
    %18 = vector.extract_strided_slice %15 {offsets = [0, 0], sizes = [8, 32], strides = [1, 1]} : vector<64x32xf32> to vector<8x32xf32>
    %c1 = arith.constant 1 : index
    %c1_11 = arith.constant 1 : index
    %c0_12 = arith.constant 0 : index
    %19 = vector.load %arg11[%c1, %c1_11, %c0_12] : memref<10x10x32xf32, #tpu.memory_space<vmem>>, vector<1x8x32xf32>
    %20 = vector.shape_cast %19 : vector<1x8x32xf32> to vector<8x32xf32>
    %21 = vector.shape_cast %18 : vector<8x32xf32> to vector<1x8x32xf32>
    tpu.vector_store %arg11[%c1, %c1_11, %c0_12], %21 {strides = array<i32>} : memref<10x10x32xf32, #tpu.memory_space<vmem>>, vector<1x8x32xf32>,
    %22 = vector.extract_strided_slice %15 {offsets = [8, 0], sizes = [8, 32], strides = [1, 1]} : vector<64x32xf32> to vector<8x32xf32>
    %c2 = arith.constant 2 : index
    %c1_13 = arith.constant 1 : index
    %c0_14 = arith.constant 0 : index
    %23 = vector.load %arg11[%c2, %c1_13, %c0_14] : memref<10x10x32xf32, #tpu.memory_space<vmem>>, vector<1x8x32xf32>
    %24 = vector.shape_cast %23 : vector<1x8x32xf32> to vector<8x32xf32>
    %25 = vector.shape_cast %22 : vector<8x32xf32> to vector<1x8x32xf32>
    tpu.vector_store %arg11[%c2, %c1_13, %c0_14], %25 {strides = array<i32>} : memref<10x10x32xf32, #tpu.memory_space<vmem>>, vector<1x8x32xf32>,
    %26 = vector.extract_strided_slice %15 {offsets = [16, 0], sizes = [8, 32], strides = [1, 1]} : vector<64x32xf32> to vector<8x32xf32>
    %c3 = arith.constant 3 : index
    %c1_15 = arith.constant 1 : index
    %c0_16 = arith.constant 0 : index
    %27 = vector.load %arg11[%c3, %c1_15, %c0_16] : memref<10x10x32xf32, #tpu.memory_space<vmem>>, vector<1x8x32xf32>
    %28 = vector.shape_cast %27 : vector<1x8x32xf32> to vector<8x32xf32>
    %29 = vector.shape_cast %26 : vector<8x32xf32> to vector<1x8x32xf32>
    tpu.vector_store %arg11[%c3, %c1_15, %c0_16], %29 {strides = array<i32>} : memref<10x10x32xf32, #tpu.memory_space<vmem>>, vector<1x8x32xf32>,
    %30 = vector.extract_strided_slice %15 {offsets = [24, 0], sizes = [8, 32], strides = [1, 1]} : vector<64x32xf32> to vector<8x32xf32>
    %c4 = arith.constant 4 : index
    %c1_17 = arith.constant 1 : index
    %c0_18 = arith.constant 0 : index
    %31 = vector.load %arg11[%c4, %c1_17, %c0_18] : memref<10x10x32xf32, #tpu.memory_space<vmem>>, vector<1x8x32xf32>
    %32 = vector.shape_cast %31 : vector<1x8x32xf32> to vector<8x32xf32>
    %33 = vector.shape_cast %30 : vector<8x32xf32> to vector<1x8x32xf32>
    tpu.vector_store %arg11[%c4, %c1_17, %c0_18], %33 {strides = array<i32>} : memref<10x10x32xf32, #tpu.memory_space<vmem>>, vector<1x8x32xf32>,
    %34 = vector.extract_strided_slice %15 {offsets = [32, 0], sizes = [8, 32], strides = [1, 1]} : vector<64x32xf32> to vector<8x32xf32>
    %c5 = arith.constant 5 : index
    %c1_19 = arith.constant 1 : index
    %c0_20 = arith.constant 0 : index
    %35 = vector.load %arg11[%c5, %c1_19, %c0_20] : memref<10x10x32xf32, #tpu.memory_space<vmem>>, vector<1x8x32xf32>
    %36 = vector.shape_cast %35 : vector<1x8x32xf32> to vector<8x32xf32>
    %37 = vector.shape_cast %34 : vector<8x32xf32> to vector<1x8x32xf32>
    tpu.vector_store %arg11[%c5, %c1_19, %c0_20], %37 {strides = array<i32>} : memref<10x10x32xf32, #tpu.memory_space<vmem>>, vector<1x8x32xf32>,
    %38 = vector.extract_strided_slice %15 {offsets = [40, 0], sizes = [8, 32], strides = [1, 1]} : vector<64x32xf32> to vector<8x32xf32>
    %c6 = arith.constant 6 : index
    %c1_21 = arith.constant 1 : index
    %c0_22 = arith.constant 0 : index
    %39 = vector.load %arg11[%c6, %c1_21, %c0_22] : memref<10x10x32xf32, #tpu.memory_space<vmem>>, vector<1x8x32xf32>
    %40 = vector.shape_cast %39 : vector<1x8x32xf32> to vector<8x32xf32>
    %41 = vector.shape_cast %38 : vector<8x32xf32> to vector<1x8x32xf32>
    tpu.vector_store %arg11[%c6, %c1_21, %c0_22], %41 {strides = array<i32>} : memref<10x10x32xf32, #tpu.memory_space<vmem>>, vector<1x8x32xf32>,
    %42 = vector.extract_strided_slice %15 {offsets = [48, 0], sizes = [8, 32], strides = [1, 1]} : vector<64x32xf32> to vector<8x32xf32>
    %c7 = arith.constant 7 : index
    %c1_23 = arith.constant 1 : index
    %c0_24 = arith.constant 0 : index
    %43 = vector.load %arg11[%c7, %c1_23, %c0_24] : memref<10x10x32xf32, #tpu.memory_space<vmem>>, vector<1x8x32xf32>
    %44 = vector.shape_cast %43 : vector<1x8x32xf32> to vector<8x32xf32>
    %45 = vector.shape_cast %42 : vector<8x32xf32> to vector<1x8x32xf32>
    tpu.vector_store %arg11[%c7, %c1_23, %c0_24], %45 {strides = array<i32>} : memref<10x10x32xf32, #tpu.memory_space<vmem>>, vector<1x8x32xf32>,
    %46 = vector.extract_strided_slice %15 {offsets = [56, 0], sizes = [8, 32], strides = [1, 1]} : vector<64x32xf32> to vector<8x32xf32>
    %c8 = arith.constant 8 : index
    %c1_25 = arith.constant 1 : index
    %c0_26 = arith.constant 0 : index
    %47 = vector.load %arg11[%c8, %c1_25, %c0_26] : memref<10x10x32xf32, #tpu.memory_space<vmem>>, vector<1x8x32xf32>
    %48 = vector.shape_cast %47 : vector<1x8x32xf32> to vector<8x32xf32>
    %49 = vector.shape_cast %46 : vector<8x32xf32> to vector<1x8x32xf32>
    tpu.vector_store %arg11[%c8, %c1_25, %c0_26], %49 {strides = array<i32>} : memref<10x10x32xf32, #tpu.memory_space<vmem>>, vector<1x8x32xf32>,
    %c0_27 = arith.constant 0 : index
    %c0_28 = arith.constant 0 : index
    %c0_29 = arith.constant 0 : index
    %50 = vector.load %arg11[%c0_27, %c0_28, %c0_29] : memref<10x10x32xf32, #tpu.memory_space<vmem>>, vector<1x8x32xf32>
    %51 = vector.shape_cast %50 : vector<1x8x32xf32> to vector<8x32xf32>
    %c0_30 = arith.constant 0 : index
    %c0_31 = arith.constant 0 : index
    %52 = vector.load %arg12[%c0_30, %c0_31] : memref<64x288xf32, #tpu.memory_space<vmem>>, vector<8x32xf32>
    tpu.vector_store %arg12[%c0_30, %c0_31], %51 {strides = array<i32>} : memref<64x288xf32, #tpu.memory_space<vmem>>, vector<8x32xf32>,
    %c1_32 = arith.constant 1 : index
    %c0_33 = arith.constant 0 : index
    %c0_34 = arith.constant 0 : index
    %53 = vector.load %arg11[%c1_32, %c0_33, %c0_34] : memref<10x10x32xf32, #tpu.memory_space<vmem>>, vector<1x8x32xf32>
    %54 = vector.shape_cast %53 : vector<1x8x32xf32> to vector<8x32xf32>
    %c8_35 = arith.constant 8 : index
    %c0_36 = arith.constant 0 : index
    %55 = vector.load %arg12[%c8_35, %c0_36] : memref<64x288xf32, #tpu.memory_space<vmem>>, vector<8x32xf32>
    tpu.vector_store %arg12[%c8_35, %c0_36], %54 {strides = array<i32>} : memref<64x288xf32, #tpu.memory_space<vmem>>, vector<8x32xf32>,
    %c2_37 = arith.constant 2 : index
    %c0_38 = arith.constant 0 : index
    %c0_39 = arith.constant 0 : index
    %56 = vector.load %arg11[%c2_37, %c0_38, %c0_39] : memref<10x10x32xf32, #tpu.memory_space<vmem>>, vector<1x8x32xf32>
    %57 = vector.shape_cast %56 : vector<1x8x32xf32> to vector<8x32xf32>
    %c16 = arith.constant 16 : index
    %c0_40 = arith.constant 0 : index
    %58 = vector.load %arg12[%c16, %c0_40] : memref<64x288xf32, #tpu.memory_space<vmem>>, vector<8x32xf32>
    tpu.vector_store %arg12[%c16, %c0_40], %57 {strides = array<i32>} : memref<64x288xf32, #tpu.memory_space<vmem>>, vector<8x32xf32>,
    %c3_41 = arith.constant 3 : index
    %c0_42 = arith.constant 0 : index
    %c0_43 = arith.constant 0 : index
    %59 = vector.load %arg11[%c3_41, %c0_42, %c0_43] : memref<10x10x32xf32, #tpu.memory_space<vmem>>, vector<1x8x32xf32>
    %60 = vector.shape_cast %59 : vector<1x8x32xf32> to vector<8x32xf32>
    %c24 = arith.constant 24 : index
    %c0_44 = arith.constant 0 : index
    %61 = vector.load %arg12[%c24, %c0_44] : memref<64x288xf32, #tpu.memory_space<vmem>>, vector<8x32xf32>
    tpu.vector_store %arg12[%c24, %c0_44], %60 {strides = array<i32>} : memref<64x288xf32, #tpu.memory_space<vmem>>, vector<8x32xf32>,
    %c4_45 = arith.constant 4 : index
    %c0_46 = arith.constant 0 : index
    %c0_47 = arith.constant 0 : index
    %62 = vector.load %arg11[%c4_45, %c0_46, %c0_47] : memref<10x10x32xf32, #tpu.memory_space<vmem>>, vector<1x8x32xf32>
    %63 = vector.shape_cast %62 : vector<1x8x32xf32> to vector<8x32xf32>
    %c32 = arith.constant 32 : index
    %c0_48 = arith.constant 0 : index
    %64 = vector.load %arg12[%c32, %c0_48] : memref<64x288xf32, #tpu.memory_space<vmem>>, vector<8x32xf32>
    tpu.vector_store %arg12[%c32, %c0_48], %63 {strides = array<i32>} : memref<64x288xf32, #tpu.memory_space<vmem>>, vector<8x32xf32>,
    %c5_49 = arith.constant 5 : index
    %c0_50 = arith.constant 0 : index
    %c0_51 = arith.constant 0 : index
    %65 = vector.load %arg11[%c5_49, %c0_50, %c0_51] : memref<10x10x32xf32, #tpu.memory_space<vmem>>, vector<1x8x32xf32>
    %66 = vector.shape_cast %65 : vector<1x8x32xf32> to vector<8x32xf32>
    %c40 = arith.constant 40 : index
    %c0_52 = arith.constant 0 : index
    %67 = vector.load %arg12[%c40, %c0_52] : memref<64x288xf32, #tpu.memory_space<vmem>>, vector<8x32xf32>
    tpu.vector_store %arg12[%c40, %c0_52], %66 {strides = array<i32>} : memref<64x288xf32, #tpu.memory_space<vmem>>, vector<8x32xf32>,
    %c6_53 = arith.constant 6 : index
    %c0_54 = arith.constant 0 : index
    %c0_55 = arith.constant 0 : index
    %68 = vector.load %arg11[%c6_53, %c0_54, %c0_55] : memref<10x10x32xf32, #tpu.memory_space<vmem>>, vector<1x8x32xf32>
    %69 = vector.shape_cast %68 : vector<1x8x32xf32> to vector<8x32xf32>
    %c48 = arith.constant 48 : index
    %c0_56 = arith.constant 0 : index
    %70 = vector.load %arg12[%c48, %c0_56] : memref<64x288xf32, #tpu.memory_space<vmem>>, vector<8x32xf32>
    tpu.vector_store %arg12[%c48, %c0_56], %69 {strides = array<i32>} : memref<64x288xf32, #tpu.memory_space<vmem>>, vector<8x32xf32>,
    %c7_57 = arith.constant 7 : index
    %c0_58 = arith.constant 0 : index
    %c0_59 = arith.constant 0 : index
    %71 = vector.load %arg11[%c7_57, %c0_58, %c0_59] : memref<10x10x32xf32, #tpu.memory_space<vmem>>, vector<1x8x32xf32>
    %72 = vector.shape_cast %71 : vector<1x8x32xf32> to vector<8x32xf32>
    %c56 = arith.constant 56 : index
    %c0_60 = arith.constant 0 : index
    %73 = vector.load %arg12[%c56, %c0_60] : memref<64x288xf32, #tpu.memory_space<vmem>>, vector<8x32xf32>
    tpu.vector_store %arg12[%c56, %c0_60], %72 {strides = array<i32>} : memref<64x288xf32, #tpu.memory_space<vmem>>, vector<8x32xf32>,
    %c0_61 = arith.constant 0 : index
    %c1_62 = arith.constant 1 : index
    %c0_63 = arith.constant 0 : index
    %74 = vector.load %arg11[%c0_61, %c1_62, %c0_63] : memref<10x10x32xf32, #tpu.memory_space<vmem>>, vector<1x8x32xf32>
    %75 = vector.shape_cast %74 : vector<1x8x32xf32> to vector<8x32xf32>
    %c0_64 = arith.constant 0 : index
    %c32_65 = arith.constant 32 : index
    %76 = vector.load %arg12[%c0_64, %c32_65] : memref<64x288xf32, #tpu.memory_space<vmem>>, vector<8x32xf32>
    tpu.vector_store %arg12[%c0_64, %c32_65], %75 {strides = array<i32>} : memref<64x288xf32, #tpu.memory_space<vmem>>, vector<8x32xf32>,
    %c1_66 = arith.constant 1 : index
    %c1_67 = arith.constant 1 : index
    %c0_68 = arith.constant 0 : index
    %77 = vector.load %arg11[%c1_66, %c1_67, %c0_68] : memref<10x10x32xf32, #tpu.memory_space<vmem>>, vector<1x8x32xf32>
    %78 = vector.shape_cast %77 : vector<1x8x32xf32> to vector<8x32xf32>
    %c8_69 = arith.constant 8 : index
    %c32_70 = arith.constant 32 : index
    %79 = vector.load %arg12[%c8_69, %c32_70] : memref<64x288xf32, #tpu.memory_space<vmem>>, vector<8x32xf32>
    tpu.vector_store %arg12[%c8_69, %c32_70], %78 {strides = array<i32>} : memref<64x288xf32, #tpu.memory_space<vmem>>, vector<8x32xf32>,
    %c2_71 = arith.constant 2 : index
    %c1_72 = arith.constant 1 : index
    %c0_73 = arith.constant 0 : index
    %80 = vector.load %arg11[%c2_71, %c1_72, %c0_73] : memref<10x10x32xf32, #tpu.memory_space<vmem>>, vector<1x8x32xf32>
    %81 = vector.shape_cast %80 : vector<1x8x32xf32> to vector<8x32xf32>
    %c16_74 = arith.constant 16 : index
    %c32_75 = arith.constant 32 : index
    %82 = vector.load %arg12[%c16_74, %c32_75] : memref<64x288xf32, #tpu.memory_space<vmem>>, vector<8x32xf32>
    tpu.vector_store %arg12[%c16_74, %c32_75], %81 {strides = array<i32>} : memref<64x288xf32, #tpu.memory_space<vmem>>, vector<8x32xf32>,
    %c3_76 = arith.constant 3 : index
    %c1_77 = arith.constant 1 : index
    %c0_78 = arith.constant 0 : index
    %83 = vector.load %arg11[%c3_76, %c1_77, %c0_78] : memref<10x10x32xf32, #tpu.memory_space<vmem>>, vector<1x8x32xf32>
    %84 = vector.shape_cast %83 : vector<1x8x32xf32> to vector<8x32xf32>
    %c24_79 = arith.constant 24 : index
    %c32_80 = arith.constant 32 : index
    %85 = vector.load %arg12[%c24_79, %c32_80] : memref<64x288xf32, #tpu.memory_space<vmem>>, vector<8x32xf32>
    tpu.vector_store %arg12[%c24_79, %c32_80], %84 {strides = array<i32>} : memref<64x288xf32, #tpu.memory_space<vmem>>, vector<8x32xf32>,
    %c4_81 = arith.constant 4 : index
    %c1_82 = arith.constant 1 : index
    %c0_83 = arith.constant 0 : index
    %86 = vector.load %arg11[%c4_81, %c1_82, %c0_83] : memref<10x10x32xf32, #tpu.memory_space<vmem>>, vector<1x8x32xf32>
    %87 = vector.shape_cast %86 : vector<1x8x32xf32> to vector<8x32xf32>
    %c32_84 = arith.constant 32 : index
    %c32_85 = arith.constant 32 : index
    %88 = vector.load %arg12[%c32_84, %c32_85] : memref<64x288xf32, #tpu.memory_space<vmem>>, vector<8x32xf32>
    tpu.vector_store %arg12[%c32_84, %c32_85], %87 {strides = array<i32>} : memref<64x288xf32, #tpu.memory_space<vmem>>, vector<8x32xf32>,
    %c5_86 = arith.constant 5 : index
    %c1_87 = arith.constant 1 : index
    %c0_88 = arith.constant 0 : index
    %89 = vector.load %arg11[%c5_86, %c1_87, %c0_88] : memref<10x10x32xf32, #tpu.memory_space<vmem>>, vector<1x8x32xf32>
    %90 = vector.shape_cast %89 : vector<1x8x32xf32> to vector<8x32xf32>
    %c40_89 = arith.constant 40 : index
    %c32_90 = arith.constant 32 : index
    %91 = vector.load %arg12[%c40_89, %c32_90] : memref<64x288xf32, #tpu.memory_space<vmem>>, vector<8x32xf32>
    tpu.vector_store %arg12[%c40_89, %c32_90], %90 {strides = array<i32>} : memref<64x288xf32, #tpu.memory_space<vmem>>, vector<8x32xf32>,
    %c6_91 = arith.constant 6 : index
    %c1_92 = arith.constant 1 : index
    %c0_93 = arith.constant 0 : index
    %92 = vector.load %arg11[%c6_91, %c1_92, %c0_93] : memref<10x10x32xf32, #tpu.memory_space<vmem>>, vector<1x8x32xf32>
    %93 = vector.shape_cast %92 : vector<1x8x32xf32> to vector<8x32xf32>
    %c48_94 = arith.constant 48 : index
    %c32_95 = arith.constant 32 : index
    %94 = vector.load %arg12[%c48_94, %c32_95] : memref<64x288xf32, #tpu.memory_space<vmem>>, vector<8x32xf32>
    tpu.vector_store %arg12[%c48_94, %c32_95], %93 {strides = array<i32>} : memref<64x288xf32, #tpu.memory_space<vmem>>, vector<8x32xf32>,
    %c7_96 = arith.constant 7 : index
    %c1_97 = arith.constant 1 : index
    %c0_98 = arith.constant 0 : index
    %95 = vector.load %arg11[%c7_96, %c1_97, %c0_98] : memref<10x10x32xf32, #tpu.memory_space<vmem>>, vector<1x8x32xf32>
    %96 = vector.shape_cast %95 : vector<1x8x32xf32> to vector<8x32xf32>
    %c56_99 = arith.constant 56 : index
    %c32_100 = arith.constant 32 : index
    %97 = vector.load %arg12[%c56_99, %c32_100] : memref<64x288xf32, #tpu.memory_space<vmem>>, vector<8x32xf32>
    tpu.vector_store %arg12[%c56_99, %c32_100], %96 {strides = array<i32>} : memref<64x288xf32, #tpu.memory_space<vmem>>, vector<8x32xf32>,
    %c0_101 = arith.constant 0 : index
    %c2_102 = arith.constant 2 : index
    %c0_103 = arith.constant 0 : index
    %98 = vector.load %arg11[%c0_101, %c2_102, %c0_103] : memref<10x10x32xf32, #tpu.memory_space<vmem>>, vector<1x8x32xf32>
    %99 = vector.shape_cast %98 : vector<1x8x32xf32> to vector<8x32xf32>
    %c0_104 = arith.constant 0 : index
    %c64 = arith.constant 64 : index
    %100 = vector.load %arg12[%c0_104, %c64] : memref<64x288xf32, #tpu.memory_space<vmem>>, vector<8x32xf32>
    tpu.vector_store %arg12[%c0_104, %c64], %99 {strides = array<i32>} : memref<64x288xf32, #tpu.memory_space<vmem>>, vector<8x32xf32>,
    %c1_105 = arith.constant 1 : index
    %c2_106 = arith.constant 2 : index
    %c0_107 = arith.constant 0 : index
    %101 = vector.load %arg11[%c1_105, %c2_106, %c0_107] : memref<10x10x32xf32, #tpu.memory_space<vmem>>, vector<1x8x32xf32>
    %102 = vector.shape_cast %101 : vector<1x8x32xf32> to vector<8x32xf32>
    %c8_108 = arith.constant 8 : index
    %c64_109 = arith.constant 64 : index
    %103 = vector.load %arg12[%c8_108, %c64_109] : memref<64x288xf32, #tpu.memory_space<vmem>>, vector<8x32xf32>
    tpu.vector_store %arg12[%c8_108, %c64_109], %102 {strides = array<i32>} : memref<64x288xf32, #tpu.memory_space<vmem>>, vector<8x32xf32>,
    %c2_110 = arith.constant 2 : index
    %c2_111 = arith.constant 2 : index
    %c0_112 = arith.constant 0 : index
    %104 = vector.load %arg11[%c2_110, %c2_111, %c0_112] : memref<10x10x32xf32, #tpu.memory_space<vmem>>, vector<1x8x32xf32>
    %105 = vector.shape_cast %104 : vector<1x8x32xf32> to vector<8x32xf32>
    %c16_113 = arith.constant 16 : index
    %c64_114 = arith.constant 64 : index
    %106 = vector.load %arg12[%c16_113, %c64_114] : memref<64x288xf32, #tpu.memory_space<vmem>>, vector<8x32xf32>
    tpu.vector_store %arg12[%c16_113, %c64_114], %105 {strides = array<i32>} : memref<64x288xf32, #tpu.memory_space<vmem>>, vector<8x32xf32>,
    %c3_115 = arith.constant 3 : index
    %c2_116 = arith.constant 2 : index
    %c0_117 = arith.constant 0 : index
    %107 = vector.load %arg11[%c3_115, %c2_116, %c0_117] : memref<10x10x32xf32, #tpu.memory_space<vmem>>, vector<1x8x32xf32>
    %108 = vector.shape_cast %107 : vector<1x8x32xf32> to vector<8x32xf32>
    %c24_118 = arith.constant 24 : index
    %c64_119 = arith.constant 64 : index
    %109 = vector.load %arg12[%c24_118, %c64_119] : memref<64x288xf32, #tpu.memory_space<vmem>>, vector<8x32xf32>
    tpu.vector_store %arg12[%c24_118, %c64_119], %108 {strides = array<i32>} : memref<64x288xf32, #tpu.memory_space<vmem>>, vector<8x32xf32>,
    %c4_120 = arith.constant 4 : index
    %c2_121 = arith.constant 2 : index
    %c0_122 = arith.constant 0 : index
    %110 = vector.load %arg11[%c4_120, %c2_121, %c0_122] : memref<10x10x32xf32, #tpu.memory_space<vmem>>, vector<1x8x32xf32>
    %111 = vector.shape_cast %110 : vector<1x8x32xf32> to vector<8x32xf32>
    %c32_123 = arith.constant 32 : index
    %c64_124 = arith.constant 64 : index
    %112 = vector.load %arg12[%c32_123, %c64_124] : memref<64x288xf32, #tpu.memory_space<vmem>>, vector<8x32xf32>
    tpu.vector_store %arg12[%c32_123, %c64_124], %111 {strides = array<i32>} : memref<64x288xf32, #tpu.memory_space<vmem>>, vector<8x32xf32>,
    %c5_125 = arith.constant 5 : index
    %c2_126 = arith.constant 2 : index
    %c0_127 = arith.constant 0 : index
    %113 = vector.load %arg11[%c5_125, %c2_126, %c0_127] : memref<10x10x32xf32, #tpu.memory_space<vmem>>, vector<1x8x32xf32>
    %114 = vector.shape_cast %113 : vector<1x8x32xf32> to vector<8x32xf32>
    %c40_128 = arith.constant 40 : index
    %c64_129 = arith.constant 64 : index
    %115 = vector.load %arg12[%c40_128, %c64_129] : memref<64x288xf32, #tpu.memory_space<vmem>>, vector<8x32xf32>
    tpu.vector_store %arg12[%c40_128, %c64_129], %114 {strides = array<i32>} : memref<64x288xf32, #tpu.memory_space<vmem>>, vector<8x32xf32>,
    %c6_130 = arith.constant 6 : index
    %c2_131 = arith.constant 2 : index
    %c0_132 = arith.constant 0 : index
    %116 = vector.load %arg11[%c6_130, %c2_131, %c0_132] : memref<10x10x32xf32, #tpu.memory_space<vmem>>, vector<1x8x32xf32>
    %117 = vector.shape_cast %116 : vector<1x8x32xf32> to vector<8x32xf32>
    %c48_133 = arith.constant 48 : index
    %c64_134 = arith.constant 64 : index
    %118 = vector.load %arg12[%c48_133, %c64_134] : memref<64x288xf32, #tpu.memory_space<vmem>>, vector<8x32xf32>
    tpu.vector_store %arg12[%c48_133, %c64_134], %117 {strides = array<i32>} : memref<64x288xf32, #tpu.memory_space<vmem>>, vector<8x32xf32>,
    %c7_135 = arith.constant 7 : index
    %c2_136 = arith.constant 2 : index
    %c0_137 = arith.constant 0 : index
    %119 = vector.load %arg11[%c7_135, %c2_136, %c0_137] : memref<10x10x32xf32, #tpu.memory_space<vmem>>, vector<1x8x32xf32>
    %120 = vector.shape_cast %119 : vector<1x8x32xf32> to vector<8x32xf32>
    %c56_138 = arith.constant 56 : index
    %c64_139 = arith.constant 64 : index
    %121 = vector.load %arg12[%c56_138, %c64_139] : memref<64x288xf32, #tpu.memory_space<vmem>>, vector<8x32xf32>
    tpu.vector_store %arg12[%c56_138, %c64_139], %120 {strides = array<i32>} : memref<64x288xf32, #tpu.memory_space<vmem>>, vector<8x32xf32>,
    %c1_140 = arith.constant 1 : index
    %c0_141 = arith.constant 0 : index
    %c0_142 = arith.constant 0 : index
    %122 = vector.load %arg11[%c1_140, %c0_141, %c0_142] : memref<10x10x32xf32, #tpu.memory_space<vmem>>, vector<1x8x32xf32>
    %123 = vector.shape_cast %122 : vector<1x8x32xf32> to vector<8x32xf32>
    %c0_143 = arith.constant 0 : index
    %c96 = arith.constant 96 : index
    %124 = vector.load %arg12[%c0_143, %c96] : memref<64x288xf32, #tpu.memory_space<vmem>>, vector<8x32xf32>
    tpu.vector_store %arg12[%c0_143, %c96], %123 {strides = array<i32>} : memref<64x288xf32, #tpu.memory_space<vmem>>, vector<8x32xf32>,
    %c2_144 = arith.constant 2 : index
    %c0_145 = arith.constant 0 : index
    %c0_146 = arith.constant 0 : index
    %125 = vector.load %arg11[%c2_144, %c0_145, %c0_146] : memref<10x10x32xf32, #tpu.memory_space<vmem>>, vector<1x8x32xf32>
    %126 = vector.shape_cast %125 : vector<1x8x32xf32> to vector<8x32xf32>
    %c8_147 = arith.constant 8 : index
    %c96_148 = arith.constant 96 : index
    %127 = vector.load %arg12[%c8_147, %c96_148] : memref<64x288xf32, #tpu.memory_space<vmem>>, vector<8x32xf32>
    tpu.vector_store %arg12[%c8_147, %c96_148], %126 {strides = array<i32>} : memref<64x288xf32, #tpu.memory_space<vmem>>, vector<8x32xf32>,
    %c3_149 = arith.constant 3 : index
    %c0_150 = arith.constant 0 : index
    %c0_151 = arith.constant 0 : index
    %128 = vector.load %arg11[%c3_149, %c0_150, %c0_151] : memref<10x10x32xf32, #tpu.memory_space<vmem>>, vector<1x8x32xf32>
    %129 = vector.shape_cast %128 : vector<1x8x32xf32> to vector<8x32xf32>
    %c16_152 = arith.constant 16 : index
    %c96_153 = arith.constant 96 : index
    %130 = vector.load %arg12[%c16_152, %c96_153] : memref<64x288xf32, #tpu.memory_space<vmem>>, vector<8x32xf32>
    tpu.vector_store %arg12[%c16_152, %c96_153], %129 {strides = array<i32>} : memref<64x288xf32, #tpu.memory_space<vmem>>, vector<8x32xf32>,
    %c4_154 = arith.constant 4 : index
    %c0_155 = arith.constant 0 : index
    %c0_156 = arith.constant 0 : index
    %131 = vector.load %arg11[%c4_154, %c0_155, %c0_156] : memref<10x10x32xf32, #tpu.memory_space<vmem>>, vector<1x8x32xf32>
    %132 = vector.shape_cast %131 : vector<1x8x32xf32> to vector<8x32xf32>
    %c24_157 = arith.constant 24 : index
    %c96_158 = arith.constant 96 : index
    %133 = vector.load %arg12[%c24_157, %c96_158] : memref<64x288xf32, #tpu.memory_space<vmem>>, vector<8x32xf32>
    tpu.vector_store %arg12[%c24_157, %c96_158], %132 {strides = array<i32>} : memref<64x288xf32, #tpu.memory_space<vmem>>, vector<8x32xf32>,
    %c5_159 = arith.constant 5 : index
    %c0_160 = arith.constant 0 : index
    %c0_161 = arith.constant 0 : index
    %134 = vector.load %arg11[%c5_159, %c0_160, %c0_161] : memref<10x10x32xf32, #tpu.memory_space<vmem>>, vector<1x8x32xf32>
    %135 = vector.shape_cast %134 : vector<1x8x32xf32> to vector<8x32xf32>
    %c32_162 = arith.constant 32 : index
    %c96_163 = arith.constant 96 : index
    %136 = vector.load %arg12[%c32_162, %c96_163] : memref<64x288xf32, #tpu.memory_space<vmem>>, vector<8x32xf32>
    tpu.vector_store %arg12[%c32_162, %c96_163], %135 {strides = array<i32>} : memref<64x288xf32, #tpu.memory_space<vmem>>, vector<8x32xf32>,
    %c6_164 = arith.constant 6 : index
    %c0_165 = arith.constant 0 : index
    %c0_166 = arith.constant 0 : index
    %137 = vector.load %arg11[%c6_164, %c0_165, %c0_166] : memref<10x10x32xf32, #tpu.memory_space<vmem>>, vector<1x8x32xf32>
    %138 = vector.shape_cast %137 : vector<1x8x32xf32> to vector<8x32xf32>
    %c40_167 = arith.constant 40 : index
    %c96_168 = arith.constant 96 : index
    %139 = vector.load %arg12[%c40_167, %c96_168] : memref<64x288xf32, #tpu.memory_space<vmem>>, vector<8x32xf32>
    tpu.vector_store %arg12[%c40_167, %c96_168], %138 {strides = array<i32>} : memref<64x288xf32, #tpu.memory_space<vmem>>, vector<8x32xf32>,
    %c7_169 = arith.constant 7 : index
    %c0_170 = arith.constant 0 : index
    %c0_171 = arith.constant 0 : index
    %140 = vector.load %arg11[%c7_169, %c0_170, %c0_171] : memref<10x10x32xf32, #tpu.memory_space<vmem>>, vector<1x8x32xf32>
    %141 = vector.shape_cast %140 : vector<1x8x32xf32> to vector<8x32xf32>
    %c48_172 = arith.constant 48 : index
    %c96_173 = arith.constant 96 : index
    %142 = vector.load %arg12[%c48_172, %c96_173] : memref<64x288xf32, #tpu.memory_space<vmem>>, vector<8x32xf32>
    tpu.vector_store %arg12[%c48_172, %c96_173], %141 {strides = array<i32>} : memref<64x288xf32, #tpu.memory_space<vmem>>, vector<8x32xf32>,
    %c8_174 = arith.constant 8 : index
    %c0_175 = arith.constant 0 : index
    %c0_176 = arith.constant 0 : index
    %143 = vector.load %arg11[%c8_174, %c0_175, %c0_176] : memref<10x10x32xf32, #tpu.memory_space<vmem>>, vector<1x8x32xf32>
    %144 = vector.shape_cast %143 : vector<1x8x32xf32> to vector<8x32xf32>
    %c56_177 = arith.constant 56 : index
    %c96_178 = arith.constant 96 : index
    %145 = vector.load %arg12[%c56_177, %c96_178] : memref<64x288xf32, #tpu.memory_space<vmem>>, vector<8x32xf32>
    tpu.vector_store %arg12[%c56_177, %c96_178], %144 {strides = array<i32>} : memref<64x288xf32, #tpu.memory_space<vmem>>, vector<8x32xf32>,
    %c1_179 = arith.constant 1 : index
    %c1_180 = arith.constant 1 : index
    %c0_181 = arith.constant 0 : index
    %146 = vector.load %arg11[%c1_179, %c1_180, %c0_181] : memref<10x10x32xf32, #tpu.memory_space<vmem>>, vector<1x8x32xf32>
    %147 = vector.shape_cast %146 : vector<1x8x32xf32> to vector<8x32xf32>
    %c0_182 = arith.constant 0 : index
    %c128 = arith.constant 128 : index
    %148 = vector.load %arg12[%c0_182, %c128] : memref<64x288xf32, #tpu.memory_space<vmem>>, vector<8x32xf32>
    tpu.vector_store %arg12[%c0_182, %c128], %147 {strides = array<i32>} : memref<64x288xf32, #tpu.memory_space<vmem>>, vector<8x32xf32>,
    %c2_183 = arith.constant 2 : index
    %c1_184 = arith.constant 1 : index
    %c0_185 = arith.constant 0 : index
    %149 = vector.load %arg11[%c2_183, %c1_184, %c0_185] : memref<10x10x32xf32, #tpu.memory_space<vmem>>, vector<1x8x32xf32>
    %150 = vector.shape_cast %149 : vector<1x8x32xf32> to vector<8x32xf32>
    %c8_186 = arith.constant 8 : index
    %c128_187 = arith.constant 128 : index
    %151 = vector.load %arg12[%c8_186, %c128_187] : memref<64x288xf32, #tpu.memory_space<vmem>>, vector<8x32xf32>
    tpu.vector_store %arg12[%c8_186, %c128_187], %150 {strides = array<i32>} : memref<64x288xf32, #tpu.memory_space<vmem>>, vector<8x32xf32>,
    %c3_188 = arith.constant 3 : index
    %c1_189 = arith.constant 1 : index
    %c0_190 = arith.constant 0 : index
    %152 = vector.load %arg11[%c3_188, %c1_189, %c0_190] : memref<10x10x32xf32, #tpu.memory_space<vmem>>, vector<1x8x32xf32>
    %153 = vector.shape_cast %152 : vector<1x8x32xf32> to vector<8x32xf32>
    %c16_191 = arith.constant 16 : index
    %c128_192 = arith.constant 128 : index
    %154 = vector.load %arg12[%c16_191, %c128_192] : memref<64x288xf32, #tpu.memory_space<vmem>>, vector<8x32xf32>
    tpu.vector_store %arg12[%c16_191, %c128_192], %153 {strides = array<i32>} : memref<64x288xf32, #tpu.memory_space<vmem>>, vector<8x32xf32>,
    %c4_193 = arith.constant 4 : index
    %c1_194 = arith.constant 1 : index
    %c0_195 = arith.constant 0 : index
    %155 = vector.load %arg11[%c4_193, %c1_194, %c0_195] : memref<10x10x32xf32, #tpu.memory_space<vmem>>, vector<1x8x32xf32>
    %156 = vector.shape_cast %155 : vector<1x8x32xf32> to vector<8x32xf32>
    %c24_196 = arith.constant 24 : index
    %c128_197 = arith.constant 128 : index
    %157 = vector.load %arg12[%c24_196, %c128_197] : memref<64x288xf32, #tpu.memory_space<vmem>>, vector<8x32xf32>
    tpu.vector_store %arg12[%c24_196, %c128_197], %156 {strides = array<i32>} : memref<64x288xf32, #tpu.memory_space<vmem>>, vector<8x32xf32>,
    %c5_198 = arith.constant 5 : index
    %c1_199 = arith.constant 1 : index
    %c0_200 = arith.constant 0 : index
    %158 = vector.load %arg11[%c5_198, %c1_199, %c0_200] : memref<10x10x32xf32, #tpu.memory_space<vmem>>, vector<1x8x32xf32>
    %159 = vector.shape_cast %158 : vector<1x8x32xf32> to vector<8x32xf32>
    %c32_201 = arith.constant 32 : index
    %c128_202 = arith.constant 128 : index
    %160 = vector.load %arg12[%c32_201, %c128_202] : memref<64x288xf32, #tpu.memory_space<vmem>>, vector<8x32xf32>
    tpu.vector_store %arg12[%c32_201, %c128_202], %159 {strides = array<i32>} : memref<64x288xf32, #tpu.memory_space<vmem>>, vector<8x32xf32>,
    %c6_203 = arith.constant 6 : index
    %c1_204 = arith.constant 1 : index
    %c0_205 = arith.constant 0 : index
    %161 = vector.load %arg11[%c6_203, %c1_204, %c0_205] : memref<10x10x32xf32, #tpu.memory_space<vmem>>, vector<1x8x32xf32>
    %162 = vector.shape_cast %161 : vector<1x8x32xf32> to vector<8x32xf32>
    %c40_206 = arith.constant 40 : index
    %c128_207 = arith.constant 128 : index
    %163 = vector.load %arg12[%c40_206, %c128_207] : memref<64x288xf32, #tpu.memory_space<vmem>>, vector<8x32xf32>
    tpu.vector_store %arg12[%c40_206, %c128_207], %162 {strides = array<i32>} : memref<64x288xf32, #tpu.memory_space<vmem>>, vector<8x32xf32>,
    %c7_208 = arith.constant 7 : index
    %c1_209 = arith.constant 1 : index
    %c0_210 = arith.constant 0 : index
    %164 = vector.load %arg11[%c7_208, %c1_209, %c0_210] : memref<10x10x32xf32, #tpu.memory_space<vmem>>, vector<1x8x32xf32>
    %165 = vector.shape_cast %164 : vector<1x8x32xf32> to vector<8x32xf32>
    %c48_211 = arith.constant 48 : index
    %c128_212 = arith.constant 128 : index
    %166 = vector.load %arg12[%c48_211, %c128_212] : memref<64x288xf32, #tpu.memory_space<vmem>>, vector<8x32xf32>
    tpu.vector_store %arg12[%c48_211, %c128_212], %165 {strides = array<i32>} : memref<64x288xf32, #tpu.memory_space<vmem>>, vector<8x32xf32>,
    %c8_213 = arith.constant 8 : index
    %c1_214 = arith.constant 1 : index
    %c0_215 = arith.constant 0 : index
    %167 = vector.load %arg11[%c8_213, %c1_214, %c0_215] : memref<10x10x32xf32, #tpu.memory_space<vmem>>, vector<1x8x32xf32>
    %168 = vector.shape_cast %167 : vector<1x8x32xf32> to vector<8x32xf32>
    %c56_216 = arith.constant 56 : index
    %c128_217 = arith.constant 128 : index
    %169 = vector.load %arg12[%c56_216, %c128_217] : memref<64x288xf32, #tpu.memory_space<vmem>>, vector<8x32xf32>
    tpu.vector_store %arg12[%c56_216, %c128_217], %168 {strides = array<i32>} : memref<64x288xf32, #tpu.memory_space<vmem>>, vector<8x32xf32>,
    %c1_218 = arith.constant 1 : index
    %c2_219 = arith.constant 2 : index
    %c0_220 = arith.constant 0 : index
    %170 = vector.load %arg11[%c1_218, %c2_219, %c0_220] : memref<10x10x32xf32, #tpu.memory_space<vmem>>, vector<1x8x32xf32>
    %171 = vector.shape_cast %170 : vector<1x8x32xf32> to vector<8x32xf32>
    %c0_221 = arith.constant 0 : index
    %c160 = arith.constant 160 : index
    %172 = vector.load %arg12[%c0_221, %c160] : memref<64x288xf32, #tpu.memory_space<vmem>>, vector<8x32xf32>
    tpu.vector_store %arg12[%c0_221, %c160], %171 {strides = array<i32>} : memref<64x288xf32, #tpu.memory_space<vmem>>, vector<8x32xf32>,
    %c2_222 = arith.constant 2 : index
    %c2_223 = arith.constant 2 : index
    %c0_224 = arith.constant 0 : index
    %173 = vector.load %arg11[%c2_222, %c2_223, %c0_224] : memref<10x10x32xf32, #tpu.memory_space<vmem>>, vector<1x8x32xf32>
    %174 = vector.shape_cast %173 : vector<1x8x32xf32> to vector<8x32xf32>
    %c8_225 = arith.constant 8 : index
    %c160_226 = arith.constant 160 : index
    %175 = vector.load %arg12[%c8_225, %c160_226] : memref<64x288xf32, #tpu.memory_space<vmem>>, vector<8x32xf32>
    tpu.vector_store %arg12[%c8_225, %c160_226], %174 {strides = array<i32>} : memref<64x288xf32, #tpu.memory_space<vmem>>, vector<8x32xf32>,
    %c3_227 = arith.constant 3 : index
    %c2_228 = arith.constant 2 : index
    %c0_229 = arith.constant 0 : index
    %176 = vector.load %arg11[%c3_227, %c2_228, %c0_229] : memref<10x10x32xf32, #tpu.memory_space<vmem>>, vector<1x8x32xf32>
    %177 = vector.shape_cast %176 : vector<1x8x32xf32> to vector<8x32xf32>
    %c16_230 = arith.constant 16 : index
    %c160_231 = arith.constant 160 : index
    %178 = vector.load %arg12[%c16_230, %c160_231] : memref<64x288xf32, #tpu.memory_space<vmem>>, vector<8x32xf32>
    tpu.vector_store %arg12[%c16_230, %c160_231], %177 {strides = array<i32>} : memref<64x288xf32, #tpu.memory_space<vmem>>, vector<8x32xf32>,
    %c4_232 = arith.constant 4 : index
    %c2_233 = arith.constant 2 : index
    %c0_234 = arith.constant 0 : index
    %179 = vector.load %arg11[%c4_232, %c2_233, %c0_234] : memref<10x10x32xf32, #tpu.memory_space<vmem>>, vector<1x8x32xf32>
    %180 = vector.shape_cast %179 : vector<1x8x32xf32> to vector<8x32xf32>
    %c24_235 = arith.constant 24 : index
    %c160_236 = arith.constant 160 : index
    %181 = vector.load %arg12[%c24_235, %c160_236] : memref<64x288xf32, #tpu.memory_space<vmem>>, vector<8x32xf32>
    tpu.vector_store %arg12[%c24_235, %c160_236], %180 {strides = array<i32>} : memref<64x288xf32, #tpu.memory_space<vmem>>, vector<8x32xf32>,
    %c5_237 = arith.constant 5 : index
    %c2_238 = arith.constant 2 : index
    %c0_239 = arith.constant 0 : index
    %182 = vector.load %arg11[%c5_237, %c2_238, %c0_239] : memref<10x10x32xf32, #tpu.memory_space<vmem>>, vector<1x8x32xf32>
    %183 = vector.shape_cast %182 : vector<1x8x32xf32> to vector<8x32xf32>
    %c32_240 = arith.constant 32 : index
    %c160_241 = arith.constant 160 : index
    %184 = vector.load %arg12[%c32_240, %c160_241] : memref<64x288xf32, #tpu.memory_space<vmem>>, vector<8x32xf32>
    tpu.vector_store %arg12[%c32_240, %c160_241], %183 {strides = array<i32>} : memref<64x288xf32, #tpu.memory_space<vmem>>, vector<8x32xf32>,
    %c6_242 = arith.constant 6 : index
    %c2_243 = arith.constant 2 : index
    %c0_244 = arith.constant 0 : index
    %185 = vector.load %arg11[%c6_242, %c2_243, %c0_244] : memref<10x10x32xf32, #tpu.memory_space<vmem>>, vector<1x8x32xf32>
    %186 = vector.shape_cast %185 : vector<1x8x32xf32> to vector<8x32xf32>
    %c40_245 = arith.constant 40 : index
    %c160_246 = arith.constant 160 : index
    %187 = vector.load %arg12[%c40_245, %c160_246] : memref<64x288xf32, #tpu.memory_space<vmem>>, vector<8x32xf32>
    tpu.vector_store %arg12[%c40_245, %c160_246], %186 {strides = array<i32>} : memref<64x288xf32, #tpu.memory_space<vmem>>, vector<8x32xf32>,
    %c7_247 = arith.constant 7 : index
    %c2_248 = arith.constant 2 : index
    %c0_249 = arith.constant 0 : index
    %188 = vector.load %arg11[%c7_247, %c2_248, %c0_249] : memref<10x10x32xf32, #tpu.memory_space<vmem>>, vector<1x8x32xf32>
    %189 = vector.shape_cast %188 : vector<1x8x32xf32> to vector<8x32xf32>
    %c48_250 = arith.constant 48 : index
    %c160_251 = arith.constant 160 : index
    %190 = vector.load %arg12[%c48_250, %c160_251] : memref<64x288xf32, #tpu.memory_space<vmem>>, vector<8x32xf32>
    tpu.vector_store %arg12[%c48_250, %c160_251], %189 {strides = array<i32>} : memref<64x288xf32, #tpu.memory_space<vmem>>, vector<8x32xf32>,
    %c8_252 = arith.constant 8 : index
    %c2_253 = arith.constant 2 : index
    %c0_254 = arith.constant 0 : index
    %191 = vector.load %arg11[%c8_252, %c2_253, %c0_254] : memref<10x10x32xf32, #tpu.memory_space<vmem>>, vector<1x8x32xf32>
    %192 = vector.shape_cast %191 : vector<1x8x32xf32> to vector<8x32xf32>
    %c56_255 = arith.constant 56 : index
    %c160_256 = arith.constant 160 : index
    %193 = vector.load %arg12[%c56_255, %c160_256] : memref<64x288xf32, #tpu.memory_space<vmem>>, vector<8x32xf32>
    tpu.vector_store %arg12[%c56_255, %c160_256], %192 {strides = array<i32>} : memref<64x288xf32, #tpu.memory_space<vmem>>, vector<8x32xf32>,
    %c2_257 = arith.constant 2 : index
    %c0_258 = arith.constant 0 : index
    %c0_259 = arith.constant 0 : index
    %194 = vector.load %arg11[%c2_257, %c0_258, %c0_259] : memref<10x10x32xf32, #tpu.memory_space<vmem>>, vector<1x8x32xf32>
    %195 = vector.shape_cast %194 : vector<1x8x32xf32> to vector<8x32xf32>
    %c0_260 = arith.constant 0 : index
    %c192 = arith.constant 192 : index
    %196 = vector.load %arg12[%c0_260, %c192] : memref<64x288xf32, #tpu.memory_space<vmem>>, vector<8x32xf32>
    tpu.vector_store %arg12[%c0_260, %c192], %195 {strides = array<i32>} : memref<64x288xf32, #tpu.memory_space<vmem>>, vector<8x32xf32>,
    %c3_261 = arith.constant 3 : index
    %c0_262 = arith.constant 0 : index
    %c0_263 = arith.constant 0 : index
    %197 = vector.load %arg11[%c3_261, %c0_262, %c0_263] : memref<10x10x32xf32, #tpu.memory_space<vmem>>, vector<1x8x32xf32>
    %198 = vector.shape_cast %197 : vector<1x8x32xf32> to vector<8x32xf32>
    %c8_264 = arith.constant 8 : index
    %c192_265 = arith.constant 192 : index
    %199 = vector.load %arg12[%c8_264, %c192_265] : memref<64x288xf32, #tpu.memory_space<vmem>>, vector<8x32xf32>
    tpu.vector_store %arg12[%c8_264, %c192_265], %198 {strides = array<i32>} : memref<64x288xf32, #tpu.memory_space<vmem>>, vector<8x32xf32>,
    %c4_266 = arith.constant 4 : index
    %c0_267 = arith.constant 0 : index
    %c0_268 = arith.constant 0 : index
    %200 = vector.load %arg11[%c4_266, %c0_267, %c0_268] : memref<10x10x32xf32, #tpu.memory_space<vmem>>, vector<1x8x32xf32>
    %201 = vector.shape_cast %200 : vector<1x8x32xf32> to vector<8x32xf32>
    %c16_269 = arith.constant 16 : index
    %c192_270 = arith.constant 192 : index
    %202 = vector.load %arg12[%c16_269, %c192_270] : memref<64x288xf32, #tpu.memory_space<vmem>>, vector<8x32xf32>
    tpu.vector_store %arg12[%c16_269, %c192_270], %201 {strides = array<i32>} : memref<64x288xf32, #tpu.memory_space<vmem>>, vector<8x32xf32>,
    %c5_271 = arith.constant 5 : index
    %c0_272 = arith.constant 0 : index
    %c0_273 = arith.constant 0 : index
    %203 = vector.load %arg11[%c5_271, %c0_272, %c0_273] : memref<10x10x32xf32, #tpu.memory_space<vmem>>, vector<1x8x32xf32>
    %204 = vector.shape_cast %203 : vector<1x8x32xf32> to vector<8x32xf32>
    %c24_274 = arith.constant 24 : index
    %c192_275 = arith.constant 192 : index
    %205 = vector.load %arg12[%c24_274, %c192_275] : memref<64x288xf32, #tpu.memory_space<vmem>>, vector<8x32xf32>
    tpu.vector_store %arg12[%c24_274, %c192_275], %204 {strides = array<i32>} : memref<64x288xf32, #tpu.memory_space<vmem>>, vector<8x32xf32>,
    %c6_276 = arith.constant 6 : index
    %c0_277 = arith.constant 0 : index
    %c0_278 = arith.constant 0 : index
    %206 = vector.load %arg11[%c6_276, %c0_277, %c0_278] : memref<10x10x32xf32, #tpu.memory_space<vmem>>, vector<1x8x32xf32>
    %207 = vector.shape_cast %206 : vector<1x8x32xf32> to vector<8x32xf32>
    %c32_279 = arith.constant 32 : index
    %c192_280 = arith.constant 192 : index
    %208 = vector.load %arg12[%c32_279, %c192_280] : memref<64x288xf32, #tpu.memory_space<vmem>>, vector<8x32xf32>
    tpu.vector_store %arg12[%c32_279, %c192_280], %207 {strides = array<i32>} : memref<64x288xf32, #tpu.memory_space<vmem>>, vector<8x32xf32>,
    %c7_281 = arith.constant 7 : index
    %c0_282 = arith.constant 0 : index
    %c0_283 = arith.constant 0 : index
    %209 = vector.load %arg11[%c7_281, %c0_282, %c0_283] : memref<10x10x32xf32, #tpu.memory_space<vmem>>, vector<1x8x32xf32>
    %210 = vector.shape_cast %209 : vector<1x8x32xf32> to vector<8x32xf32>
    %c40_284 = arith.constant 40 : index
    %c192_285 = arith.constant 192 : index
    %211 = vector.load %arg12[%c40_284, %c192_285] : memref<64x288xf32, #tpu.memory_space<vmem>>, vector<8x32xf32>
    tpu.vector_store %arg12[%c40_284, %c192_285], %210 {strides = array<i32>} : memref<64x288xf32, #tpu.memory_space<vmem>>, vector<8x32xf32>,
    %c8_286 = arith.constant 8 : index
    %c0_287 = arith.constant 0 : index
    %c0_288 = arith.constant 0 : index
    %212 = vector.load %arg11[%c8_286, %c0_287, %c0_288] : memref<10x10x32xf32, #tpu.memory_space<vmem>>, vector<1x8x32xf32>
    %213 = vector.shape_cast %212 : vector<1x8x32xf32> to vector<8x32xf32>
    %c48_289 = arith.constant 48 : index
    %c192_290 = arith.constant 192 : index
    %214 = vector.load %arg12[%c48_289, %c192_290] : memref<64x288xf32, #tpu.memory_space<vmem>>, vector<8x32xf32>
    tpu.vector_store %arg12[%c48_289, %c192_290], %213 {strides = array<i32>} : memref<64x288xf32, #tpu.memory_space<vmem>>, vector<8x32xf32>,
    %c9 = arith.constant 9 : index
    %c0_291 = arith.constant 0 : index
    %c0_292 = arith.constant 0 : index
    %215 = vector.load %arg11[%c9, %c0_291, %c0_292] : memref<10x10x32xf32, #tpu.memory_space<vmem>>, vector<1x8x32xf32>
    %216 = vector.shape_cast %215 : vector<1x8x32xf32> to vector<8x32xf32>
    %c56_293 = arith.constant 56 : index
    %c192_294 = arith.constant 192 : index
    %217 = vector.load %arg12[%c56_293, %c192_294] : memref<64x288xf32, #tpu.memory_space<vmem>>, vector<8x32xf32>
    tpu.vector_store %arg12[%c56_293, %c192_294], %216 {strides = array<i32>} : memref<64x288xf32, #tpu.memory_space<vmem>>, vector<8x32xf32>,
    %c2_295 = arith.constant 2 : index
    %c1_296 = arith.constant 1 : index
    %c0_297 = arith.constant 0 : index
    %218 = vector.load %arg11[%c2_295, %c1_296, %c0_297] : memref<10x10x32xf32, #tpu.memory_space<vmem>>, vector<1x8x32xf32>
    %219 = vector.shape_cast %218 : vector<1x8x32xf32> to vector<8x32xf32>
    %c0_298 = arith.constant 0 : index
    %c224 = arith.constant 224 : index
    %220 = vector.load %arg12[%c0_298, %c224] : memref<64x288xf32, #tpu.memory_space<vmem>>, vector<8x32xf32>
    tpu.vector_store %arg12[%c0_298, %c224], %219 {strides = array<i32>} : memref<64x288xf32, #tpu.memory_space<vmem>>, vector<8x32xf32>,
    %c3_299 = arith.constant 3 : index
    %c1_300 = arith.constant 1 : index
    %c0_301 = arith.constant 0 : index
    %221 = vector.load %arg11[%c3_299, %c1_300, %c0_301] : memref<10x10x32xf32, #tpu.memory_space<vmem>>, vector<1x8x32xf32>
    %222 = vector.shape_cast %221 : vector<1x8x32xf32> to vector<8x32xf32>
    %c8_302 = arith.constant 8 : index
    %c224_303 = arith.constant 224 : index
    %223 = vector.load %arg12[%c8_302, %c224_303] : memref<64x288xf32, #tpu.memory_space<vmem>>, vector<8x32xf32>
    tpu.vector_store %arg12[%c8_302, %c224_303], %222 {strides = array<i32>} : memref<64x288xf32, #tpu.memory_space<vmem>>, vector<8x32xf32>,
    %c4_304 = arith.constant 4 : index
    %c1_305 = arith.constant 1 : index
    %c0_306 = arith.constant 0 : index
    %224 = vector.load %arg11[%c4_304, %c1_305, %c0_306] : memref<10x10x32xf32, #tpu.memory_space<vmem>>, vector<1x8x32xf32>
    %225 = vector.shape_cast %224 : vector<1x8x32xf32> to vector<8x32xf32>
    %c16_307 = arith.constant 16 : index
    %c224_308 = arith.constant 224 : index
    %226 = vector.load %arg12[%c16_307, %c224_308] : memref<64x288xf32, #tpu.memory_space<vmem>>, vector<8x32xf32>
    tpu.vector_store %arg12[%c16_307, %c224_308], %225 {strides = array<i32>} : memref<64x288xf32, #tpu.memory_space<vmem>>, vector<8x32xf32>,
    %c5_309 = arith.constant 5 : index
    %c1_310 = arith.constant 1 : index
    %c0_311 = arith.constant 0 : index
    %227 = vector.load %arg11[%c5_309, %c1_310, %c0_311] : memref<10x10x32xf32, #tpu.memory_space<vmem>>, vector<1x8x32xf32>
    %228 = vector.shape_cast %227 : vector<1x8x32xf32> to vector<8x32xf32>
    %c24_312 = arith.constant 24 : index
    %c224_313 = arith.constant 224 : index
    %229 = vector.load %arg12[%c24_312, %c224_313] : memref<64x288xf32, #tpu.memory_space<vmem>>, vector<8x32xf32>
    tpu.vector_store %arg12[%c24_312, %c224_313], %228 {strides = array<i32>} : memref<64x288xf32, #tpu.memory_space<vmem>>, vector<8x32xf32>,
    %c6_314 = arith.constant 6 : index
    %c1_315 = arith.constant 1 : index
    %c0_316 = arith.constant 0 : index
    %230 = vector.load %arg11[%c6_314, %c1_315, %c0_316] : memref<10x10x32xf32, #tpu.memory_space<vmem>>, vector<1x8x32xf32>
    %231 = vector.shape_cast %230 : vector<1x8x32xf32> to vector<8x32xf32>
    %c32_317 = arith.constant 32 : index
    %c224_318 = arith.constant 224 : index
    %232 = vector.load %arg12[%c32_317, %c224_318] : memref<64x288xf32, #tpu.memory_space<vmem>>, vector<8x32xf32>
    tpu.vector_store %arg12[%c32_317, %c224_318], %231 {strides = array<i32>} : memref<64x288xf32, #tpu.memory_space<vmem>>, vector<8x32xf32>,
    %c7_319 = arith.constant 7 : index
    %c1_320 = arith.constant 1 : index
    %c0_321 = arith.constant 0 : index
    %233 = vector.load %arg11[%c7_319, %c1_320, %c0_321] : memref<10x10x32xf32, #tpu.memory_space<vmem>>, vector<1x8x32xf32>
    %234 = vector.shape_cast %233 : vector<1x8x32xf32> to vector<8x32xf32>
    %c40_322 = arith.constant 40 : index
    %c224_323 = arith.constant 224 : index
    %235 = vector.load %arg12[%c40_322, %c224_323] : memref<64x288xf32, #tpu.memory_space<vmem>>, vector<8x32xf32>
    tpu.vector_store %arg12[%c40_322, %c224_323], %234 {strides = array<i32>} : memref<64x288xf32, #tpu.memory_space<vmem>>, vector<8x32xf32>,
    %c8_324 = arith.constant 8 : index
    %c1_325 = arith.constant 1 : index
    %c0_326 = arith.constant 0 : index
    %236 = vector.load %arg11[%c8_324, %c1_325, %c0_326] : memref<10x10x32xf32, #tpu.memory_space<vmem>>, vector<1x8x32xf32>
    %237 = vector.shape_cast %236 : vector<1x8x32xf32> to vector<8x32xf32>
    %c48_327 = arith.constant 48 : index
    %c224_328 = arith.constant 224 : index
    %238 = vector.load %arg12[%c48_327, %c224_328] : memref<64x288xf32, #tpu.memory_space<vmem>>, vector<8x32xf32>
    tpu.vector_store %arg12[%c48_327, %c224_328], %237 {strides = array<i32>} : memref<64x288xf32, #tpu.memory_space<vmem>>, vector<8x32xf32>,
    %c9_329 = arith.constant 9 : index
    %c1_330 = arith.constant 1 : index
    %c0_331 = arith.constant 0 : index
    %239 = vector.load %arg11[%c9_329, %c1_330, %c0_331] : memref<10x10x32xf32, #tpu.memory_space<vmem>>, vector<1x8x32xf32>
    %240 = vector.shape_cast %239 : vector<1x8x32xf32> to vector<8x32xf32>
    %c56_332 = arith.constant 56 : index
    %c224_333 = arith.constant 224 : index
    %241 = vector.load %arg12[%c56_332, %c224_333] : memref<64x288xf32, #tpu.memory_space<vmem>>, vector<8x32xf32>
    tpu.vector_store %arg12[%c56_332, %c224_333], %240 {strides = array<i32>} : memref<64x288xf32, #tpu.memory_space<vmem>>, vector<8x32xf32>,
    %c2_334 = arith.constant 2 : index
    %c2_335 = arith.constant 2 : index
    %c0_336 = arith.constant 0 : index
    %242 = vector.load %arg11[%c2_334, %c2_335, %c0_336] : memref<10x10x32xf32, #tpu.memory_space<vmem>>, vector<1x8x32xf32>
    %243 = vector.shape_cast %242 : vector<1x8x32xf32> to vector<8x32xf32>
    %c0_337 = arith.constant 0 : index
    %c256 = arith.constant 256 : index
    %244 = vector.load %arg12[%c0_337, %c256] : memref<64x288xf32, #tpu.memory_space<vmem>>, vector<8x32xf32>
    tpu.vector_store %arg12[%c0_337, %c256], %243 {strides = array<i32>} : memref<64x288xf32, #tpu.memory_space<vmem>>, vector<8x32xf32>,
    %c3_338 = arith.constant 3 : index
    %c2_339 = arith.constant 2 : index
    %c0_340 = arith.constant 0 : index
    %245 = vector.load %arg11[%c3_338, %c2_339, %c0_340] : memref<10x10x32xf32, #tpu.memory_space<vmem>>, vector<1x8x32xf32>
    %246 = vector.shape_cast %245 : vector<1x8x32xf32> to vector<8x32xf32>
    %c8_341 = arith.constant 8 : index
    %c256_342 = arith.constant 256 : index
    %247 = vector.load %arg12[%c8_341, %c256_342] : memref<64x288xf32, #tpu.memory_space<vmem>>, vector<8x32xf32>
    tpu.vector_store %arg12[%c8_341, %c256_342], %246 {strides = array<i32>} : memref<64x288xf32, #tpu.memory_space<vmem>>, vector<8x32xf32>,
    %c4_343 = arith.constant 4 : index
    %c2_344 = arith.constant 2 : index
    %c0_345 = arith.constant 0 : index
    %248 = vector.load %arg11[%c4_343, %c2_344, %c0_345] : memref<10x10x32xf32, #tpu.memory_space<vmem>>, vector<1x8x32xf32>
    %249 = vector.shape_cast %248 : vector<1x8x32xf32> to vector<8x32xf32>
    %c16_346 = arith.constant 16 : index
    %c256_347 = arith.constant 256 : index
    %250 = vector.load %arg12[%c16_346, %c256_347] : memref<64x288xf32, #tpu.memory_space<vmem>>, vector<8x32xf32>
    tpu.vector_store %arg12[%c16_346, %c256_347], %249 {strides = array<i32>} : memref<64x288xf32, #tpu.memory_space<vmem>>, vector<8x32xf32>,
    %c5_348 = arith.constant 5 : index
    %c2_349 = arith.constant 2 : index
    %c0_350 = arith.constant 0 : index
    %251 = vector.load %arg11[%c5_348, %c2_349, %c0_350] : memref<10x10x32xf32, #tpu.memory_space<vmem>>, vector<1x8x32xf32>
    %252 = vector.shape_cast %251 : vector<1x8x32xf32> to vector<8x32xf32>
    %c24_351 = arith.constant 24 : index
    %c256_352 = arith.constant 256 : index
    %253 = vector.load %arg12[%c24_351, %c256_352] : memref<64x288xf32, #tpu.memory_space<vmem>>, vector<8x32xf32>
    tpu.vector_store %arg12[%c24_351, %c256_352], %252 {strides = array<i32>} : memref<64x288xf32, #tpu.memory_space<vmem>>, vector<8x32xf32>,
    %c6_353 = arith.constant 6 : index
    %c2_354 = arith.constant 2 : index
    %c0_355 = arith.constant 0 : index
    %254 = vector.load %arg11[%c6_353, %c2_354, %c0_355] : memref<10x10x32xf32, #tpu.memory_space<vmem>>, vector<1x8x32xf32>
    %255 = vector.shape_cast %254 : vector<1x8x32xf32> to vector<8x32xf32>
    %c32_356 = arith.constant 32 : index
    %c256_357 = arith.constant 256 : index
    %256 = vector.load %arg12[%c32_356, %c256_357] : memref<64x288xf32, #tpu.memory_space<vmem>>, vector<8x32xf32>
    tpu.vector_store %arg12[%c32_356, %c256_357], %255 {strides = array<i32>} : memref<64x288xf32, #tpu.memory_space<vmem>>, vector<8x32xf32>,
    %c7_358 = arith.constant 7 : index
    %c2_359 = arith.constant 2 : index
    %c0_360 = arith.constant 0 : index
    %257 = vector.load %arg11[%c7_358, %c2_359, %c0_360] : memref<10x10x32xf32, #tpu.memory_space<vmem>>, vector<1x8x32xf32>
    %258 = vector.shape_cast %257 : vector<1x8x32xf32> to vector<8x32xf32>
    %c40_361 = arith.constant 40 : index
    %c256_362 = arith.constant 256 : index
    %259 = vector.load %arg12[%c40_361, %c256_362] : memref<64x288xf32, #tpu.memory_space<vmem>>, vector<8x32xf32>
    tpu.vector_store %arg12[%c40_361, %c256_362], %258 {strides = array<i32>} : memref<64x288xf32, #tpu.memory_space<vmem>>, vector<8x32xf32>,
    %c8_363 = arith.constant 8 : index
    %c2_364 = arith.constant 2 : index
    %c0_365 = arith.constant 0 : index
    %260 = vector.load %arg11[%c8_363, %c2_364, %c0_365] : memref<10x10x32xf32, #tpu.memory_space<vmem>>, vector<1x8x32xf32>
    %261 = vector.shape_cast %260 : vector<1x8x32xf32> to vector<8x32xf32>
    %c48_366 = arith.constant 48 : index
    %c256_367 = arith.constant 256 : index
    %262 = vector.load %arg12[%c48_366, %c256_367] : memref<64x288xf32, #tpu.memory_space<vmem>>, vector<8x32xf32>
    tpu.vector_store %arg12[%c48_366, %c256_367], %261 {strides = array<i32>} : memref<64x288xf32, #tpu.memory_space<vmem>>, vector<8x32xf32>,
    %c9_368 = arith.constant 9 : index
    %c2_369 = arith.constant 2 : index
    %c0_370 = arith.constant 0 : index
    %263 = vector.load %arg11[%c9_368, %c2_369, %c0_370] : memref<10x10x32xf32, #tpu.memory_space<vmem>>, vector<1x8x32xf32>
    %264 = vector.shape_cast %263 : vector<1x8x32xf32> to vector<8x32xf32>
    %c56_371 = arith.constant 56 : index
    %c256_372 = arith.constant 256 : index
    %265 = vector.load %arg12[%c56_371, %c256_372] : memref<64x288xf32, #tpu.memory_space<vmem>>, vector<8x32xf32>
    tpu.vector_store %arg12[%c56_371, %c256_372], %264 {strides = array<i32>} : memref<64x288xf32, #tpu.memory_space<vmem>>, vector<8x32xf32>,
    %c0_373 = arith.constant 0 : index
    %c0_374 = arith.constant 0 : index
    %266 = vector.load %arg12[%c0_373, %c0_374] : memref<64x288xf32, #tpu.memory_space<vmem>>, vector<64x288xf32>
    %c0_375 = arith.constant 0 : index
    %c0_376 = arith.constant 0 : index
    %267 = vector.load %arg4[%c0_375, %c0_376] : memref<288x64xf32, #tpu.memory_space<vmem>>, vector<288x64xf32>
    %cst_377 = arith.constant dense<0.000000e+00> : vector<64x64xf32>
    %268 = tpu.matmul %266, %267, %cst_377 {dimension_numbers = #tpu.dot_dimension_numbers<[1], [0], [0], [1], [0, 0, 1, 1], [], []>} : vector<64x288xf32>, vector<288x64xf32>, vector<64x64xf32> -> vector<64x64xf32>
    %c0_378 = arith.constant 0 : index
    %c0_379 = arith.constant 0 : index
    %269 = vector.load %arg5[%c0_378, %c0_379] : memref<1x64xf32, #tpu.memory_space<vmem>>, vector<1x64xf32>
    %270 = vector.broadcast %269 : vector<1x64xf32> to vector<64x64xf32>
    %271 = arith.addf %268, %270 : vector<64x64xf32>
    %cst_380 = arith.constant 0.000000e+00 : f32
    %272 = vector.broadcast %cst_380 : f32 to vector<64x64xf32>
    %273 = arith.maximumf %271, %272 : vector<64x64xf32>
    %cst_381 = arith.constant 0.000000e+00 : f32
    %274 = vector.broadcast %cst_381 : f32 to vector<6x6x64xf32>
    %c0_382 = arith.constant 0 : index
    %c0_383 = arith.constant 0 : index
    %c0_384 = arith.constant 0 : index
    %275 = vector.load %arg13[%c0_382, %c0_383, %c0_384] : memref<6x6x64xf32, #tpu.memory_space<vmem>>, vector<6x6x64xf32>
    tpu.vector_store %arg13[%c0_382, %c0_383, %c0_384], %274 {strides = array<i32>} : memref<6x6x64xf32, #tpu.memory_space<vmem>>, vector<6x6x64xf32>,
    %276 = vector.extract_strided_slice %273 {offsets = [0, 0], sizes = [8, 64], strides = [1, 1]} : vector<64x64xf32> to vector<8x64xf32>
    %277 = vector.extract_strided_slice %273 {offsets = [8, 0], sizes = [8, 64], strides = [1, 1]} : vector<64x64xf32> to vector<8x64xf32>
    %278 = arith.maximumf %276, %277 : vector<8x64xf32>
    %279 = vector.extract_strided_slice %278 {offsets = [0, 0], sizes = [1, 64], strides = [1, 1]} : vector<8x64xf32> to vector<1x64xf32>
    %280 = vector.shape_cast %279 : vector<1x64xf32> to vector<64xf32>
    %281 = vector.extract_strided_slice %278 {offsets = [1, 0], sizes = [1, 64], strides = [1, 1]} : vector<8x64xf32> to vector<1x64xf32>
    %282 = vector.shape_cast %281 : vector<1x64xf32> to vector<64xf32>
    %283 = arith.maximumf %280, %282 : vector<64xf32>
    %c1_385 = arith.constant 1 : index
    %c1_386 = arith.constant 1 : index
    %c0_387 = arith.constant 0 : index
    %284 = vector.load %arg13[%c1_385, %c1_386, %c0_387] : memref<6x6x64xf32, #tpu.memory_space<vmem>>, vector<1x1x64xf32>
    %285 = vector.shape_cast %284 : vector<1x1x64xf32> to vector<64xf32>
    %286 = vector.shape_cast %283 : vector<64xf32> to vector<1x1x64xf32>
    tpu.vector_store %arg13[%c1_385, %c1_386, %c0_387], %286 {strides = array<i32>} : memref<6x6x64xf32, #tpu.memory_space<vmem>>, vector<1x1x64xf32>,
    %287 = vector.extract_strided_slice %278 {offsets = [2, 0], sizes = [1, 64], strides = [1, 1]} : vector<8x64xf32> to vector<1x64xf32>
    %288 = vector.shape_cast %287 : vector<1x64xf32> to vector<64xf32>
    %289 = vector.extract_strided_slice %278 {offsets = [3, 0], sizes = [1, 64], strides = [1, 1]} : vector<8x64xf32> to vector<1x64xf32>
    %290 = vector.shape_cast %289 : vector<1x64xf32> to vector<64xf32>
    %291 = arith.maximumf %288, %290 : vector<64xf32>
    %c1_388 = arith.constant 1 : index
    %c2_389 = arith.constant 2 : index
    %c0_390 = arith.constant 0 : index
    %292 = vector.load %arg13[%c1_388, %c2_389, %c0_390] : memref<6x6x64xf32, #tpu.memory_space<vmem>>, vector<1x1x64xf32>
    %293 = vector.shape_cast %292 : vector<1x1x64xf32> to vector<64xf32>
    %294 = vector.shape_cast %291 : vector<64xf32> to vector<1x1x64xf32>
    tpu.vector_store %arg13[%c1_388, %c2_389, %c0_390], %294 {strides = array<i32>} : memref<6x6x64xf32, #tpu.memory_space<vmem>>, vector<1x1x64xf32>,
    %295 = vector.extract_strided_slice %278 {offsets = [4, 0], sizes = [1, 64], strides = [1, 1]} : vector<8x64xf32> to vector<1x64xf32>
    %296 = vector.shape_cast %295 : vector<1x64xf32> to vector<64xf32>
    %297 = vector.extract_strided_slice %278 {offsets = [5, 0], sizes = [1, 64], strides = [1, 1]} : vector<8x64xf32> to vector<1x64xf32>
    %298 = vector.shape_cast %297 : vector<1x64xf32> to vector<64xf32>
    %299 = arith.maximumf %296, %298 : vector<64xf32>
    %c1_391 = arith.constant 1 : index
    %c3_392 = arith.constant 3 : index
    %c0_393 = arith.constant 0 : index
    %300 = vector.load %arg13[%c1_391, %c3_392, %c0_393] : memref<6x6x64xf32, #tpu.memory_space<vmem>>, vector<1x1x64xf32>
    %301 = vector.shape_cast %300 : vector<1x1x64xf32> to vector<64xf32>
    %302 = vector.shape_cast %299 : vector<64xf32> to vector<1x1x64xf32>
    tpu.vector_store %arg13[%c1_391, %c3_392, %c0_393], %302 {strides = array<i32>} : memref<6x6x64xf32, #tpu.memory_space<vmem>>, vector<1x1x64xf32>,
    %303 = vector.extract_strided_slice %278 {offsets = [6, 0], sizes = [1, 64], strides = [1, 1]} : vector<8x64xf32> to vector<1x64xf32>
    %304 = vector.shape_cast %303 : vector<1x64xf32> to vector<64xf32>
    %305 = vector.extract_strided_slice %278 {offsets = [7, 0], sizes = [1, 64], strides = [1, 1]} : vector<8x64xf32> to vector<1x64xf32>
    %306 = vector.shape_cast %305 : vector<1x64xf32> to vector<64xf32>
    %307 = arith.maximumf %304, %306 : vector<64xf32>
    %c1_394 = arith.constant 1 : index
    %c4_395 = arith.constant 4 : index
    %c0_396 = arith.constant 0 : index
    %308 = vector.load %arg13[%c1_394, %c4_395, %c0_396] : memref<6x6x64xf32, #tpu.memory_space<vmem>>, vector<1x1x64xf32>
    %309 = vector.shape_cast %308 : vector<1x1x64xf32> to vector<64xf32>
    %310 = vector.shape_cast %307 : vector<64xf32> to vector<1x1x64xf32>
    tpu.vector_store %arg13[%c1_394, %c4_395, %c0_396], %310 {strides = array<i32>} : memref<6x6x64xf32, #tpu.memory_space<vmem>>, vector<1x1x64xf32>,
    %311 = vector.extract_strided_slice %273 {offsets = [16, 0], sizes = [8, 64], strides = [1, 1]} : vector<64x64xf32> to vector<8x64xf32>
    %312 = vector.extract_strided_slice %273 {offsets = [24, 0], sizes = [8, 64], strides = [1, 1]} : vector<64x64xf32> to vector<8x64xf32>
    %313 = arith.maximumf %311, %312 : vector<8x64xf32>
    %314 = vector.extract_strided_slice %313 {offsets = [0, 0], sizes = [1, 64], strides = [1, 1]} : vector<8x64xf32> to vector<1x64xf32>
    %315 = vector.shape_cast %314 : vector<1x64xf32> to vector<64xf32>
    %316 = vector.extract_strided_slice %313 {offsets = [1, 0], sizes = [1, 64], strides = [1, 1]} : vector<8x64xf32> to vector<1x64xf32>
    %317 = vector.shape_cast %316 : vector<1x64xf32> to vector<64xf32>
    %318 = arith.maximumf %315, %317 : vector<64xf32>
    %c2_397 = arith.constant 2 : index
    %c1_398 = arith.constant 1 : index
    %c0_399 = arith.constant 0 : index
    %319 = vector.load %arg13[%c2_397, %c1_398, %c0_399] : memref<6x6x64xf32, #tpu.memory_space<vmem>>, vector<1x1x64xf32>
    %320 = vector.shape_cast %319 : vector<1x1x64xf32> to vector<64xf32>
    %321 = vector.shape_cast %318 : vector<64xf32> to vector<1x1x64xf32>
    tpu.vector_store %arg13[%c2_397, %c1_398, %c0_399], %321 {strides = array<i32>} : memref<6x6x64xf32, #tpu.memory_space<vmem>>, vector<1x1x64xf32>,
    %322 = vector.extract_strided_slice %313 {offsets = [2, 0], sizes = [1, 64], strides = [1, 1]} : vector<8x64xf32> to vector<1x64xf32>
    %323 = vector.shape_cast %322 : vector<1x64xf32> to vector<64xf32>
    %324 = vector.extract_strided_slice %313 {offsets = [3, 0], sizes = [1, 64], strides = [1, 1]} : vector<8x64xf32> to vector<1x64xf32>
    %325 = vector.shape_cast %324 : vector<1x64xf32> to vector<64xf32>
    %326 = arith.maximumf %323, %325 : vector<64xf32>
    %c2_400 = arith.constant 2 : index
    %c2_401 = arith.constant 2 : index
    %c0_402 = arith.constant 0 : index
    %327 = vector.load %arg13[%c2_400, %c2_401, %c0_402] : memref<6x6x64xf32, #tpu.memory_space<vmem>>, vector<1x1x64xf32>
    %328 = vector.shape_cast %327 : vector<1x1x64xf32> to vector<64xf32>
    %329 = vector.shape_cast %326 : vector<64xf32> to vector<1x1x64xf32>
    tpu.vector_store %arg13[%c2_400, %c2_401, %c0_402], %329 {strides = array<i32>} : memref<6x6x64xf32, #tpu.memory_space<vmem>>, vector<1x1x64xf32>,
    %330 = vector.extract_strided_slice %313 {offsets = [4, 0], sizes = [1, 64], strides = [1, 1]} : vector<8x64xf32> to vector<1x64xf32>
    %331 = vector.shape_cast %330 : vector<1x64xf32> to vector<64xf32>
    %332 = vector.extract_strided_slice %313 {offsets = [5, 0], sizes = [1, 64], strides = [1, 1]} : vector<8x64xf32> to vector<1x64xf32>
    %333 = vector.shape_cast %332 : vector<1x64xf32> to vector<64xf32>
    %334 = arith.maximumf %331, %333 : vector<64xf32>
    %c2_403 = arith.constant 2 : index
    %c3_404 = arith.constant 3 : index
    %c0_405 = arith.constant 0 : index
    %335 = vector.load %arg13[%c2_403, %c3_404, %c0_405] : memref<6x6x64xf32, #tpu.memory_space<vmem>>, vector<1x1x64xf32>
    %336 = vector.shape_cast %335 : vector<1x1x64xf32> to vector<64xf32>
    %337 = vector.shape_cast %334 : vector<64xf32> to vector<1x1x64xf32>
    tpu.vector_store %arg13[%c2_403, %c3_404, %c0_405], %337 {strides = array<i32>} : memref<6x6x64xf32, #tpu.memory_space<vmem>>, vector<1x1x64xf32>,
    %338 = vector.extract_strided_slice %313 {offsets = [6, 0], sizes = [1, 64], strides = [1, 1]} : vector<8x64xf32> to vector<1x64xf32>
    %339 = vector.shape_cast %338 : vector<1x64xf32> to vector<64xf32>
    %340 = vector.extract_strided_slice %313 {offsets = [7, 0], sizes = [1, 64], strides = [1, 1]} : vector<8x64xf32> to vector<1x64xf32>
    %341 = vector.shape_cast %340 : vector<1x64xf32> to vector<64xf32>
    %342 = arith.maximumf %339, %341 : vector<64xf32>
    %c2_406 = arith.constant 2 : index
    %c4_407 = arith.constant 4 : index
    %c0_408 = arith.constant 0 : index
    %343 = vector.load %arg13[%c2_406, %c4_407, %c0_408] : memref<6x6x64xf32, #tpu.memory_space<vmem>>, vector<1x1x64xf32>
    %344 = vector.shape_cast %343 : vector<1x1x64xf32> to vector<64xf32>
    %345 = vector.shape_cast %342 : vector<64xf32> to vector<1x1x64xf32>
    tpu.vector_store %arg13[%c2_406, %c4_407, %c0_408], %345 {strides = array<i32>} : memref<6x6x64xf32, #tpu.memory_space<vmem>>, vector<1x1x64xf32>,
    %346 = vector.extract_strided_slice %273 {offsets = [32, 0], sizes = [8, 64], strides = [1, 1]} : vector<64x64xf32> to vector<8x64xf32>
    %347 = vector.extract_strided_slice %273 {offsets = [40, 0], sizes = [8, 64], strides = [1, 1]} : vector<64x64xf32> to vector<8x64xf32>
    %348 = arith.maximumf %346, %347 : vector<8x64xf32>
    %349 = vector.extract_strided_slice %348 {offsets = [0, 0], sizes = [1, 64], strides = [1, 1]} : vector<8x64xf32> to vector<1x64xf32>
    %350 = vector.shape_cast %349 : vector<1x64xf32> to vector<64xf32>
    %351 = vector.extract_strided_slice %348 {offsets = [1, 0], sizes = [1, 64], strides = [1, 1]} : vector<8x64xf32> to vector<1x64xf32>
    %352 = vector.shape_cast %351 : vector<1x64xf32> to vector<64xf32>
    %353 = arith.maximumf %350, %352 : vector<64xf32>
    %c3_409 = arith.constant 3 : index
    %c1_410 = arith.constant 1 : index
    %c0_411 = arith.constant 0 : index
    %354 = vector.load %arg13[%c3_409, %c1_410, %c0_411] : memref<6x6x64xf32, #tpu.memory_space<vmem>>, vector<1x1x64xf32>
    %355 = vector.shape_cast %354 : vector<1x1x64xf32> to vector<64xf32>
    %356 = vector.shape_cast %353 : vector<64xf32> to vector<1x1x64xf32>
    tpu.vector_store %arg13[%c3_409, %c1_410, %c0_411], %356 {strides = array<i32>} : memref<6x6x64xf32, #tpu.memory_space<vmem>>, vector<1x1x64xf32>,
    %357 = vector.extract_strided_slice %348 {offsets = [2, 0], sizes = [1, 64], strides = [1, 1]} : vector<8x64xf32> to vector<1x64xf32>
    %358 = vector.shape_cast %357 : vector<1x64xf32> to vector<64xf32>
    %359 = vector.extract_strided_slice %348 {offsets = [3, 0], sizes = [1, 64], strides = [1, 1]} : vector<8x64xf32> to vector<1x64xf32>
    %360 = vector.shape_cast %359 : vector<1x64xf32> to vector<64xf32>
    %361 = arith.maximumf %358, %360 : vector<64xf32>
    %c3_412 = arith.constant 3 : index
    %c2_413 = arith.constant 2 : index
    %c0_414 = arith.constant 0 : index
    %362 = vector.load %arg13[%c3_412, %c2_413, %c0_414] : memref<6x6x64xf32, #tpu.memory_space<vmem>>, vector<1x1x64xf32>
    %363 = vector.shape_cast %362 : vector<1x1x64xf32> to vector<64xf32>
    %364 = vector.shape_cast %361 : vector<64xf32> to vector<1x1x64xf32>
    tpu.vector_store %arg13[%c3_412, %c2_413, %c0_414], %364 {strides = array<i32>} : memref<6x6x64xf32, #tpu.memory_space<vmem>>, vector<1x1x64xf32>,
    %365 = vector.extract_strided_slice %348 {offsets = [4, 0], sizes = [1, 64], strides = [1, 1]} : vector<8x64xf32> to vector<1x64xf32>
    %366 = vector.shape_cast %365 : vector<1x64xf32> to vector<64xf32>
    %367 = vector.extract_strided_slice %348 {offsets = [5, 0], sizes = [1, 64], strides = [1, 1]} : vector<8x64xf32> to vector<1x64xf32>
    %368 = vector.shape_cast %367 : vector<1x64xf32> to vector<64xf32>
    %369 = arith.maximumf %366, %368 : vector<64xf32>
    %c3_415 = arith.constant 3 : index
    %c3_416 = arith.constant 3 : index
    %c0_417 = arith.constant 0 : index
    %370 = vector.load %arg13[%c3_415, %c3_416, %c0_417] : memref<6x6x64xf32, #tpu.memory_space<vmem>>, vector<1x1x64xf32>
    %371 = vector.shape_cast %370 : vector<1x1x64xf32> to vector<64xf32>
    %372 = vector.shape_cast %369 : vector<64xf32> to vector<1x1x64xf32>
    tpu.vector_store %arg13[%c3_415, %c3_416, %c0_417], %372 {strides = array<i32>} : memref<6x6x64xf32, #tpu.memory_space<vmem>>, vector<1x1x64xf32>,
    %373 = vector.extract_strided_slice %348 {offsets = [6, 0], sizes = [1, 64], strides = [1, 1]} : vector<8x64xf32> to vector<1x64xf32>
    %374 = vector.shape_cast %373 : vector<1x64xf32> to vector<64xf32>
    %375 = vector.extract_strided_slice %348 {offsets = [7, 0], sizes = [1, 64], strides = [1, 1]} : vector<8x64xf32> to vector<1x64xf32>
    %376 = vector.shape_cast %375 : vector<1x64xf32> to vector<64xf32>
    %377 = arith.maximumf %374, %376 : vector<64xf32>
    %c3_418 = arith.constant 3 : index
    %c4_419 = arith.constant 4 : index
    %c0_420 = arith.constant 0 : index
    %378 = vector.load %arg13[%c3_418, %c4_419, %c0_420] : memref<6x6x64xf32, #tpu.memory_space<vmem>>, vector<1x1x64xf32>
    %379 = vector.shape_cast %378 : vector<1x1x64xf32> to vector<64xf32>
    %380 = vector.shape_cast %377 : vector<64xf32> to vector<1x1x64xf32>
    tpu.vector_store %arg13[%c3_418, %c4_419, %c0_420], %380 {strides = array<i32>} : memref<6x6x64xf32, #tpu.memory_space<vmem>>, vector<1x1x64xf32>,
    %381 = vector.extract_strided_slice %273 {offsets = [48, 0], sizes = [8, 64], strides = [1, 1]} : vector<64x64xf32> to vector<8x64xf32>
    %382 = vector.extract_strided_slice %273 {offsets = [56, 0], sizes = [8, 64], strides = [1, 1]} : vector<64x64xf32> to vector<8x64xf32>
    %383 = arith.maximumf %381, %382 : vector<8x64xf32>
    %384 = vector.extract_strided_slice %383 {offsets = [0, 0], sizes = [1, 64], strides = [1, 1]} : vector<8x64xf32> to vector<1x64xf32>
    %385 = vector.shape_cast %384 : vector<1x64xf32> to vector<64xf32>
    %386 = vector.extract_strided_slice %383 {offsets = [1, 0], sizes = [1, 64], strides = [1, 1]} : vector<8x64xf32> to vector<1x64xf32>
    %387 = vector.shape_cast %386 : vector<1x64xf32> to vector<64xf32>
    %388 = arith.maximumf %385, %387 : vector<64xf32>
    %c4_421 = arith.constant 4 : index
    %c1_422 = arith.constant 1 : index
    %c0_423 = arith.constant 0 : index
    %389 = vector.load %arg13[%c4_421, %c1_422, %c0_423] : memref<6x6x64xf32, #tpu.memory_space<vmem>>, vector<1x1x64xf32>
    %390 = vector.shape_cast %389 : vector<1x1x64xf32> to vector<64xf32>
    %391 = vector.shape_cast %388 : vector<64xf32> to vector<1x1x64xf32>
    tpu.vector_store %arg13[%c4_421, %c1_422, %c0_423], %391 {strides = array<i32>} : memref<6x6x64xf32, #tpu.memory_space<vmem>>, vector<1x1x64xf32>,
    %392 = vector.extract_strided_slice %383 {offsets = [2, 0], sizes = [1, 64], strides = [1, 1]} : vector<8x64xf32> to vector<1x64xf32>
    %393 = vector.shape_cast %392 : vector<1x64xf32> to vector<64xf32>
    %394 = vector.extract_strided_slice %383 {offsets = [3, 0], sizes = [1, 64], strides = [1, 1]} : vector<8x64xf32> to vector<1x64xf32>
    %395 = vector.shape_cast %394 : vector<1x64xf32> to vector<64xf32>
    %396 = arith.maximumf %393, %395 : vector<64xf32>
    %c4_424 = arith.constant 4 : index
    %c2_425 = arith.constant 2 : index
    %c0_426 = arith.constant 0 : index
    %397 = vector.load %arg13[%c4_424, %c2_425, %c0_426] : memref<6x6x64xf32, #tpu.memory_space<vmem>>, vector<1x1x64xf32>
    %398 = vector.shape_cast %397 : vector<1x1x64xf32> to vector<64xf32>
    %399 = vector.shape_cast %396 : vector<64xf32> to vector<1x1x64xf32>
    tpu.vector_store %arg13[%c4_424, %c2_425, %c0_426], %399 {strides = array<i32>} : memref<6x6x64xf32, #tpu.memory_space<vmem>>, vector<1x1x64xf32>,
    %400 = vector.extract_strided_slice %383 {offsets = [4, 0], sizes = [1, 64], strides = [1, 1]} : vector<8x64xf32> to vector<1x64xf32>
    %401 = vector.shape_cast %400 : vector<1x64xf32> to vector<64xf32>
    %402 = vector.extract_strided_slice %383 {offsets = [5, 0], sizes = [1, 64], strides = [1, 1]} : vector<8x64xf32> to vector<1x64xf32>
    %403 = vector.shape_cast %402 : vector<1x64xf32> to vector<64xf32>
    %404 = arith.maximumf %401, %403 : vector<64xf32>
    %c4_427 = arith.constant 4 : index
    %c3_428 = arith.constant 3 : index
    %c0_429 = arith.constant 0 : index
    %405 = vector.load %arg13[%c4_427, %c3_428, %c0_429] : memref<6x6x64xf32, #tpu.memory_space<vmem>>, vector<1x1x64xf32>
    %406 = vector.shape_cast %405 : vector<1x1x64xf32> to vector<64xf32>
    %407 = vector.shape_cast %404 : vector<64xf32> to vector<1x1x64xf32>
    tpu.vector_store %arg13[%c4_427, %c3_428, %c0_429], %407 {strides = array<i32>} : memref<6x6x64xf32, #tpu.memory_space<vmem>>, vector<1x1x64xf32>,
    %408 = vector.extract_strided_slice %383 {offsets = [6, 0], sizes = [1, 64], strides = [1, 1]} : vector<8x64xf32> to vector<1x64xf32>
    %409 = vector.shape_cast %408 : vector<1x64xf32> to vector<64xf32>
    %410 = vector.extract_strided_slice %383 {offsets = [7, 0], sizes = [1, 64], strides = [1, 1]} : vector<8x64xf32> to vector<1x64xf32>
    %411 = vector.shape_cast %410 : vector<1x64xf32> to vector<64xf32>
    %412 = arith.maximumf %409, %411 : vector<64xf32>
    %c4_430 = arith.constant 4 : index
    %c4_431 = arith.constant 4 : index
    %c0_432 = arith.constant 0 : index
    %413 = vector.load %arg13[%c4_430, %c4_431, %c0_432] : memref<6x6x64xf32, #tpu.memory_space<vmem>>, vector<1x1x64xf32>
    %414 = vector.shape_cast %413 : vector<1x1x64xf32> to vector<64xf32>
    %415 = vector.shape_cast %412 : vector<64xf32> to vector<1x1x64xf32>
    tpu.vector_store %arg13[%c4_430, %c4_431, %c0_432], %415 {strides = array<i32>} : memref<6x6x64xf32, #tpu.memory_space<vmem>>, vector<1x1x64xf32>,
    %c0_433 = arith.constant 0 : index
    %c0_434 = arith.constant 0 : index
    %c0_435 = arith.constant 0 : index
    %416 = vector.load %arg13[%c0_433, %c0_434, %c0_435] : memref<6x6x64xf32, #tpu.memory_space<vmem>>, vector<1x4x64xf32>
    %417 = vector.shape_cast %416 : vector<1x4x64xf32> to vector<4x64xf32>
    %c0_436 = arith.constant 0 : index
    %c0_437 = arith.constant 0 : index
    %418 = vector.load %arg14[%c0_436, %c0_437] : memref<16x576xf32, #tpu.memory_space<vmem>>, vector<4x64xf32>
    tpu.vector_store %arg14[%c0_436, %c0_437], %417 {strides = array<i32>} : memref<16x576xf32, #tpu.memory_space<vmem>>, vector<4x64xf32>,
    %c1_438 = arith.constant 1 : index
    %c0_439 = arith.constant 0 : index
    %c0_440 = arith.constant 0 : index
    %419 = vector.load %arg13[%c1_438, %c0_439, %c0_440] : memref<6x6x64xf32, #tpu.memory_space<vmem>>, vector<1x4x64xf32>
    %420 = vector.shape_cast %419 : vector<1x4x64xf32> to vector<4x64xf32>
    %c4_441 = arith.constant 4 : index
    %c0_442 = arith.constant 0 : index
    %421 = vector.load %arg14[%c4_441, %c0_442] : memref<16x576xf32, #tpu.memory_space<vmem>>, vector<4x64xf32>
    tpu.vector_store %arg14[%c4_441, %c0_442], %420 {strides = array<i32>} : memref<16x576xf32, #tpu.memory_space<vmem>>, vector<4x64xf32>,
    %c2_443 = arith.constant 2 : index
    %c0_444 = arith.constant 0 : index
    %c0_445 = arith.constant 0 : index
    %422 = vector.load %arg13[%c2_443, %c0_444, %c0_445] : memref<6x6x64xf32, #tpu.memory_space<vmem>>, vector<1x4x64xf32>
    %423 = vector.shape_cast %422 : vector<1x4x64xf32> to vector<4x64xf32>
    %c8_446 = arith.constant 8 : index
    %c0_447 = arith.constant 0 : index
    %424 = vector.load %arg14[%c8_446, %c0_447] : memref<16x576xf32, #tpu.memory_space<vmem>>, vector<4x64xf32>
    tpu.vector_store %arg14[%c8_446, %c0_447], %423 {strides = array<i32>} : memref<16x576xf32, #tpu.memory_space<vmem>>, vector<4x64xf32>,
    %c3_448 = arith.constant 3 : index
    %c0_449 = arith.constant 0 : index
    %c0_450 = arith.constant 0 : index
    %425 = vector.load %arg13[%c3_448, %c0_449, %c0_450] : memref<6x6x64xf32, #tpu.memory_space<vmem>>, vector<1x4x64xf32>
    %426 = vector.shape_cast %425 : vector<1x4x64xf32> to vector<4x64xf32>
    %c12 = arith.constant 12 : index
    %c0_451 = arith.constant 0 : index
    %427 = vector.load %arg14[%c12, %c0_451] : memref<16x576xf32, #tpu.memory_space<vmem>>, vector<4x64xf32>
    tpu.vector_store %arg14[%c12, %c0_451], %426 {strides = array<i32>} : memref<16x576xf32, #tpu.memory_space<vmem>>, vector<4x64xf32>,
    %c0_452 = arith.constant 0 : index
    %c1_453 = arith.constant 1 : index
    %c0_454 = arith.constant 0 : index
    %428 = vector.load %arg13[%c0_452, %c1_453, %c0_454] : memref<6x6x64xf32, #tpu.memory_space<vmem>>, vector<1x4x64xf32>
    %429 = vector.shape_cast %428 : vector<1x4x64xf32> to vector<4x64xf32>
    %c0_455 = arith.constant 0 : index
    %c64_456 = arith.constant 64 : index
    %430 = vector.load %arg14[%c0_455, %c64_456] : memref<16x576xf32, #tpu.memory_space<vmem>>, vector<4x64xf32>
    tpu.vector_store %arg14[%c0_455, %c64_456], %429 {strides = array<i32>} : memref<16x576xf32, #tpu.memory_space<vmem>>, vector<4x64xf32>,
    %c1_457 = arith.constant 1 : index
    %c1_458 = arith.constant 1 : index
    %c0_459 = arith.constant 0 : index
    %431 = vector.load %arg13[%c1_457, %c1_458, %c0_459] : memref<6x6x64xf32, #tpu.memory_space<vmem>>, vector<1x4x64xf32>
    %432 = vector.shape_cast %431 : vector<1x4x64xf32> to vector<4x64xf32>
    %c4_460 = arith.constant 4 : index
    %c64_461 = arith.constant 64 : index
    %433 = vector.load %arg14[%c4_460, %c64_461] : memref<16x576xf32, #tpu.memory_space<vmem>>, vector<4x64xf32>
    tpu.vector_store %arg14[%c4_460, %c64_461], %432 {strides = array<i32>} : memref<16x576xf32, #tpu.memory_space<vmem>>, vector<4x64xf32>,
    %c2_462 = arith.constant 2 : index
    %c1_463 = arith.constant 1 : index
    %c0_464 = arith.constant 0 : index
    %434 = vector.load %arg13[%c2_462, %c1_463, %c0_464] : memref<6x6x64xf32, #tpu.memory_space<vmem>>, vector<1x4x64xf32>
    %435 = vector.shape_cast %434 : vector<1x4x64xf32> to vector<4x64xf32>
    %c8_465 = arith.constant 8 : index
    %c64_466 = arith.constant 64 : index
    %436 = vector.load %arg14[%c8_465, %c64_466] : memref<16x576xf32, #tpu.memory_space<vmem>>, vector<4x64xf32>
    tpu.vector_store %arg14[%c8_465, %c64_466], %435 {strides = array<i32>} : memref<16x576xf32, #tpu.memory_space<vmem>>, vector<4x64xf32>,
    %c3_467 = arith.constant 3 : index
    %c1_468 = arith.constant 1 : index
    %c0_469 = arith.constant 0 : index
    %437 = vector.load %arg13[%c3_467, %c1_468, %c0_469] : memref<6x6x64xf32, #tpu.memory_space<vmem>>, vector<1x4x64xf32>
    %438 = vector.shape_cast %437 : vector<1x4x64xf32> to vector<4x64xf32>
    %c12_470 = arith.constant 12 : index
    %c64_471 = arith.constant 64 : index
    %439 = vector.load %arg14[%c12_470, %c64_471] : memref<16x576xf32, #tpu.memory_space<vmem>>, vector<4x64xf32>
    tpu.vector_store %arg14[%c12_470, %c64_471], %438 {strides = array<i32>} : memref<16x576xf32, #tpu.memory_space<vmem>>, vector<4x64xf32>,
    %c0_472 = arith.constant 0 : index
    %c2_473 = arith.constant 2 : index
    %c0_474 = arith.constant 0 : index
    %440 = vector.load %arg13[%c0_472, %c2_473, %c0_474] : memref<6x6x64xf32, #tpu.memory_space<vmem>>, vector<1x4x64xf32>
    %441 = vector.shape_cast %440 : vector<1x4x64xf32> to vector<4x64xf32>
    %c0_475 = arith.constant 0 : index
    %c128_476 = arith.constant 128 : index
    %442 = vector.load %arg14[%c0_475, %c128_476] : memref<16x576xf32, #tpu.memory_space<vmem>>, vector<4x64xf32>
    tpu.vector_store %arg14[%c0_475, %c128_476], %441 {strides = array<i32>} : memref<16x576xf32, #tpu.memory_space<vmem>>, vector<4x64xf32>,
    %c1_477 = arith.constant 1 : index
    %c2_478 = arith.constant 2 : index
    %c0_479 = arith.constant 0 : index
    %443 = vector.load %arg13[%c1_477, %c2_478, %c0_479] : memref<6x6x64xf32, #tpu.memory_space<vmem>>, vector<1x4x64xf32>
    %444 = vector.shape_cast %443 : vector<1x4x64xf32> to vector<4x64xf32>
    %c4_480 = arith.constant 4 : index
    %c128_481 = arith.constant 128 : index
    %445 = vector.load %arg14[%c4_480, %c128_481] : memref<16x576xf32, #tpu.memory_space<vmem>>, vector<4x64xf32>
    tpu.vector_store %arg14[%c4_480, %c128_481], %444 {strides = array<i32>} : memref<16x576xf32, #tpu.memory_space<vmem>>, vector<4x64xf32>,
    %c2_482 = arith.constant 2 : index
    %c2_483 = arith.constant 2 : index
    %c0_484 = arith.constant 0 : index
    %446 = vector.load %arg13[%c2_482, %c2_483, %c0_484] : memref<6x6x64xf32, #tpu.memory_space<vmem>>, vector<1x4x64xf32>
    %447 = vector.shape_cast %446 : vector<1x4x64xf32> to vector<4x64xf32>
    %c8_485 = arith.constant 8 : index
    %c128_486 = arith.constant 128 : index
    %448 = vector.load %arg14[%c8_485, %c128_486] : memref<16x576xf32, #tpu.memory_space<vmem>>, vector<4x64xf32>
    tpu.vector_store %arg14[%c8_485, %c128_486], %447 {strides = array<i32>} : memref<16x576xf32, #tpu.memory_space<vmem>>, vector<4x64xf32>,
    %c3_487 = arith.constant 3 : index
    %c2_488 = arith.constant 2 : index
    %c0_489 = arith.constant 0 : index
    %449 = vector.load %arg13[%c3_487, %c2_488, %c0_489] : memref<6x6x64xf32, #tpu.memory_space<vmem>>, vector<1x4x64xf32>
    %450 = vector.shape_cast %449 : vector<1x4x64xf32> to vector<4x64xf32>
    %c12_490 = arith.constant 12 : index
    %c128_491 = arith.constant 128 : index
    %451 = vector.load %arg14[%c12_490, %c128_491] : memref<16x576xf32, #tpu.memory_space<vmem>>, vector<4x64xf32>
    tpu.vector_store %arg14[%c12_490, %c128_491], %450 {strides = array<i32>} : memref<16x576xf32, #tpu.memory_space<vmem>>, vector<4x64xf32>,
    %c1_492 = arith.constant 1 : index
    %c0_493 = arith.constant 0 : index
    %c0_494 = arith.constant 0 : index
    %452 = vector.load %arg13[%c1_492, %c0_493, %c0_494] : memref<6x6x64xf32, #tpu.memory_space<vmem>>, vector<1x4x64xf32>
    %453 = vector.shape_cast %452 : vector<1x4x64xf32> to vector<4x64xf32>
    %c0_495 = arith.constant 0 : index
    %c192_496 = arith.constant 192 : index
    %454 = vector.load %arg14[%c0_495, %c192_496] : memref<16x576xf32, #tpu.memory_space<vmem>>, vector<4x64xf32>
    tpu.vector_store %arg14[%c0_495, %c192_496], %453 {strides = array<i32>} : memref<16x576xf32, #tpu.memory_space<vmem>>, vector<4x64xf32>,
    %c2_497 = arith.constant 2 : index
    %c0_498 = arith.constant 0 : index
    %c0_499 = arith.constant 0 : index
    %455 = vector.load %arg13[%c2_497, %c0_498, %c0_499] : memref<6x6x64xf32, #tpu.memory_space<vmem>>, vector<1x4x64xf32>
    %456 = vector.shape_cast %455 : vector<1x4x64xf32> to vector<4x64xf32>
    %c4_500 = arith.constant 4 : index
    %c192_501 = arith.constant 192 : index
    %457 = vector.load %arg14[%c4_500, %c192_501] : memref<16x576xf32, #tpu.memory_space<vmem>>, vector<4x64xf32>
    tpu.vector_store %arg14[%c4_500, %c192_501], %456 {strides = array<i32>} : memref<16x576xf32, #tpu.memory_space<vmem>>, vector<4x64xf32>,
    %c3_502 = arith.constant 3 : index
    %c0_503 = arith.constant 0 : index
    %c0_504 = arith.constant 0 : index
    %458 = vector.load %arg13[%c3_502, %c0_503, %c0_504] : memref<6x6x64xf32, #tpu.memory_space<vmem>>, vector<1x4x64xf32>
    %459 = vector.shape_cast %458 : vector<1x4x64xf32> to vector<4x64xf32>
    %c8_505 = arith.constant 8 : index
    %c192_506 = arith.constant 192 : index
    %460 = vector.load %arg14[%c8_505, %c192_506] : memref<16x576xf32, #tpu.memory_space<vmem>>, vector<4x64xf32>
    tpu.vector_store %arg14[%c8_505, %c192_506], %459 {strides = array<i32>} : memref<16x576xf32, #tpu.memory_space<vmem>>, vector<4x64xf32>,
    %c4_507 = arith.constant 4 : index
    %c0_508 = arith.constant 0 : index
    %c0_509 = arith.constant 0 : index
    %461 = vector.load %arg13[%c4_507, %c0_508, %c0_509] : memref<6x6x64xf32, #tpu.memory_space<vmem>>, vector<1x4x64xf32>
    %462 = vector.shape_cast %461 : vector<1x4x64xf32> to vector<4x64xf32>
    %c12_510 = arith.constant 12 : index
    %c192_511 = arith.constant 192 : index
    %463 = vector.load %arg14[%c12_510, %c192_511] : memref<16x576xf32, #tpu.memory_space<vmem>>, vector<4x64xf32>
    tpu.vector_store %arg14[%c12_510, %c192_511], %462 {strides = array<i32>} : memref<16x576xf32, #tpu.memory_space<vmem>>, vector<4x64xf32>,
    %c1_512 = arith.constant 1 : index
    %c1_513 = arith.constant 1 : index
    %c0_514 = arith.constant 0 : index
    %464 = vector.load %arg13[%c1_512, %c1_513, %c0_514] : memref<6x6x64xf32, #tpu.memory_space<vmem>>, vector<1x4x64xf32>
    %465 = vector.shape_cast %464 : vector<1x4x64xf32> to vector<4x64xf32>
    %c0_515 = arith.constant 0 : index
    %c256_516 = arith.constant 256 : index
    %466 = vector.load %arg14[%c0_515, %c256_516] : memref<16x576xf32, #tpu.memory_space<vmem>>, vector<4x64xf32>
    tpu.vector_store %arg14[%c0_515, %c256_516], %465 {strides = array<i32>} : memref<16x576xf32, #tpu.memory_space<vmem>>, vector<4x64xf32>,
    %c2_517 = arith.constant 2 : index
    %c1_518 = arith.constant 1 : index
    %c0_519 = arith.constant 0 : index
    %467 = vector.load %arg13[%c2_517, %c1_518, %c0_519] : memref<6x6x64xf32, #tpu.memory_space<vmem>>, vector<1x4x64xf32>
    %468 = vector.shape_cast %467 : vector<1x4x64xf32> to vector<4x64xf32>
    %c4_520 = arith.constant 4 : index
    %c256_521 = arith.constant 256 : index
    %469 = vector.load %arg14[%c4_520, %c256_521] : memref<16x576xf32, #tpu.memory_space<vmem>>, vector<4x64xf32>
    tpu.vector_store %arg14[%c4_520, %c256_521], %468 {strides = array<i32>} : memref<16x576xf32, #tpu.memory_space<vmem>>, vector<4x64xf32>,
    %c3_522 = arith.constant 3 : index
    %c1_523 = arith.constant 1 : index
    %c0_524 = arith.constant 0 : index
    %470 = vector.load %arg13[%c3_522, %c1_523, %c0_524] : memref<6x6x64xf32, #tpu.memory_space<vmem>>, vector<1x4x64xf32>
    %471 = vector.shape_cast %470 : vector<1x4x64xf32> to vector<4x64xf32>
    %c8_525 = arith.constant 8 : index
    %c256_526 = arith.constant 256 : index
    %472 = vector.load %arg14[%c8_525, %c256_526] : memref<16x576xf32, #tpu.memory_space<vmem>>, vector<4x64xf32>
    tpu.vector_store %arg14[%c8_525, %c256_526], %471 {strides = array<i32>} : memref<16x576xf32, #tpu.memory_space<vmem>>, vector<4x64xf32>,
    %c4_527 = arith.constant 4 : index
    %c1_528 = arith.constant 1 : index
    %c0_529 = arith.constant 0 : index
    %473 = vector.load %arg13[%c4_527, %c1_528, %c0_529] : memref<6x6x64xf32, #tpu.memory_space<vmem>>, vector<1x4x64xf32>
    %474 = vector.shape_cast %473 : vector<1x4x64xf32> to vector<4x64xf32>
    %c12_530 = arith.constant 12 : index
    %c256_531 = arith.constant 256 : index
    %475 = vector.load %arg14[%c12_530, %c256_531] : memref<16x576xf32, #tpu.memory_space<vmem>>, vector<4x64xf32>
    tpu.vector_store %arg14[%c12_530, %c256_531], %474 {strides = array<i32>} : memref<16x576xf32, #tpu.memory_space<vmem>>, vector<4x64xf32>,
    %c1_532 = arith.constant 1 : index
    %c2_533 = arith.constant 2 : index
    %c0_534 = arith.constant 0 : index
    %476 = vector.load %arg13[%c1_532, %c2_533, %c0_534] : memref<6x6x64xf32, #tpu.memory_space<vmem>>, vector<1x4x64xf32>
    %477 = vector.shape_cast %476 : vector<1x4x64xf32> to vector<4x64xf32>
    %c0_535 = arith.constant 0 : index
    %c320 = arith.constant 320 : index
    %478 = vector.load %arg14[%c0_535, %c320] : memref<16x576xf32, #tpu.memory_space<vmem>>, vector<4x64xf32>
    tpu.vector_store %arg14[%c0_535, %c320], %477 {strides = array<i32>} : memref<16x576xf32, #tpu.memory_space<vmem>>, vector<4x64xf32>,
    %c2_536 = arith.constant 2 : index
    %c2_537 = arith.constant 2 : index
    %c0_538 = arith.constant 0 : index
    %479 = vector.load %arg13[%c2_536, %c2_537, %c0_538] : memref<6x6x64xf32, #tpu.memory_space<vmem>>, vector<1x4x64xf32>
    %480 = vector.shape_cast %479 : vector<1x4x64xf32> to vector<4x64xf32>
    %c4_539 = arith.constant 4 : index
    %c320_540 = arith.constant 320 : index
    %481 = vector.load %arg14[%c4_539, %c320_540] : memref<16x576xf32, #tpu.memory_space<vmem>>, vector<4x64xf32>
    tpu.vector_store %arg14[%c4_539, %c320_540], %480 {strides = array<i32>} : memref<16x576xf32, #tpu.memory_space<vmem>>, vector<4x64xf32>,
    %c3_541 = arith.constant 3 : index
    %c2_542 = arith.constant 2 : index
    %c0_543 = arith.constant 0 : index
    %482 = vector.load %arg13[%c3_541, %c2_542, %c0_543] : memref<6x6x64xf32, #tpu.memory_space<vmem>>, vector<1x4x64xf32>
    %483 = vector.shape_cast %482 : vector<1x4x64xf32> to vector<4x64xf32>
    %c8_544 = arith.constant 8 : index
    %c320_545 = arith.constant 320 : index
    %484 = vector.load %arg14[%c8_544, %c320_545] : memref<16x576xf32, #tpu.memory_space<vmem>>, vector<4x64xf32>
    tpu.vector_store %arg14[%c8_544, %c320_545], %483 {strides = array<i32>} : memref<16x576xf32, #tpu.memory_space<vmem>>, vector<4x64xf32>,
    %c4_546 = arith.constant 4 : index
    %c2_547 = arith.constant 2 : index
    %c0_548 = arith.constant 0 : index
    %485 = vector.load %arg13[%c4_546, %c2_547, %c0_548] : memref<6x6x64xf32, #tpu.memory_space<vmem>>, vector<1x4x64xf32>
    %486 = vector.shape_cast %485 : vector<1x4x64xf32> to vector<4x64xf32>
    %c12_549 = arith.constant 12 : index
    %c320_550 = arith.constant 320 : index
    %487 = vector.load %arg14[%c12_549, %c320_550] : memref<16x576xf32, #tpu.memory_space<vmem>>, vector<4x64xf32>
    tpu.vector_store %arg14[%c12_549, %c320_550], %486 {strides = array<i32>} : memref<16x576xf32, #tpu.memory_space<vmem>>, vector<4x64xf32>,
    %c2_551 = arith.constant 2 : index
    %c0_552 = arith.constant 0 : index
    %c0_553 = arith.constant 0 : index
    %488 = vector.load %arg13[%c2_551, %c0_552, %c0_553] : memref<6x6x64xf32, #tpu.memory_space<vmem>>, vector<1x4x64xf32>
    %489 = vector.shape_cast %488 : vector<1x4x64xf32> to vector<4x64xf32>
    %c0_554 = arith.constant 0 : index
    %c384 = arith.constant 384 : index
    %490 = vector.load %arg14[%c0_554, %c384] : memref<16x576xf32, #tpu.memory_space<vmem>>, vector<4x64xf32>
    tpu.vector_store %arg14[%c0_554, %c384], %489 {strides = array<i32>} : memref<16x576xf32, #tpu.memory_space<vmem>>, vector<4x64xf32>,
    %c3_555 = arith.constant 3 : index
    %c0_556 = arith.constant 0 : index
    %c0_557 = arith.constant 0 : index
    %491 = vector.load %arg13[%c3_555, %c0_556, %c0_557] : memref<6x6x64xf32, #tpu.memory_space<vmem>>, vector<1x4x64xf32>
    %492 = vector.shape_cast %491 : vector<1x4x64xf32> to vector<4x64xf32>
    %c4_558 = arith.constant 4 : index
    %c384_559 = arith.constant 384 : index
    %493 = vector.load %arg14[%c4_558, %c384_559] : memref<16x576xf32, #tpu.memory_space<vmem>>, vector<4x64xf32>
    tpu.vector_store %arg14[%c4_558, %c384_559], %492 {strides = array<i32>} : memref<16x576xf32, #tpu.memory_space<vmem>>, vector<4x64xf32>,
    %c4_560 = arith.constant 4 : index
    %c0_561 = arith.constant 0 : index
    %c0_562 = arith.constant 0 : index
    %494 = vector.load %arg13[%c4_560, %c0_561, %c0_562] : memref<6x6x64xf32, #tpu.memory_space<vmem>>, vector<1x4x64xf32>
    %495 = vector.shape_cast %494 : vector<1x4x64xf32> to vector<4x64xf32>
    %c8_563 = arith.constant 8 : index
    %c384_564 = arith.constant 384 : index
    %496 = vector.load %arg14[%c8_563, %c384_564] : memref<16x576xf32, #tpu.memory_space<vmem>>, vector<4x64xf32>
    tpu.vector_store %arg14[%c8_563, %c384_564], %495 {strides = array<i32>} : memref<16x576xf32, #tpu.memory_space<vmem>>, vector<4x64xf32>,
    %c5_565 = arith.constant 5 : index
    %c0_566 = arith.constant 0 : index
    %c0_567 = arith.constant 0 : index
    %497 = vector.load %arg13[%c5_565, %c0_566, %c0_567] : memref<6x6x64xf32, #tpu.memory_space<vmem>>, vector<1x4x64xf32>
    %498 = vector.shape_cast %497 : vector<1x4x64xf32> to vector<4x64xf32>
    %c12_568 = arith.constant 12 : index
    %c384_569 = arith.constant 384 : index
    %499 = vector.load %arg14[%c12_568, %c384_569] : memref<16x576xf32, #tpu.memory_space<vmem>>, vector<4x64xf32>
    tpu.vector_store %arg14[%c12_568, %c384_569], %498 {strides = array<i32>} : memref<16x576xf32, #tpu.memory_space<vmem>>, vector<4x64xf32>,
    %c2_570 = arith.constant 2 : index
    %c1_571 = arith.constant 1 : index
    %c0_572 = arith.constant 0 : index
    %500 = vector.load %arg13[%c2_570, %c1_571, %c0_572] : memref<6x6x64xf32, #tpu.memory_space<vmem>>, vector<1x4x64xf32>
    %501 = vector.shape_cast %500 : vector<1x4x64xf32> to vector<4x64xf32>
    %c0_573 = arith.constant 0 : index
    %c448 = arith.constant 448 : index
    %502 = vector.load %arg14[%c0_573, %c448] : memref<16x576xf32, #tpu.memory_space<vmem>>, vector<4x64xf32>
    tpu.vector_store %arg14[%c0_573, %c448], %501 {strides = array<i32>} : memref<16x576xf32, #tpu.memory_space<vmem>>, vector<4x64xf32>,
    %c3_574 = arith.constant 3 : index
    %c1_575 = arith.constant 1 : index
    %c0_576 = arith.constant 0 : index
    %503 = vector.load %arg13[%c3_574, %c1_575, %c0_576] : memref<6x6x64xf32, #tpu.memory_space<vmem>>, vector<1x4x64xf32>
    %504 = vector.shape_cast %503 : vector<1x4x64xf32> to vector<4x64xf32>
    %c4_577 = arith.constant 4 : index
    %c448_578 = arith.constant 448 : index
    %505 = vector.load %arg14[%c4_577, %c448_578] : memref<16x576xf32, #tpu.memory_space<vmem>>, vector<4x64xf32>
    tpu.vector_store %arg14[%c4_577, %c448_578], %504 {strides = array<i32>} : memref<16x576xf32, #tpu.memory_space<vmem>>, vector<4x64xf32>,
    %c4_579 = arith.constant 4 : index
    %c1_580 = arith.constant 1 : index
    %c0_581 = arith.constant 0 : index
    %506 = vector.load %arg13[%c4_579, %c1_580, %c0_581] : memref<6x6x64xf32, #tpu.memory_space<vmem>>, vector<1x4x64xf32>
    %507 = vector.shape_cast %506 : vector<1x4x64xf32> to vector<4x64xf32>
    %c8_582 = arith.constant 8 : index
    %c448_583 = arith.constant 448 : index
    %508 = vector.load %arg14[%c8_582, %c448_583] : memref<16x576xf32, #tpu.memory_space<vmem>>, vector<4x64xf32>
    tpu.vector_store %arg14[%c8_582, %c448_583], %507 {strides = array<i32>} : memref<16x576xf32, #tpu.memory_space<vmem>>, vector<4x64xf32>,
    %c5_584 = arith.constant 5 : index
    %c1_585 = arith.constant 1 : index
    %c0_586 = arith.constant 0 : index
    %509 = vector.load %arg13[%c5_584, %c1_585, %c0_586] : memref<6x6x64xf32, #tpu.memory_space<vmem>>, vector<1x4x64xf32>
    %510 = vector.shape_cast %509 : vector<1x4x64xf32> to vector<4x64xf32>
    %c12_587 = arith.constant 12 : index
    %c448_588 = arith.constant 448 : index
    %511 = vector.load %arg14[%c12_587, %c448_588] : memref<16x576xf32, #tpu.memory_space<vmem>>, vector<4x64xf32>
    tpu.vector_store %arg14[%c12_587, %c448_588], %510 {strides = array<i32>} : memref<16x576xf32, #tpu.memory_space<vmem>>, vector<4x64xf32>,
    %c2_589 = arith.constant 2 : index
    %c2_590 = arith.constant 2 : index
    %c0_591 = arith.constant 0 : index
    %512 = vector.load %arg13[%c2_589, %c2_590, %c0_591] : memref<6x6x64xf32, #tpu.memory_space<vmem>>, vector<1x4x64xf32>
    %513 = vector.shape_cast %512 : vector<1x4x64xf32> to vector<4x64xf32>
    %c0_592 = arith.constant 0 : index
    %c512 = arith.constant 512 : index
    %514 = vector.load %arg14[%c0_592, %c512] : memref<16x576xf32, #tpu.memory_space<vmem>>, vector<4x64xf32>
    tpu.vector_store %arg14[%c0_592, %c512], %513 {strides = array<i32>} : memref<16x576xf32, #tpu.memory_space<vmem>>, vector<4x64xf32>,
    %c3_593 = arith.constant 3 : index
    %c2_594 = arith.constant 2 : index
    %c0_595 = arith.constant 0 : index
    %515 = vector.load %arg13[%c3_593, %c2_594, %c0_595] : memref<6x6x64xf32, #tpu.memory_space<vmem>>, vector<1x4x64xf32>
    %516 = vector.shape_cast %515 : vector<1x4x64xf32> to vector<4x64xf32>
    %c4_596 = arith.constant 4 : index
    %c512_597 = arith.constant 512 : index
    %517 = vector.load %arg14[%c4_596, %c512_597] : memref<16x576xf32, #tpu.memory_space<vmem>>, vector<4x64xf32>
    tpu.vector_store %arg14[%c4_596, %c512_597], %516 {strides = array<i32>} : memref<16x576xf32, #tpu.memory_space<vmem>>, vector<4x64xf32>,
    %c4_598 = arith.constant 4 : index
    %c2_599 = arith.constant 2 : index
    %c0_600 = arith.constant 0 : index
    %518 = vector.load %arg13[%c4_598, %c2_599, %c0_600] : memref<6x6x64xf32, #tpu.memory_space<vmem>>, vector<1x4x64xf32>
    %519 = vector.shape_cast %518 : vector<1x4x64xf32> to vector<4x64xf32>
    %c8_601 = arith.constant 8 : index
    %c512_602 = arith.constant 512 : index
    %520 = vector.load %arg14[%c8_601, %c512_602] : memref<16x576xf32, #tpu.memory_space<vmem>>, vector<4x64xf32>
    tpu.vector_store %arg14[%c8_601, %c512_602], %519 {strides = array<i32>} : memref<16x576xf32, #tpu.memory_space<vmem>>, vector<4x64xf32>,
    %c5_603 = arith.constant 5 : index
    %c2_604 = arith.constant 2 : index
    %c0_605 = arith.constant 0 : index
    %521 = vector.load %arg13[%c5_603, %c2_604, %c0_605] : memref<6x6x64xf32, #tpu.memory_space<vmem>>, vector<1x4x64xf32>
    %522 = vector.shape_cast %521 : vector<1x4x64xf32> to vector<4x64xf32>
    %c12_606 = arith.constant 12 : index
    %c512_607 = arith.constant 512 : index
    %523 = vector.load %arg14[%c12_606, %c512_607] : memref<16x576xf32, #tpu.memory_space<vmem>>, vector<4x64xf32>
    tpu.vector_store %arg14[%c12_606, %c512_607], %522 {strides = array<i32>} : memref<16x576xf32, #tpu.memory_space<vmem>>, vector<4x64xf32>,
    %c0_608 = arith.constant 0 : index
    %c0_609 = arith.constant 0 : index
    %524 = vector.load %arg14[%c0_608, %c0_609] : memref<16x576xf32, #tpu.memory_space<vmem>>, vector<16x576xf32>
    %c0_610 = arith.constant 0 : index
    %c0_611 = arith.constant 0 : index
    %525 = vector.load %arg6[%c0_610, %c0_611] : memref<576x128xf32, #tpu.memory_space<vmem>>, vector<576x128xf32>
    %cst_612 = arith.constant dense<0.000000e+00> : vector<16x128xf32>
    %526 = tpu.matmul %524, %525, %cst_612 {dimension_numbers = #tpu.dot_dimension_numbers<[1], [0], [0], [1], [0, 0, 1, 1], [], []>} : vector<16x576xf32>, vector<576x128xf32>, vector<16x128xf32> -> vector<16x128xf32>
    %c0_613 = arith.constant 0 : index
    %c0_614 = arith.constant 0 : index
    %527 = vector.load %arg7[%c0_613, %c0_614] : memref<1x128xf32, #tpu.memory_space<vmem>>, vector<1x128xf32>
    %528 = vector.broadcast %527 : vector<1x128xf32> to vector<16x128xf32>
    %529 = arith.addf %526, %528 : vector<16x128xf32>
    %cst_615 = arith.constant 0.000000e+00 : f32
    %530 = vector.broadcast %cst_615 : f32 to vector<16x128xf32>
    %531 = arith.maximumf %529, %530 : vector<16x128xf32>
    %c0_616 = arith.constant 0 : index
    %c0_617 = arith.constant 0 : index
    %532 = vector.load %arg8[%c0_616, %c0_617] : memref<1x128xf32, #tpu.memory_space<vmem>>, vector<1x128xf32>
    %533 = vector.broadcast %532 : vector<1x128xf32> to vector<16x128xf32>
    %534 = arith.mulf %531, %533 : vector<16x128xf32>
    %cst_618 = arith.constant dense<0.000000e+00> : vector<16xf32>
    %535 = vector.multi_reduction <add>, %534, %cst_618 [1] : vector<16x128xf32> to vector<16xf32>
    %536 = vector.shape_cast %535 : vector<16xf32> to vector<16x1xf32>
    %c0_619 = arith.constant 0 : index
    %c0_620 = arith.constant 0 : index
    %537 = vector.load %arg9[%c0_619, %c0_620] : memref<1x1xf32, #tpu.memory_space<vmem>>, vector<1x1xf32>
    %538 = vector.broadcast %537 : vector<1x1xf32> to vector<16x1xf32>
    %539 = arith.addf %536, %538 : vector<16x1xf32>
    %c0_621 = arith.constant 0 : index
    %c0_622 = arith.constant 0 : index
    %c0_623 = arith.constant 0 : index
    %540 = vector.load %arg10[%c0_621, %c0_622, %c0_623] : memref<1x16x1xf32, #tpu.memory_space<vmem>>, vector<1x16x1xf32>
    %541 = vector.shape_cast %540 : vector<1x16x1xf32> to vector<16x1xf32>
    %542 = vector.shape_cast %539 : vector<16x1xf32> to vector<1x16x1xf32>
    tpu.vector_store %arg10[%c0_621, %c0_622, %c0_623], %542 {strides = array<i32>} : memref<1x16x1xf32, #tpu.memory_space<vmem>>, vector<1x16x1xf32>,
    return
  }
  func.func @transform_0(%arg0: i32) -> (i32, i32, i32) {
    %c0_i32 = arith.constant 0 : i32
    %c0_i32_0 = arith.constant 0 : i32
    %c0_i32_1 = arith.constant 0 : i32
    return %arg0, %c0_i32, %c0_i32_0 : i32, i32, i32
  }
  func.func @transform_1(%arg0: i32) -> (i32, i32) {
    %c0_i32 = arith.constant 0 : i32
    %c0_i32_0 = arith.constant 0 : i32
    %c0_i32_1 = arith.constant 0 : i32
    return %c0_i32, %c0_i32_0 : i32, i32
  }
  func.func @transform_2(%arg0: i32) -> (i32, i32) {
    %c0_i32 = arith.constant 0 : i32
    %c0_i32_0 = arith.constant 0 : i32
    %c0_i32_1 = arith.constant 0 : i32
    return %c0_i32, %c0_i32_0 : i32, i32
  }
  func.func @transform_3(%arg0: i32) -> (i32, i32) {
    %c0_i32 = arith.constant 0 : i32
    %c0_i32_0 = arith.constant 0 : i32
    %c0_i32_1 = arith.constant 0 : i32
    return %c0_i32, %c0_i32_0 : i32, i32
  }
  func.func @transform_4(%arg0: i32) -> (i32, i32) {
    %c0_i32 = arith.constant 0 : i32
    %c0_i32_0 = arith.constant 0 : i32
    %c0_i32_1 = arith.constant 0 : i32
    return %c0_i32, %c0_i32_0 : i32, i32
  }
  func.func @transform_5(%arg0: i32) -> (i32, i32) {
    %c0_i32 = arith.constant 0 : i32
    %c0_i32_0 = arith.constant 0 : i32
    %c0_i32_1 = arith.constant 0 : i32
    return %c0_i32, %c0_i32_0 : i32, i32
  }
  func.func @transform_6(%arg0: i32) -> (i32, i32) {
    %c0_i32 = arith.constant 0 : i32
    %c0_i32_0 = arith.constant 0 : i32
    %c0_i32_1 = arith.constant 0 : i32
    return %c0_i32, %c0_i32_0 : i32, i32
  }
  func.func @transform_7(%arg0: i32) -> (i32, i32) {
    %c0_i32 = arith.constant 0 : i32
    %c0_i32_0 = arith.constant 0 : i32
    %c0_i32_1 = arith.constant 0 : i32
    return %c0_i32, %c0_i32_0 : i32, i32
  }
  func.func @transform_8(%arg0: i32) -> (i32, i32) {
    %c0_i32 = arith.constant 0 : i32
    %c0_i32_0 = arith.constant 0 : i32
    %c0_i32_1 = arith.constant 0 : i32
    return %c0_i32, %c0_i32_0 : i32, i32
  }
  func.func @transform_9(%arg0: i32) -> (i32, i32, i32) {
    %c0_i32 = arith.constant 0 : i32
    %c0_i32_0 = arith.constant 0 : i32
    %c0_i32_1 = arith.constant 0 : i32
    return %arg0, %c0_i32, %c0_i32_0 : i32, i32, i32
  }
}

</mosaic_0001>

<bundles_post_ra>
// kernel: video_comperator_forward.1
= control target key start
LH: loop header
LB: loop body
LE: loop exit
PB: predicated region body
PF: predicated region fallthrough
CT: control target
= control target key end

     0   :  { %s2623_s11 = smov 0   ;;  %s3386_s0 = inlined_call_operand.vmem [shape: f32[2,256,9], index: 0, kind: input, shape index: {}]   ;;  %s3387_s1 = inlined_call_operand.vmem [shape: f32[9,32], index: 1, kind: input, shape index: {}]   ;;  %s3388_s2 = inlined_call_operand.vmem [shape: f32[1,32], index: 2, kind: input, shape index: {}]   ;;  %s3389_s3 = inlined_call_operand.vmem [shape: f32[288,64], index: 3, kind: input, shape index: {}]   ;;  %s3390_s4 = inlined_call_operand.vmem [shape: f32[1,64], index: 4, kind: input, shape index: {}]   ;;  %s3391_s5 = inlined_call_operand.vmem [shape: f32[576,128], index: 5, kind: input, shape index: {}]   ;;  %s3392_s6 = inlined_call_operand.vmem [shape: f32[1,128], index: 6, kind: input, shape index: {}]   ;;  %s3393_s7 = inlined_call_operand.vmem [shape: f32[1,128], index: 7, kind: input, shape index: {}]   ;;  %s3394_s8 = inlined_call_operand.<no memory space> [shape: f32[1,1], index: 8, kind: input, shape index: {}]   ;;  %s3395_s9 = inlined_call_operand.vmem [shape: f32[2,16,1], index: 9, kind: output, shape index: {}]  }
   0x1   :  { %v14_v0 = vstv %s3394_s8 }
   0x2   :  { %15 = vst [vmem:[#allocation6] sm:$0x1] %v14_v0 }
   0x3 LB: > { %s2078_s12 = sadd.s32 4294967295, %s2563_s11   ;;  %p2082_p0 = scmp.ge.s32.totalorder %s2563_s11, 1  ;;  %s2563_s11 = sphi %s2623_s11, %s21_s11  }
   0x4   : > { %p289_p1 = scmp.lt.s32.totalorder %s2563_s11, 3 }
   0x6   : > { %p290_p2 = pnand %p2082_p0, %p289_p1 }
   0x7   : > { %v367_v1 = vld [vmem:[%s3387_s1] sm:$0xff] (!%p290_p2)  ;;  %v368_v2 = vld [vmem:[%s3387_s1 + $0x8] sm:$0x1] (!%p290_p2)  ;;  %vm473_vm0 = vcmask (!%p290_p2), 1040384   ;;  %p325_p3 = scmp.lt.s32.totalorder (!%p290_p2), %s2078_s12, 1  ;;  %vm2565_vm1 = vmmov (!%p290_p2), 1  }
   0x8   : > { %293 = sbr.rel (%p290_p2) target bundleno = 1264 (0x4f0), region = 56  ;;  %v2418_v3 = vpack.c.bf16 (!%p290_p2), %v368_v2, %v367_v1  ;;  %vm2419_vm2 = vmpackc.low (!%p290_p2), %vm473_vm0, %vm2565_vm1  ;;  %vm376_vm3 = vcmask (!%p290_p2), 72704   ;;  %vm758_vm4 = vcmask (!%p290_p2), 261120   ;;  %vm760_vm5 = vcmask (!%p290_p2), 254976   ;;  %s2567_s20 = smov (!%p290_p2), 64  }
   0x9   : > { %v2566_v36 = vmov (!%p290_p2), 0.0   ;;  %s2568_s21 = smov (!%p290_p2), 32   ;;  %v2754_v45 = vld [vmem:[%s3388_s2] ss:$0 sm:$0xff] (!%p290_p2)  ;;  %vm817_vm6 = vcmask (!%p290_p2), 523520   ;;  %vm866_vm7 = vcmask (!%p290_p2), 785920  }
   0xa   : > { %2420 = vmatprep.subr.msk.bf16.mxu0 (!%p290_p2), %vm2419_vm2, %v2418_v3  ;;  %764 = vst.msk [vmem:[#allocation2 + $0x20] sm:$0xff] (!%p290_p2), %vm758_vm4, %v2566_v36  ;;  %759 = vst.msk [vmem:[#allocation2] sm:$0xff] (!%p290_p2), %vm758_vm4, %v2566_v36  ;;  %vm915_vm8 = vcmask (!%p290_p2), 1048320   ;;  %vm1445_vm9 = vcmask (!%p290_p2), 521216   ;;  %vm1503_vm10 = vcmask (!%p290_p2), 523268   ;;  %vm1497_vm11 = vcmask (!%p290_p2), 519168  }
   0xb   : > { %2423 = vmatpush3.bf16.msk.msra.mxu0 (!%p290_p2), %vm2419_vm2, %v2418_v3  ;;  %765 = vst.msk [vmem:[#allocation2 + $0x28] sm:$0x3] (!%p290_p2), %vm760_vm5, %v2566_v36  ;;  %761 = vst.msk [vmem:[#allocation2 + $0x8] sm:$0x3] (!%p290_p2), %vm760_vm5, %v2566_v36  ;;  %vm1517_vm12 = vcmask (!%p290_p2), 1043968   ;;  %vm1525_vm13 = vcmask (!%p290_p2), 1048068  }
   0xc   : > { %762 = vst.msk [vmem:[#allocation2 + $0x10] sm:$0xff] (!%p290_p2), %vm758_vm4, %v2566_v36  ;;  %766 = vst.msk [vmem:[#allocation2 + $0x30] sm:$0xff] (!%p290_p2), %vm758_vm4, %v2566_v36  ;;  %vm1458_vm14 = vcmask (!%p290_p2), 516096   ;;  %vm1460_vm15 = vcmask (!%p290_p2), 518146   ;;  %vm1462_vm0 = vcmask (!%p290_p2), 520196   ;;  %vm1464_vm1 = vcmask (!%p290_p2), 522246  }
   0xd   : > { %763 = vst.msk [vmem:[#allocation2 + $0x18] sm:$0x3] (!%p290_p2), %vm760_vm5, %v2566_v36  ;;  %767 = vst.msk [vmem:[#allocation2 + $0x38] sm:$0x3] (!%p290_p2), %vm760_vm5, %v2566_v36  ;;  %vm1764_vm2 = vcmask (!%p290_p2), 523264  }
   0xe   : > { %768 = vst.msk [vmem:[#allocation2 + $0x40] sm:$0xff] (!%p290_p2), %vm758_vm4, %v2566_v36  ;;  %770 = vst.msk [vmem:[#allocation2 + $0x50] sm:$0xff] (!%p290_p2), %vm758_vm4, %v2566_v36 }
   0xf   : > { %s3397_s12 = smov (!%p325_p3, %s2078_s12), 1  ;;  %769 = vst.msk [vmem:[#allocation2 + $0x48] sm:$0x3] %vm760_vm5, %v2566_v36  ;;  %771 = vst.msk [vmem:[#allocation2 + $0x58] sm:$0x3] %vm760_vm5, %v2566_v36 }
  0x10   : > { %s2137_s16 = sshll.u32 %s3397_s12, 8  ;;  %772 = vst.msk [vmem:[#allocation2 + $0x60] sm:$0xff] %vm758_vm4, %v2566_v36  ;;  %774 = vst.msk [vmem:[#allocation2 + $0x70] sm:$0xff] %vm758_vm4, %v2566_v36 }
  0x11   : > { %s2643_s19 = scalar_lea.vmem %s3386_s0, %s2137_s16  ;;  %773 = vst.msk [vmem:[#allocation2 + $0x68] sm:$0x3] %vm760_vm5, %v2566_v36  ;;  %775 = vst.msk [vmem:[#allocation2 + $0x78] sm:$0x3] %vm760_vm5, %v2566_v36  ;;  %s2569_s16 = smov 96  }
  0x12   : > { %v335_v4 = vld [vmem:[%s2643_s19] sm:$0xff]  ;;  %v336_v5 = vld [vmem:[%s2643_s19 + $0x8] sm:$0xff]  ;;  %v337_v6 = vld [vmem:[%s2643_s19 + $0x10] sm:$0xff]  ;;  %776 = vst.msk [vmem:[#allocation2 + $0x80] sm:$0xff] %vm758_vm4, %v2566_v36 }
  0x13   : > { %2331 = vmatprep.mubr.msk.f32.mxu0 %vm376_vm3, %v335_v4  ;;  %v338_v7 = vld [vmem:[%s2643_s19 + $0x18] sm:$0xff]  ;;  %v339_v8 = vld [vmem:[%s2643_s19 + $0x20] sm:$0xff]  ;;  %v340_v9 = vld [vmem:[%s2643_s19 + $0x28] sm:$0xff]  ;;  %777 = vst.msk [vmem:[#allocation2 + $0x88] sm:$0x3] %vm760_vm5, %v2566_v36 }
  0x14   : > { %2332 = vmatmul.mubr.msk.f32.vlgmr.msra.gmra.mrb[0].mxu0 %vm376_vm3, %v336_v5  ;;  %v341_v10 = vld [vmem:[%s2643_s19 + $0x30] sm:$0xff]  ;;  %v342_v11 = vld [vmem:[%s2643_s19 + $0x38] sm:$0xff]  ;;  %v343_v12 = vld [vmem:[%s2643_s19 + $0x40] sm:$0xff]  ;;  %778 = vst.msk [vmem:[#allocation2 + $0x90] sm:$0xff] %vm758_vm4, %v2566_v36 }
  0x15   : > { %2334 = vmatprep.mubr.msk.f32.mxu0 %vm376_vm3, %v337_v6  ;;  %v344_v13 = vld [vmem:[%s2643_s19 + $0x48] sm:$0xff]  ;;  %v345_v14 = vld [vmem:[%s2643_s19 + $0x50] sm:$0xff]  ;;  %v346_v15 = vld [vmem:[%s2643_s19 + $0x58] sm:$0xff]  ;;  %779 = vst.msk [vmem:[#allocation2 + $0x98] sm:$0x3] %vm760_vm5, %v2566_v36 }
  0x16   : > { %v347_v16 = vld [vmem:[%s2643_s19 + $0x60] sm:$0xff]  ;;  %v348_v17 = vld [vmem:[%s2643_s19 + $0x68] sm:$0xff]  ;;  %v349_v18 = vld [vmem:[%s2643_s19 + $0x70] sm:$0xff]  ;;  %1447 = vst.msk [vmem:[#allocation4 + $0x8] sm:$0x3f] %vm1445_vm9, %v2566_v36 }
  0x17   : > { %v350_v19 = vld [vmem:[%s2643_s19 + $0x78] sm:$0xff]  ;;  %v351_v20 = vld [vmem:[%s2643_s19 + $0x80] sm:$0xff]  ;;  %v352_v21 = vld [vmem:[%s2643_s19 + $0x88] sm:$0xff]  ;;  %1446 = vst.msk [vmem:[#allocation4] sm:$0x3f] %vm1445_vm9, %v2566_v36 }
  0x18   : > { %2335 = vmatmul.mubr.msk.f32.gmra.mrb[2].mxu0 %vm376_vm3, %v338_v7  ;;  %v353_v22 = vld [vmem:[%s2643_s19 + $0x90] sm:$0xff]  ;;  %v354_v23 = vld [vmem:[%s2643_s19 + $0x98] sm:$0xff]  ;;  %v355_v24 = vld [vmem:[%s2643_s19 + $0xa0] sm:$0xff]  ;;  %1448 = vst.msk [vmem:[#allocation4 + $0x10] sm:$0x3f] %vm1445_vm9, %v2566_v36 }
  0x19   : > { %2337 = vmatprep.mubr.msk.f32.mxu0 %vm376_vm3, %v339_v8  ;;  %v356_v25 = vld [vmem:[%s2643_s19 + $0xa8] sm:$0xff]  ;;  %v357_v26 = vld [vmem:[%s2643_s19 + $0xb0] sm:$0xff]  ;;  %v358_v27 = vld [vmem:[%s2643_s19 + $0xb8] sm:$0xff]  ;;  %1449 = vst.msk [vmem:[#allocation4 + $0x18] sm:$0x3f] %vm1445_vm9, %v2566_v36 }
  0x1a   : > { %v359_v28 = vld [vmem:[%s2643_s19 + $0xc0] sm:$0xff]  ;;  %v360_v29 = vld [vmem:[%s2643_s19 + $0xc8] sm:$0xff]  ;;  %v361_v30 = vld [vmem:[%s2643_s19 + $0xd0] sm:$0xff]  ;;  %1450 = vst.msk [vmem:[#allocation4 + $0x20] sm:$0x3f] %vm1445_vm9, %v2566_v36 }
  0x1b   : > { %v362_v31 = vld [vmem:[%s2643_s19 + $0xd8] sm:$0xff]  ;;  %v363_v32 = vld [vmem:[%s2643_s19 + $0xe0] sm:$0xff]  ;;  %v364_v33 = vld [vmem:[%s2643_s19 + $0xe8] sm:$0xff]  ;;  %1451 = vst.msk [vmem:[#allocation4 + $0x28] sm:$0x3f] %vm1445_vm9, %v2566_v36 }
  0x1c   : > { %2338 = vmatmul.mubr.msk.f32.gmra.mrb[4].mxu0 %vm376_vm3, %v340_v9  ;;  %v365_v34 = vld [vmem:[%s2643_s19 + $0xf0] sm:$0xff]  ;;  %v366_v35 = vld [vmem:[%s2643_s19 + $0xf8] sm:$0xff]  ;;  %v861_v37 = vld [vmem:[#allocation2 + $0x2] sm:$0xff] }
  0x1d   : > { %2340 = vmatprep.mubr.msk.f32.mxu0 %vm376_vm3, %v341_v10  ;;  %v812_v38 = vld [vmem:[#allocation2 + $0x1] sm:$0xff]  ;;  %863 = vrot.lane.b32.xlu1 %v861_v37, %s2567_s20 }
  0x1e   : > { %814 = vrot.lane.b32.xlu0 %v812_v38, %s2568_s21  ;;  %v1702_v36 = vld [vmem:[%s3391_s5 + $0x88] sm:$0xff] }
  0x20   : > { %2341 = vmatmul.mubr.msk.f32.gmra.mrb[6].mxu0 %vm376_vm3, %v342_v11 }
  0x21   : > { %2343 = vmatprep.mubr.msk.f32.mxu0 %vm376_vm3, %v343_v12  ;;  %v1176_v12 = vld [vmem:[%s3389_s3 + $0x80] sm:$0xff] }
  0x24   : > { %2344 = vmatmul.mubr.msk.f32.gmra.mrb[8].mxu0 %vm376_vm3, %v344_v13  ;;  %v1177_v13 = vld [vmem:[%s3389_s3 + $0x88] sm:$0xff] }
  0x25   : > { %2346 = vmatprep.mubr.msk.f32.mxu0 %vm376_vm3, %v345_v14  ;;  %v1160_v14 = vld [vmem:[%s3389_s3] sm:$0xff] }
  0x28   : > { %2347 = vmatmul.mubr.msk.f32.gmra.mrb[10].mxu0 %vm376_vm3, %v346_v15 }
  0x29   : > { %2349 = vmatprep.mubr.msk.f32.mxu0 %vm376_vm3, %v347_v16 }
  0x2c   : > { %2350 = vmatmul.mubr.msk.f32.gmra.mrb[12].mxu0 %vm376_vm3, %v348_v17  ;;  %v2424_v17 = vpack.c.bf16 %v1177_v13, %v1176_v12 }
  0x2d   : > { %2352 = vmatprep.mubr.msk.f32.mxu0 %vm376_vm3, %v349_v18  ;;  %v1161_v18 = vld [vmem:[%s3389_s3 + $0x8] sm:$0xff] }
  0x2e   : > { %2425 = vmatprep.subr.bf16.mxu1 %v2424_v17 }
  0x30   : > { %2353 = vmatmul.mubr.msk.f32.gmra.mrb[14].mxu0 %vm376_vm3, %v350_v19  ;;  %v796_v19 = vld [vmem:[#allocation2] sm:$0xff] }
  0x31   : > { %2355 = vmatprep.mubr.msk.f32.mxu0 %vm376_vm3, %v351_v20  ;;  %v1178_v20 = vld [vmem:[%s3389_s3 + $0x90] sm:$0xff]  ;;  %797 = vst.msk [vmem:[#allocation3] sm:$0xff] %vm758_vm4, %v796_v19 }
  0x32   : > { %v1182_v19 = vld [vmem:[%s3389_s3 + $0xb0] sm:$0xff] }
  0x34   : > { %2356 = vmatmul.mubr.msk.f32.gmra.mrb[16].mxu0 %vm376_vm3, %v352_v21 }
  0x35   : > { %2358 = vmatprep.mubr.msk.f32.mxu0 %vm376_vm3, %v353_v22 }
  0x38   : > { %2359 = vmatmul.mubr.msk.f32.gmra.mrb[18].mxu0 %vm376_vm3, %v354_v23 }
  0x39   : > { %2361 = vmatprep.mubr.msk.f32.mxu0 %vm376_vm3, %v355_v24  ;;  %v2426_v24 = vpack.c.bf16 %v1161_v18, %v1160_v14 }
  0x3b   : > { %2427 = vmatpush3.bf16.msra.mxu1 %v2426_v24 }
  0x3c   : > { %2362 = vmatmul.mubr.msk.f32.gmra.mrb[20].mxu0 %vm376_vm3, %v356_v25  ;;  %v1179_v25 = vld [vmem:[%s3389_s3 + $0x98] sm:$0xff] }
  0x3d   : > { %2364 = vmatprep.mubr.msk.f32.mxu0 %vm376_vm3, %v357_v26  ;;  %v1162_v26 = vld [vmem:[%s3389_s3 + $0x10] sm:$0xff] }
  0x40   : > { %2365 = vmatmul.mubr.msk.f32.gmra.mrb[22].mxu0 %vm376_vm3, %v358_v27  ;;  %v1163_v27 = vld [vmem:[%s3389_s3 + $0x18] sm:$0xff] }
  0x41   : > { %2367 = vmatprep.mubr.msk.f32.mxu0 %vm376_vm3, %v359_v28  ;;  %v2430_v37 = vpack.c.bf16 %v1163_v27, %v1162_v26  ;;  %v1167_v26 = vld [vmem:[%s3389_s3 + $0x38] sm:$0xff] }
  0x44   : > { %2368 = vmatmul.mubr.msk.f32.gmra.mrb[24].mxu0 %vm376_vm3, %v360_v29 }
  0x45   : > { %2370 = vmatprep.mubr.msk.f32.mxu0 %vm376_vm3, %v361_v30 }
  0x48   : > { %2371 = vmatmul.mubr.msk.f32.gmra.mrb[26].mxu0 %vm376_vm3, %v362_v31 }
  0x49   : > { %2373 = vmatprep.mubr.msk.f32.mxu0 %vm376_vm3, %v363_v32  ;;  %v2428_v32 = vpack.c.bf16 %v1179_v25, %v1178_v20  ;;  %v1183_v20 = vld [vmem:[%s3389_s3 + $0xb8] sm:$0xff]  ;;  %v1166_v25 = vld [vmem:[%s3389_s3 + $0x30] sm:$0xff] }
  0x4a   : > { %v2436_v24 = vpack.c.bf16 %v1183_v20, %v1182_v19  ;;  %v1188_v19 = vld [vmem:[%s3389_s3 + $0xe0] sm:$0xff]  ;;  %v1189_v20 = vld [vmem:[%s3389_s3 + $0xe8] sm:$0xff] }
  0x4b   : > { %2429 = vmatprep.subr.bf16.mxu1 %v2428_v32 }
  0x4c   : > { %2374 = vmatmul.mubr.msk.f32.gmra.mrb[28].mxu0 %vm376_vm3, %v364_v33  ;;  %2431 = vmatpush3.bf16.msra.mxu1 %v2430_v37 }
  0x4d   : > { %2376 = vmatprep.mubr.msk.f32.mxu0 %vm376_vm3, %v365_v34 }
  0x50   : > { %2377 = vmatmul.mubr.msk.f32.gmra.mrb[30].mxu0 %vm376_vm3, %v366_v35  ;;  %vm2020_vm3 = vcmask 7168  }
  0xe7   : > { %v2333_v39 = vpop.f32.mrb[0].mxu0 }
  0xe8   : > { %v543_v40 = vpop.f32.mrb[1].mxu0  ;;  %v549_v48 = vadd.f32 %v2333_v39, %v2754_v45 }
  0xe9   : > { %v544_v49 = vadd.f32 %v2754_v45, %v543_v40 }
  0xea   : > { %v703_v54 = vmax.f32 %v549_v48, 0.0 }
  0xeb   : > { %v2336_v41 = vpop.f32.mrb[2].mxu0  ;;  %v702_v57 = vmax.f32 %v544_v49, 0.0 }
  0xec   : > { %v553_v42 = vpop.f32.mrb[3].mxu0  ;;  %v559_v55 = vadd.f32 %v2336_v41, %v2754_v45 }
  0xed   : > { %v554_v58 = vadd.f32 %v2754_v45, %v553_v42 }
  0xee   : > { %v705_v2 = vmax.f32 %v559_v55, 0.0 }
  0xef   : > { %v2339_v43 = vpop.f32.mrb[4].mxu0  ;;  %v704_v5 = vmax.f32 %v554_v58, 0.0 }
  0xf0   : > { %v563_v44 = vpop.f32.mrb[5].mxu0  ;;  %v569_v3 = vadd.f32 %v2339_v43, %v2754_v45 }
  0xf1   : > { %v564_v6 = vadd.f32 %v2754_v45, %v563_v44 }
  0xf2   : > { %v707_v21 = vmax.f32 %v569_v3, 0.0 }
  0xf3   : > { %v2342_v46 = vpop.f32.mrb[6].mxu0  ;;  %v706_v28 = vmax.f32 %v564_v6, 0.0 }
  0xf4   : > { %v573_v47 = vpop.f32.mrb[7].mxu0  ;;  %v579_v22 = vadd.f32 %v2342_v46, %v2754_v45 }
  0xf5   : > { %v574_v29 = vadd.f32 %v2754_v45, %v573_v47 }
  0xf6   : > { %v709_v40 = vmax.f32 %v579_v22, 0.0 }
  0xf7   : > { %v2345_v50 = vpop.f32.mrb[8].mxu0  ;;  %v708_v42 = vmax.f32 %v574_v29, 0.0 }
  0xf8   : > { %v589_v51 = vadd.f32 %v2345_v50, %v2754_v45  ;;  %v583_v52 = vpop.f32.mrb[9].mxu0 }
  0xf9   : > { %v584_v53 = vadd.f32 %v2754_v45, %v583_v52 }
  0xfa   : > { %v711_v56 = vmax.f32 %v589_v51, 0.0 }
  0xfb   : > { %v710_v59 = vmax.f32 %v584_v53, 0.0  ;;  %v2348_v60 = vpop.f32.mrb[10].mxu0 }
  0xfc   : > { %v2762_v61 = vmax.f32 %v703_v54, %v711_v56  ;;  %v599_v62 = vadd.f32 %v2348_v60, %v2754_v45  ;;  %v593_v63 = vpop.f32.mrb[11].mxu0  ;;  %v864_v56 = vpop.permute.xlu1 %863 }
  0xfd   : > { %v2765_v0 = vmax.f32 %v702_v57, %v710_v59  ;;  %v594_v1 = vadd.f32 %v2754_v45, %v593_v63  ;;  %v815_v57 = vpop.permute.xlu0 %814  ;;  %v1180_v63 = vld [vmem:[%s3389_s3 + $0xa0] sm:$0xff] }
  0xfe   : > { %v713_v4 = vmax.f32 %v599_v62, 0.0  ;;  %818 = vst.msk [vmem:[#allocation3] sm:$0xff] %vm817_vm6, %v815_v57 }
  0xff   : > { %v712_v7 = vmax.f32 %v594_v1, 0.0  ;;  %v2351_v8 = vpop.f32.mrb[12].mxu0  ;;  %v1181_v1 = vld [vmem:[%s3389_s3 + $0xa8] sm:$0xff]  ;;  %867 = vst.msk [vmem:[#allocation3] sm:$0xff] %vm866_vm7, %v864_v56 }
 0x100   : > { %v2770_v9 = vmax.f32 %v705_v2, %v713_v4  ;;  %v609_v10 = vadd.f32 %v2351_v8, %v2754_v45  ;;  %v603_v11 = vpop.f32.mrb[13].mxu0  ;;  %v2432_v3 = vpack.c.bf16 %v1181_v1, %v1180_v63  ;;  %v1164_v4 = vld [vmem:[%s3389_s3 + $0x20] sm:$0xff] }
 0x101   : > { %v2782_v15 = vmax.f32 %v704_v5, %v712_v7  ;;  %v604_v16 = vadd.f32 %v2754_v45, %v603_v11  ;;  %v1165_v5 = vld [vmem:[%s3389_s3 + $0x28] sm:$0xff] }
 0x102   : > { %v715_v23 = vmax.f32 %v609_v10, 0.0  ;;  %v2434_v10 = vpack.c.bf16 %v1165_v5, %v1164_v4  ;;  %2433 = vmatprep.subr.bf16.mxu1 %v2432_v3  ;;  %v1170_v4 = vld [vmem:[%s3389_s3 + $0x50] sm:$0xff]  ;;  %v1171_v5 = vld [vmem:[%s3389_s3 + $0x58] sm:$0xff] }
 0x103   : > { %v714_v30 = vmax.f32 %v604_v16, 0.0  ;;  %v2354_v31 = vpop.f32.mrb[14].mxu0 }
 0x104   : > { %v2803_v33 = vmax.f32 %v707_v21, %v715_v23  ;;  %v619_v34 = vadd.f32 %v2354_v31, %v2754_v45  ;;  %v613_v35 = vpop.f32.mrb[15].mxu0  ;;  %2435 = vmatpush3.bf16.msra.mxu1 %v2434_v10  ;;  %v2446_v10 = vpack.c.bf16 %v1171_v5, %v1170_v4 }
 0x105   : > { %v2806_v38 = vmax.f32 %v706_v28, %v714_v30  ;;  %v614_v39 = vadd.f32 %v2754_v45, %v613_v35  ;;  %v2438_v30 = vpack.c.bf16 %v1167_v26, %v1166_v25  ;;  %2437 = vmatprep.subr.bf16.mxu1 %v2436_v24  ;;  %v1173_v24 = vld [vmem:[%s3389_s3 + $0x68] sm:$0xff] }
 0x106   : > { %v717_v41 = vmax.f32 %v619_v34, 0.0 }
 0x107   : > { %v716_v43 = vmax.f32 %v614_v39, 0.0  ;;  %v2357_v44 = vpop.f32.mrb[16].mxu0 }
 0x108   : > { %v2809_v46 = vmax.f32 %v709_v40, %v717_v41  ;;  %v623_v47 = vpop.f32.mrb[17].mxu0  ;;  %v629_v55 = vadd.f32 %v2357_v44, %v2754_v45  ;;  %2439 = vmatpush3.bf16.msra.mxu1 %v2438_v30 }
 0x109   : > { %v2811_v48 = vmax.f32 %v708_v42, %v716_v43  ;;  %v624_v58 = vadd.f32 %v2754_v45, %v623_v47  ;;  %v1185_v42 = vld [vmem:[%s3389_s3 + $0xc8] sm:$0xff] }
 0x10a   : > { %v719_v6 = vmax.f32 %v629_v55, 0.0 }
 0x10b   : > { %v2360_v49 = vpop.f32.mrb[18].mxu0  ;;  %v718_v11 = vmax.f32 %v624_v58, 0.0 }
 0x10c   : > { %v633_v50 = vpop.f32.mrb[19].mxu0  ;;  %v639_v7 = vadd.f32 %v2360_v49, %v2754_v45  ;;  %v1168_v49 = vld [vmem:[%s3389_s3 + $0x40] sm:$0xff] }
 0x10d   : > { %v634_v12 = vadd.f32 %v2754_v45, %v633_v50  ;;  %v1169_v50 = vld [vmem:[%s3389_s3 + $0x48] sm:$0xff] }
 0x10e   : > { %v721_v27 = vmax.f32 %v639_v7, 0.0  ;;  %v2442_v56 = vpack.c.bf16 %v1169_v50, %v1168_v49 }
 0x10f   : > { %v2363_v51 = vpop.f32.mrb[20].mxu0  ;;  %v720_v31 = vmax.f32 %v634_v12, 0.0 }
 0x110   : > { %v643_v52 = vpop.f32.mrb[21].mxu0  ;;  %v649_v21 = vadd.f32 %v2363_v51, %v2754_v45 }
 0x111   : > { %v644_v32 = vadd.f32 %v2754_v45, %v643_v52 }
 0x112   : > { %v723_v43 = vmax.f32 %v649_v21, 0.0  ;;  %v1172_v21 = vld [vmem:[%s3389_s3 + $0x60] sm:$0xff] }
 0x113   : > { %v2813_v53 = vpop.f32.mrb[22].mxu0  ;;  %v722_v57 = vmax.f32 %v644_v32, 0.0  ;;  %v1191_v32 = vld [vmem:[%s3389_s3 + $0xf8] sm:$0xff] }
 0x114   : > { %v2815_v54 = vpop.f32.mrb[23].mxu0  ;;  %v659_v51 = vadd.f32 %v2813_v53, %v2754_v45  ;;  %v1187_v53 = vld [vmem:[%s3389_s3 + $0xd8] sm:$0xff] }
 0x115   : > { %v654_v58 = vadd.f32 %v2754_v45, %v2815_v54 }
 0x117   : > { %v2369_v59 = vpop.f32.mrb[24].mxu0 }
 0x118   : > { %v669_v60 = vadd.f32 %v2369_v59, %v2754_v45  ;;  %v663_v62 = vpop.f32.mrb[25].mxu0 }
 0x119   : > { %v664_v2 = vadd.f32 %v2754_v45, %v663_v62 }
 0x11a   : > { %v727_v8 = vmax.f32 %v669_v60, 0.0 }
 0x11b   : > { %v726_v13 = vmax.f32 %v664_v2, 0.0  ;;  %v2372_v14 = vpop.f32.mrb[26].mxu0 }
 0x11c   : > { %v743_v16 = vmax.f32 %v719_v6, %v727_v8  ;;  %v679_v17 = vadd.f32 %v2372_v14, %v2754_v45  ;;  %v673_v18 = vpop.f32.mrb[27].mxu0  ;;  %v725_v6 = vmax.f32 %v659_v51, 0.0 }
 0x11d   : > { %v742_v22 = vmax.f32 %v718_v11, %v726_v13  ;;  %v674_v23 = vadd.f32 %v2754_v45, %v673_v18  ;;  %v724_v11 = vmax.f32 %v654_v58, 0.0 }
 0x11e   : > { %v751_v28 = vmax.f32 %v2762_v61, %v743_v16  ;;  %v729_v29 = vmax.f32 %v679_v17, 0.0  ;;  %v1184_v61 = vld [vmem:[%s3389_s3 + $0xc0] sm:$0xff] }
 0x11f   : > { %v750_v34 = vmax.f32 %v2765_v0, %v742_v22  ;;  %v728_v35 = vmax.f32 %v674_v23, 0.0  ;;  %v2375_v37 = vpop.f32.mrb[28].mxu0  ;;  %v2440_v47 = vpack.c.bf16 %v1185_v42, %v1184_v61  ;;  %v2448_v23 = vpack.c.bf16 %v1189_v20, %v1188_v19 }
 0x120   : > { %783 = vst.msk [vmem:[#allocation2 + $0x21] sm:$0xff] %vm758_vm4, %v751_v28  ;;  %v745_v39 = vmax.f32 %v721_v27, %v729_v29  ;;  %v689_v40 = vadd.f32 %v2375_v37, %v2754_v45  ;;  %v683_v41 = vpop.f32.mrb[29].mxu0  ;;  %v2450_v29 = vpack.c.bf16 %v1173_v24, %v1172_v21 }
 0x121   : > { %781 = vst.msk [vmem:[#allocation2 + $0x11] sm:$0xff] %vm758_vm4, %v750_v34  ;;  %v744_v0 = vmax.f32 %v720_v31, %v728_v35  ;;  %v684_v44 = vadd.f32 %v2754_v45, %v683_v41  ;;  %2441 = vmatprep.subr.bf16.mxu1 %v2440_v47  ;;  %v1174_v34 = vld [vmem:[%s3389_s3 + $0x70] sm:$0xff] }
 0x122   : > { %v753_v52 = vmax.f32 %v2770_v9, %v745_v39  ;;  %v731_v55 = vmax.f32 %v689_v40, 0.0  ;;  %2443 = vmatpush3.bf16.msra.mxu1 %v2442_v56  ;;  %v1186_v9 = vld [vmem:[%s3389_s3 + $0xd0] sm:$0xff]  ;;  %v1175_v39 = vld [vmem:[%s3389_s3 + $0x78] sm:$0xff]  ;;  %v1193_v56 = vld [vmem:[%s3389_s3 + $0x108] sm:$0xff] }
 0x123   : > { %v752_v59 = vmax.f32 %v2782_v15, %v744_v0  ;;  %v730_v60 = vmax.f32 %v684_v44, 0.0  ;;  %v2378_v62 = vpop.f32.mrb[30].mxu0  ;;  %v2444_v3 = vpack.c.bf16 %v1187_v53, %v1186_v9  ;;  %v2454_v42 = vpack.c.bf16 %v1175_v39, %v1174_v34 }
 0x124   : > { %787 = vst.msk [vmem:[#allocation2 + $0x41] sm:$0xff] %vm758_vm4, %v753_v52  ;;  %v747_v63 = vmax.f32 %v723_v43, %v731_v55  ;;  %v699_v1 = vadd.f32 %v2378_v62, %v2754_v45  ;;  %v693_v2 = vpop.f32.mrb[31].mxu0  ;;  %v1192_v55 = vld [vmem:[%s3389_s3 + $0x100] sm:$0xff]  ;;  %v1134_v62 = vld [vmem:[#allocation2 + $0x92] sm:$0xff] }
 0x125   : > { %785 = vst.msk [vmem:[#allocation2 + $0x31] sm:$0xff] %vm758_vm4, %v752_v59  ;;  %v746_v15 = vmax.f32 %v722_v57, %v730_v60  ;;  %v694_v54 = vadd.f32 %v2754_v45, %v693_v2  ;;  %2445 = vmatprep.subr.bf16.mxu1 %v2444_v3  ;;  %v2456_v57 = vpack.c.bf16 %v1193_v56, %v1192_v55  ;;  %v1066_v59 = vld [vmem:[#allocation2 + $0x90] sm:$0xff]  ;;  %1135 = vst.msk [vmem:[#allocation3 + $0xb8] sm:$0xff] %vm758_vm4, %v1134_v62 }
 0x126   : > { %v755_v7 = vmax.f32 %v2803_v33, %v747_v63  ;;  %v733_v8 = vmax.f32 %v699_v1, 0.0  ;;  %2447 = vmatpush3.bf16.msra.mxu1 %v2446_v10  ;;  %v1114_v60 = vld [vmem:[#allocation2 + $0x91] sm:$0xff] }
 0x127   : > { %v754_v12 = vmax.f32 %v2806_v38, %v746_v15  ;;  %v732_v13 = vmax.f32 %v694_v54, 0.0  ;;  %v1072_v14 = vld [vmem:[#allocation2 + $0x21] sm:$0xff]  ;;  %2449 = vmatprep.subr.bf16.mxu1 %v2448_v23  ;;  %v1194_v10 = vld [vmem:[%s3389_s3 + $0x110] sm:$0xff] }
 0x128   : > { %v1023_v45 = vld [vmem:[#allocation2 + $0x20] sm:$0xff]  ;;  %791 = vst.msk [vmem:[#allocation2 + $0x61] sm:$0xff] %vm758_vm4, %v755_v7  ;;  %v749_v17 = vmax.f32 %v725_v6, %v733_v8  ;;  %1074 = vrot.lane.b32.xlu0 %v1072_v14, %s2569_s16  ;;  %v2900_v33 = vld [vmem:[#allocation2 + $0x10] sm:$0xff]  ;;  %962 = vst.msk [vmem:[#allocation3 + $0x20] sm:$0xff] %vm758_vm4, %v1072_v14 }
 0x129   : > { %v2895_v16 = vld [vmem:[#allocation2 + $0x22] sm:$0xff]  ;;  %1025 = vrot.lane.b32.xlu1 %v1023_v45, %s2567_s20  ;;  %v2902_v18 = vld [vmem:[#allocation2 + $0x11] sm:$0xff]  ;;  %801 = vst.msk [vmem:[#allocation3 + $0x30] sm:$0xff] %vm758_vm4, %v1023_v45  ;;  %789 = vst.msk [vmem:[#allocation2 + $0x51] sm:$0xff] %vm758_vm4, %v754_v12  ;;  %v748_v38 = vmax.f32 %v724_v11, %v732_v13 }
 0x12a   : > { %1121 = vst.msk [vmem:[#allocation3 + $0x10] sm:$0xff] %vm758_vm4, %v2895_v16  ;;  %960 = vst.msk [vmem:[#allocation3 + $0x8] sm:$0xff] %vm758_vm4, %v2902_v18  ;;  %v757_v22 = vmax.f32 %v2809_v46, %v749_v17  ;;  %v975_v35 = vld [vmem:[#allocation2 + $0x12] sm:$0xff]  ;;  %2451 = vmatpush3.bf16.msra.mxu1 %v2450_v29 }
 0x12b   : > { %799 = vst.msk [vmem:[#allocation3 + $0x18] sm:$0xff] %vm758_vm4, %v2900_v33  ;;  %v756_v25 = vmax.f32 %v2811_v48, %v748_v38  ;;  %v1035_v26 = vld [vmem:[#allocation2 + $0x40] sm:$0xff]  ;;  %v1190_v48 = vld [vmem:[%s3389_s3 + $0xf0] sm:$0xff]  ;;  %v1195_v11 = vld [vmem:[%s3389_s3 + $0x118] sm:$0xff] }
 0x12c   : > { %v1084_v27 = vld [vmem:[#allocation2 + $0x41] sm:$0xff]  ;;  %795 = vst.msk [vmem:[#allocation2 + $0x81] sm:$0xff] %vm758_vm4, %v757_v22  ;;  %983 = vrot.lane.b32.xlu0 %v2895_v16, %s2568_s21  ;;  %v1029_v30 = vld [vmem:[#allocation2 + $0x30] sm:$0xff]  ;;  %805 = vst.msk [vmem:[#allocation3 + $0x60] sm:$0xff] %vm758_vm4, %v1035_v26  ;;  %v2452_v37 = vpack.c.bf16 %v1191_v32, %v1190_v48  ;;  %v2460_v12 = vpack.c.bf16 %v1195_v11, %v1194_v10 }
 0x12d   : > { %v993_v28 = vld [vmem:[#allocation2 + $0x42] sm:$0xff]  ;;  %919 = vrot.lane.b32.xlu1 %v1023_v45, %s2569_s16  ;;  %v1078_v46 = vld [vmem:[#allocation2 + $0x31] sm:$0xff]  ;;  %966 = vst.msk [vmem:[#allocation3 + $0x50] sm:$0xff] %vm758_vm4, %v1084_v27  ;;  %793 = vst.msk [vmem:[#allocation2 + $0x71] sm:$0xff] %vm758_vm4, %v756_v25 }
 0x12e   : > { %v987_v31 = vld [vmem:[#allocation2 + $0x32] sm:$0xff]  ;;  %1125 = vst.msk [vmem:[#allocation3 + $0x40] sm:$0xff] %vm758_vm4, %v993_v28  ;;  %964 = vst.msk [vmem:[#allocation3 + $0x38] sm:$0xff] %vm758_vm4, %v1078_v46  ;;  %2453 = vmatprep.subr.bf16.mxu1 %v2452_v37  ;;  %v1670_v10 = vld [vmem:[#allocation4 + $0x2a] sm:$0xf] }
 0x12f   : > { %803 = vst.msk [vmem:[#allocation3 + $0x48] sm:$0xff] %vm758_vm4, %v1029_v30  ;;  %1123 = vst.msk [vmem:[#allocation3 + $0x28] sm:$0xff] %vm758_vm4, %v987_v31  ;;  %v1047_v40 = vld [vmem:[#allocation2 + $0x60] sm:$0xff]  ;;  %2455 = vmatpush3.bf16.msra.mxu1 %v2454_v42  ;;  %v1672_v11 = vrot.slane %v1670_v10, 4 }
 0x130   : > { %v1096_v41 = vld [vmem:[#allocation2 + $0x61] sm:$0xff]  ;;  %977 = vrot.lane.b32.xlu0 %v975_v35, %s2568_s21  ;;  %v1041_v43 = vld [vmem:[#allocation2 + $0x50] sm:$0xff]  ;;  %809 = vst.msk [vmem:[#allocation3 + $0x90] sm:$0xff] %vm758_vm4, %v1047_v40  ;;  %2457 = vmatprep.subr.bf16.mxu1 %v2456_v57 }
 0x131   : > { %v1005_v61 = vld [vmem:[#allocation2 + $0x62] sm:$0xff]  ;;  %827 = vrot.lane.b32.xlu1 %v1072_v14, %s2568_s21  ;;  %v1090_v0 = vld [vmem:[#allocation2 + $0x51] sm:$0xff]  ;;  %970 = vst.msk [vmem:[#allocation3 + $0x80] sm:$0xff] %vm758_vm4, %v1096_v41  ;;  %807 = vst.msk [vmem:[#allocation3 + $0x78] sm:$0xff] %vm758_vm4, %v1041_v43 }
 0x132   : > { %v999_v44 = vld [vmem:[#allocation2 + $0x52] sm:$0xff]  ;;  %1129 = vst.msk [vmem:[#allocation3 + $0x70] sm:$0xff] %vm758_vm4, %v1005_v61  ;;  %968 = vst.msk [vmem:[#allocation3 + $0x68] sm:$0xff] %vm758_vm4, %v1090_v0 }
 0x133   : > { %1127 = vst.msk [vmem:[#allocation3 + $0x58] sm:$0xff] %vm758_vm4, %v999_v44  ;;  %v1108_v47 = vld [vmem:[#allocation2 + $0x81] sm:$0xff] }
 0x134   : > { %v1017_v49 = vld [vmem:[#allocation2 + $0x82] sm:$0xff]  ;;  %1037 = vrot.lane.b32.xlu0 %v1035_v26, %s2567_s20  ;;  %v1053_v50 = vld [vmem:[#allocation2 + $0x70] sm:$0xff]  ;;  %974 = vst.msk [vmem:[#allocation3 + $0xb0] sm:$0xff] %vm758_vm4, %v1108_v47 }
 0x135   : > { %876 = vrot.lane.b32.xlu1 %v2895_v16, %s2567_s20  ;;  %v1102_v51 = vld [vmem:[#allocation2 + $0x71] sm:$0xff]  ;;  %1133 = vst.msk [vmem:[#allocation3 + $0xa0] sm:$0xff] %vm758_vm4, %v1017_v49  ;;  %811 = vst.msk [vmem:[#allocation3 + $0xa8] sm:$0xff] %vm758_vm4, %v1053_v50  ;;  %v1059_v58 = vld [vmem:[#allocation2 + $0x80] sm:$0xff] }
 0x136   : > { %v1011_v52 = vld [vmem:[#allocation2 + $0x72] sm:$0xff]  ;;  %972 = vst.msk [vmem:[#allocation3 + $0x98] sm:$0xff] %vm758_vm4, %v1102_v51 }
 0x137   : > { %1131 = vst.msk [vmem:[#allocation3 + $0x88] sm:$0xff] %vm758_vm4, %v1011_v52 }
 0x138   : > { %1086 = vrot.lane.b32.xlu0 %v1084_v27, %s2569_s16  ;;  %1674 = vst.msk [vmem:[#allocation5 + $0x48] sm:$0xf0] %vm1503_vm10, %v1672_v11 }
 0x139   : > { %912 = vrot.lane.b32.xlu1 %v2900_v33, %s2569_s16 }
 0x13c   : > { %995 = vrot.lane.b32.xlu0 %v993_v28, %s2568_s21 }
 0x13d   : > { %821 = vrot.lane.b32.xlu1 %v2902_v18, %s2568_s21 }
 0x140   : > { %1031 = vrot.lane.b32.xlu0 %v1029_v30, %s2567_s20 }
 0x141   : > { %870 = vrot.lane.b32.xlu1 %v975_v35, %s2567_s20 }
 0x144   : > { %1080 = vrot.lane.b32.xlu0 %v1078_v46, %s2569_s16 }
 0x145   : > { %931 = vrot.lane.b32.xlu1 %v1035_v26, %s2569_s16 }
 0x148   : > { %989 = vrot.lane.b32.xlu0 %v987_v31, %s2568_s21 }
 0x149   : > { %839 = vrot.lane.b32.xlu1 %v1084_v27, %s2568_s21 }
 0x14c   : > { %1049 = vrot.lane.b32.xlu0 %v1047_v40, %s2567_s20 }
 0x14d   : > { %888 = vrot.lane.b32.xlu1 %v993_v28, %s2567_s20 }
 0x150   : > { %1098 = vrot.lane.b32.xlu0 %v1096_v41, %s2569_s16 }
 0x151   : > { %925 = vrot.lane.b32.xlu1 %v1029_v30, %s2569_s16 }
 0x154   : > { %1007 = vrot.lane.b32.xlu0 %v1005_v61, %s2568_s21 }
 0x155   : > { %833 = vrot.lane.b32.xlu1 %v1078_v46, %s2568_s21 }
 0x158   : > { %1043 = vrot.lane.b32.xlu0 %v1041_v43, %s2567_s20 }
 0x159   : > { %882 = vrot.lane.b32.xlu1 %v987_v31, %s2567_s20 }
 0x15c   : > { %1092 = vrot.lane.b32.xlu0 %v1090_v0, %s2569_s16 }
 0x15d   : > { %943 = vrot.lane.b32.xlu1 %v1047_v40, %s2569_s16 }
 0x160   : > { %1001 = vrot.lane.b32.xlu0 %v999_v44, %s2568_s21 }
 0x161   : > { %851 = vrot.lane.b32.xlu1 %v1096_v41, %s2568_s21 }
 0x164   : > { %1061 = vrot.lane.b32.xlu0 %v1059_v58, %s2567_s20 }
 0x165   : > { %900 = vrot.lane.b32.xlu1 %v1005_v61, %s2567_s20 }
 0x168   : > { %1110 = vrot.lane.b32.xlu0 %v1108_v47, %s2569_s16 }
 0x169   : > { %937 = vrot.lane.b32.xlu1 %v1041_v43, %s2569_s16 }
 0x16c   : > { %1019 = vrot.lane.b32.xlu0 %v1017_v49, %s2568_s21 }
 0x16d   : > { %845 = vrot.lane.b32.xlu1 %v1090_v0, %s2568_s21 }
 0x170   : > { %1055 = vrot.lane.b32.xlu0 %v1053_v50, %s2567_s20 }
 0x171   : > { %894 = vrot.lane.b32.xlu1 %v999_v44, %s2567_s20 }
 0x174   : > { %1104 = vrot.lane.b32.xlu0 %v1102_v51, %s2569_s16 }
 0x175   : > { %949 = vrot.lane.b32.xlu1 %v1053_v50, %s2569_s16 }
 0x178   : > { %1013 = vrot.lane.b32.xlu0 %v1011_v52, %s2568_s21 }
 0x179   : > { %857 = vrot.lane.b32.xlu1 %v1102_v51, %s2568_s21 }
 0x17c   : > { %1068 = vrot.lane.b32.xlu0 %v1066_v59, %s2567_s20 }
 0x17d   : > { %906 = vrot.lane.b32.xlu1 %v1011_v52, %s2567_s20 }
 0x180   : > { %1116 = vrot.lane.b32.xlu0 %v1114_v60, %s2569_s16 }
 0x181   : > { %955 = vrot.lane.b32.xlu1 %v1059_v58, %s2569_s16  ;;  %s2138_s16 = sshll.u32 %s3397_s12, 4 }
 0x182   : > { %s334_s24 = scalar_lea.vmem %s3395_s9, %s2138_s16 }
 0x19a   : > { %v1075_v63 = vpop.permute.xlu0 %1074 }
 0x19b   : > { %v1026_v1 = vpop.permute.xlu1 %1025 }
 0x19e   : > { %v984_v2 = vpop.permute.xlu0 %983 }
 0x19f   : > { %v920_v9 = vpop.permute.xlu1 %919  ;;  %986 = vst.msk [vmem:[#allocation3 + $0x20] sm:$0xff] %vm817_vm6, %v984_v2  ;;  %v1138_v2 = vld [vmem:[#allocation3 + $0x10] sm:$0xff] }
 0x1a2   : > { %v978_v15 = vpop.permute.xlu0 %977 }
 0x1a3   : > { %v828_v53 = vpop.permute.xlu1 %827  ;;  %980 = vst.msk [vmem:[#allocation3 + $0x8] sm:$0xff] %vm817_vm6, %v978_v15  ;;  %v1147_v15 = vld [vmem:[#allocation3 + $0x58] sm:$0xff] }
 0x1a4   : > { %830 = vst.msk [vmem:[#allocation3 + $0x30] sm:$0xff] %vm817_vm6, %v828_v53  ;;  %v1144_v53 = vld [vmem:[#allocation3 + $0x40] sm:$0xff] }
 0x1a5   : > { %1028 = vst.msk [vmem:[#allocation3 + $0x8] sm:$0xff] %vm866_vm7, %v1026_v1 }
 0x1a6   : > { %1077 = vst.msk [vmem:[#allocation3 + $0x8] sm:$0xff] %vm915_vm8, %v1075_v63  ;;  %v1038_v3 = vpop.permute.xlu0 %1037 }
 0x1a7   : > { %v877_v54 = vpop.permute.xlu1 %876 }
 0x1a8   : > { %879 = vst.msk [vmem:[#allocation3 + $0x30] sm:$0xff] %vm866_vm7, %v877_v54  ;;  %v1150_v54 = vld [vmem:[#allocation3 + $0x70] sm:$0xff] }
 0x1aa   : > { %v1087_v4 = vpop.permute.xlu0 %1086 }
 0x1ab   : > { %v913_v5 = vpop.permute.xlu1 %912 }
 0x1ac   : > { %916 = vst.msk [vmem:[#allocation3] sm:$0xff] %vm915_vm8, %v913_v5  ;;  %v1159_v5 = vld [vmem:[#allocation3 + $0xb8] sm:$0xff] }
 0x1ad   : > { %v1137_v6 = vld [vmem:[#allocation3 + $0x8] sm:$0xff] }
 0x1ae   : > { %1291 = vmatprep.mubr.f32.mxu1 %v1137_v6  ;;  %v996_v7 = vpop.permute.xlu0 %995  ;;  %v1512_v6 = vld [vmem:[#allocation4 + $0x1] sm:$0xf] }
 0x1af   : > { %v822_v8 = vpop.permute.xlu1 %821  ;;  %998 = vst.msk [vmem:[#allocation3 + $0x50] sm:$0xff] %vm817_vm6, %v996_v7  ;;  %v1654_v7 = vld [vmem:[#allocation4 + $0x29] sm:$0xf]  ;;  %1514 = vrot.lane.b32.xlu0 %v1512_v6, %s2567_s20 }
 0x1b0   : > { %824 = vst.msk [vmem:[#allocation3 + $0x18] sm:$0xff] %vm817_vm6, %v822_v8  ;;  %v1656_v8 = vrot.slane %v1654_v7, 4 }
 0x1b2   : > { %v1032_v13 = vpop.permute.xlu0 %1031  ;;  %1657 = vrot.lane.b32.xlu1 %v1656_v8, %s2567_s20 }
 0x1b3   : > { %v871_v14 = vpop.permute.xlu1 %870  ;;  %v1136_v45 = vld [vmem:[#allocation3] sm:$0xff]  ;;  %1034 = vst.msk [vmem:[#allocation3 + $0x20] sm:$0xff] %vm866_vm7, %v1032_v13 }
 0x1b4   : > { %873 = vst.msk [vmem:[#allocation3 + $0x18] sm:$0xff] %vm866_vm7, %v871_v14  ;;  %1292 = vmatmul.mubr.f32.vlgmr.msra.gmra.mrb[0].mxu1 %v1136_v45  ;;  %v1685_v13 = vld [vmem:[%s3391_s5] sm:$0xff]  ;;  %v1686_v45 = vld [vmem:[%s3391_s5 + $0x8] sm:$0xff] }
 0x1b5   : > { %922 = vst.msk [vmem:[#allocation3 + $0x18] sm:$0xff] %vm915_vm8, %v920_v9  ;;  %2459 = vmatpush3.bf16.msra.mxu1 %v2456_v57  ;;  %v1141_v9 = vld [vmem:[#allocation3 + $0x28] sm:$0xff] }
 0x1b6   : > { %2461 = vmatprep.subr.bf16.mxu1 %v2460_v12  ;;  %v1081_v16 = vpop.permute.xlu0 %1080 }
 0x1b7   : > { %v932_v17 = vpop.permute.xlu1 %931  ;;  %1083 = vst.msk [vmem:[#allocation3 + $0x20] sm:$0xff] %vm915_vm8, %v1081_v16  ;;  %v1703_v16 = vld [vmem:[%s3391_s5 + $0x90] sm:$0xff] }
 0x1b9   : > { %2463 = vmatpush3.bf16.msra.mxu1 %v2460_v12  ;;  %v1701_v12 = vld [vmem:[%s3391_s5 + $0x80] sm:$0xff] }
 0x1ba   : > { %v990_v33 = vpop.permute.xlu0 %989  ;;  %v2464_v14 = vpack.c.bf16 %v1702_v36, %v1701_v12 }
 0x1bb   : > { %v840_v18 = vpop.permute.xlu1 %839  ;;  %992 = vst.msk [vmem:[#allocation3 + $0x38] sm:$0xff] %vm817_vm6, %v990_v33  ;;  %v2466_v33 = vpack.c.bf16 %v1686_v45, %v1685_v13 }
 0x1bc   : > { %842 = vst.msk [vmem:[#allocation3 + $0x60] sm:$0xff] %vm817_vm6, %v840_v18  ;;  %v1139_v21 = vld [vmem:[#allocation3 + $0x18] sm:$0xff]  ;;  %2465 = vmatprep.subr.bf16.mxu0 %v2464_v14 }
 0x1bd   : > { %1040 = vst.msk [vmem:[#allocation3 + $0x38] sm:$0xff] %vm866_vm7, %v1038_v3  ;;  %v1153_v3 = vld [vmem:[#allocation3 + $0x88] sm:$0xff]  ;;  %2467 = vmatpush3.bf16.msra.mxu0 %v2466_v33 }
 0x1be   : > { %1089 = vst.msk [vmem:[#allocation3 + $0x38] sm:$0xff] %vm915_vm8, %v1087_v4  ;;  %v1050_v38 = vpop.permute.xlu0 %1049  ;;  %v1140_v20 = vld [vmem:[#allocation3 + $0x20] sm:$0xff] }
 0x1bf   : > { %v889_v19 = vpop.permute.xlu1 %888  ;;  %1296 = vmatprep.mubr.f32.mxu1 %v1140_v20  ;;  %v1156_v4 = vld [vmem:[#allocation3 + $0xa0] sm:$0xff] }
 0x1c0   : > { %891 = vst.msk [vmem:[#allocation3 + $0x60] sm:$0xff] %vm866_vm7, %v889_v19  ;;  %1297 = vmatmul.mubr.f32.gmra.mrb[2].mxu1 %v1139_v21  ;;  %v1688_v19 = vld [vmem:[%s3391_s5 + $0x18] sm:$0xff]  ;;  %v1705_v20 = vld [vmem:[%s3391_s5 + $0xa0] sm:$0xff]  ;;  %v1706_v21 = vld [vmem:[%s3391_s5 + $0xa8] sm:$0xff] }
 0x1c2   : > { %v1099_v22 = vpop.permute.xlu0 %1098 }
 0x1c3   : > { %v926_v23 = vpop.permute.xlu1 %925 }
 0x1c4   : > { %928 = vst.msk [vmem:[#allocation3 + $0x30] sm:$0xff] %vm915_vm8, %v926_v23 }
 0x1c5   : > { %v1143_v24 = vld [vmem:[#allocation3 + $0x38] sm:$0xff] }
 0x1c6   : > { %1301 = vmatprep.mubr.f32.mxu1 %v1143_v24  ;;  %v1008_v25 = vpop.permute.xlu0 %1007  ;;  %v2472_v24 = vpack.c.bf16 %v1706_v21, %v1705_v20 }
 0x1c7   : > { %v834_v26 = vpop.permute.xlu1 %833  ;;  %1010 = vst.msk [vmem:[#allocation3 + $0x80] sm:$0xff] %vm817_vm6, %v1008_v25  ;;  %v1689_v25 = vld [vmem:[%s3391_s5 + $0x20] sm:$0xff] }
 0x1c8   : > { %836 = vst.msk [vmem:[#allocation3 + $0x48] sm:$0xff] %vm817_vm6, %v834_v26  ;;  %v1690_v26 = vld [vmem:[%s3391_s5 + $0x28] sm:$0xff] }
 0x1ca   : > { %v1044_v27 = vpop.permute.xlu0 %1043 }
 0x1cb   : > { %v883_v28 = vpop.permute.xlu1 %882  ;;  %v1142_v29 = vld [vmem:[#allocation3 + $0x30] sm:$0xff]  ;;  %1046 = vst.msk [vmem:[#allocation3 + $0x50] sm:$0xff] %vm866_vm7, %v1044_v27 }
 0x1cc   : > { %885 = vst.msk [vmem:[#allocation3 + $0x48] sm:$0xff] %vm866_vm7, %v883_v28  ;;  %1302 = vmatmul.mubr.f32.gmra.mrb[4].mxu1 %v1142_v29  ;;  %v1707_v28 = vld [vmem:[%s3391_s5 + $0xb0] sm:$0xff]  ;;  %v1708_v29 = vld [vmem:[%s3391_s5 + $0xb8] sm:$0xff] }
 0x1cd   : > { %934 = vst.msk [vmem:[#allocation3 + $0x48] sm:$0xff] %vm915_vm8, %v932_v17  ;;  %v1704_v17 = vld [vmem:[%s3391_s5 + $0x98] sm:$0xff] }
 0x1ce   : > { %v1093_v30 = vpop.permute.xlu0 %1092  ;;  %v2468_v18 = vpack.c.bf16 %v1704_v17, %v1703_v16 }
 0x1cf   : > { %v944_v46 = vpop.permute.xlu1 %943  ;;  %1095 = vst.msk [vmem:[#allocation3 + $0x50] sm:$0xff] %vm915_vm8, %v1093_v30  ;;  %v1733_v30 = vld [vmem:[%s3391_s5 + $0x180] sm:$0xff] }
 0x1d0   : > { %2469 = vmatprep.subr.bf16.mxu0 %v2468_v18 }
 0x1d2   : > { %v1002_v31 = vpop.permute.xlu0 %1001 }
 0x1d3   : > { %v852_v48 = vpop.permute.xlu1 %851  ;;  %1004 = vst.msk [vmem:[#allocation3 + $0x68] sm:$0xff] %vm817_vm6, %v1002_v31  ;;  %v1691_v31 = vld [vmem:[%s3391_s5 + $0x30] sm:$0xff] }
 0x1d4   : > { %854 = vst.msk [vmem:[#allocation3 + $0x90] sm:$0xff] %vm817_vm6, %v852_v48  ;;  %v1145_v37 = vld [vmem:[#allocation3 + $0x48] sm:$0xff]  ;;  %v1692_v48 = vld [vmem:[%s3391_s5 + $0x38] sm:$0xff] }
 0x1d5   : > { %1052 = vst.msk [vmem:[#allocation3 + $0x68] sm:$0xff] %vm866_vm7, %v1050_v38  ;;  %v1687_v38 = vld [vmem:[%s3391_s5 + $0x10] sm:$0xff] }
 0x1d6   : > { %1101 = vst.msk [vmem:[#allocation3 + $0x68] sm:$0xff] %vm915_vm8, %v1099_v22  ;;  %v1062_v32 = vpop.permute.xlu0 %1061  ;;  %v1146_v35 = vld [vmem:[#allocation3 + $0x50] sm:$0xff]  ;;  %v2470_v22 = vpack.c.bf16 %v1688_v19, %v1687_v38 }
 0x1d7   : > { %v901_v34 = vpop.permute.xlu1 %900  ;;  %1306 = vmatprep.mubr.f32.mxu1 %v1146_v35  ;;  %v1718_v35 = vld [vmem:[%s3391_s5 + $0x108] sm:$0xff] }
 0x1d8   : > { %903 = vst.msk [vmem:[#allocation3 + $0x90] sm:$0xff] %vm866_vm7, %v901_v34  ;;  %1307 = vmatmul.mubr.f32.gmra.mrb[6].mxu1 %v1145_v37  ;;  %v1717_v34 = vld [vmem:[%s3391_s5 + $0x100] sm:$0xff]  ;;  %2471 = vmatpush3.bf16.msra.mxu0 %v2470_v22  ;;  %v2474_v37 = vpack.c.bf16 %v1690_v26, %v1689_v25 }
 0x1d9   : > { %2473 = vmatprep.subr.bf16.mxu0 %v2472_v24 }
 0x1da   : > { %v1111_v39 = vpop.permute.xlu0 %1110 }
 0x1db   : > { %v938_v40 = vpop.permute.xlu1 %937 }
 0x1dc   : > { %940 = vst.msk [vmem:[#allocation3 + $0x60] sm:$0xff] %vm915_vm8, %v938_v40  ;;  %v2498_v40 = vpack.c.bf16 %v1718_v35, %v1717_v34  ;;  %2475 = vmatpush3.bf16.msra.mxu0 %v2474_v37 }
 0x1dd   : > { %v1149_v41 = vld [vmem:[#allocation3 + $0x68] sm:$0xff] }
 0x1de   : > { %1311 = vmatprep.mubr.f32.mxu1 %v1149_v41  ;;  %v1020_v61 = vpop.permute.xlu0 %1019  ;;  %v1496_v41 = vld [vmem:[#allocation4] sm:$0xf] }
 0x1df   : > { %v846_v42 = vpop.permute.xlu1 %845  ;;  %1022 = vst.msk [vmem:[#allocation3 + $0xb0] sm:$0xff] %vm817_vm6, %v1020_v61  ;;  %v1735_v61 = vld [vmem:[%s3391_s5 + $0x190] sm:$0xff] }
 0x1e0   : > { %848 = vst.msk [vmem:[#allocation3 + $0x78] sm:$0xff] %vm817_vm6, %v846_v42  ;;  %v1736_v42 = vld [vmem:[%s3391_s5 + $0x198] sm:$0xff] }
 0x1e1   : > { %1498 = vst.msk [vmem:[#allocation5] sm:$0xf] %vm1497_vm11, %v1496_v41 }
 0x1e2   : > { %v1056_v43 = vpop.permute.xlu0 %1055 }
 0x1e3   : > { %v895_v0 = vpop.permute.xlu1 %894  ;;  %v1148_v44 = vld [vmem:[#allocation3 + $0x60] sm:$0xff]  ;;  %1058 = vst.msk [vmem:[#allocation3 + $0x80] sm:$0xff] %vm866_vm7, %v1056_v43  ;;  %v2476_v43 = vpack.c.bf16 %v1708_v29, %v1707_v28 }
 0x1e4   : > { %897 = vst.msk [vmem:[#allocation3 + $0x78] sm:$0xff] %vm866_vm7, %v895_v0  ;;  %1312 = vmatmul.mubr.f32.gmra.mrb[8].mxu1 %v1148_v44  ;;  %v2500_v0 = vpack.c.bf16 %v1736_v42, %v1735_v61  ;;  %v1719_v44 = vld [vmem:[%s3391_s5 + $0x110] sm:$0xff] }
 0x1e5   : > { %946 = vst.msk [vmem:[#allocation3 + $0x78] sm:$0xff] %vm915_vm8, %v944_v46  ;;  %2477 = vmatprep.subr.bf16.mxu0 %v2476_v43  ;;  %v1722_v43 = vld [vmem:[%s3391_s5 + $0x128] sm:$0xff] }
 0x1e6   : > { %v1105_v47 = vpop.permute.xlu0 %1104 }
 0x1e7   : > { %v950_v49 = vpop.permute.xlu1 %949  ;;  %1107 = vst.msk [vmem:[#allocation3 + $0x80] sm:$0xff] %vm915_vm8, %v1105_v47  ;;  %v1720_v47 = vld [vmem:[%s3391_s5 + $0x118] sm:$0xff] }
 0x1e8   : > { %952 = vst.msk [vmem:[#allocation3 + $0x90] sm:$0xff] %vm915_vm8, %v950_v49  ;;  %v1630_v49 = vld [vmem:[#allocation4 + $0x28] sm:$0xf] }
 0x1ea   : > { %v1014_v50 = vpop.permute.xlu0 %1013 }
 0x1eb   : > { %v858_v51 = vpop.permute.xlu1 %857  ;;  %1016 = vst.msk [vmem:[#allocation3 + $0x98] sm:$0xff] %vm817_vm6, %v1014_v50  ;;  %v1709_v50 = vld [vmem:[%s3391_s5 + $0xc0] sm:$0xff] }
 0x1ec   : > { %860 = vst.msk [vmem:[#allocation3 + $0xa8] sm:$0xff] %vm817_vm6, %v858_v51  ;;  %v1151_v57 = vld [vmem:[#allocation3 + $0x78] sm:$0xff]  ;;  %v1710_v51 = vld [vmem:[%s3391_s5 + $0xc8] sm:$0xff] }
 0x1ed   : > { %1064 = vst.msk [vmem:[#allocation3 + $0x98] sm:$0xff] %vm866_vm7, %v1062_v32  ;;  %v1734_v32 = vld [vmem:[%s3391_s5 + $0x188] sm:$0xff] }
 0x1ee   : > { %1113 = vst.msk [vmem:[#allocation3 + $0x98] sm:$0xff] %vm915_vm8, %v1111_v39  ;;  %v1069_v52 = vpop.permute.xlu0 %1068  ;;  %v1152_v56 = vld [vmem:[#allocation3 + $0x80] sm:$0xff]  ;;  %v2496_v39 = vpack.c.bf16 %v1734_v32, %v1733_v30 }
 0x1ef   : > { %v907_v55 = vpop.permute.xlu1 %906  ;;  %1071 = vst.msk [vmem:[#allocation3 + $0xb0] sm:$0xff] %vm866_vm7, %v1069_v52  ;;  %1316 = vmatprep.mubr.f32.mxu1 %v1152_v56  ;;  %v1154_v62 = vld [vmem:[#allocation3 + $0x90] sm:$0xff]  ;;  %v1632_v52 = vrot.slane %v1630_v49, 4  ;;  %v1737_v56 = vld [vmem:[%s3391_s5 + $0x1a0] sm:$0xff] }
 0x1f0   : > { %909 = vst.msk [vmem:[#allocation3 + $0xa8] sm:$0xff] %vm866_vm7, %v907_v55  ;;  %1317 = vmatmul.mubr.f32.gmra.mrb[10].mxu1 %v1151_v57  ;;  %2497 = vmatprep.subr.bf16.mxu1 %v2496_v39  ;;  %v2502_v55 = vpack.c.bf16 %v1720_v47, %v1719_v44  ;;  %v1738_v57 = vld [vmem:[%s3391_s5 + $0x1a8] sm:$0xff] }
 0x1f1   : > { %1634 = vst.msk [vmem:[#allocation5 + $0x40] sm:$0xf0] %vm1503_vm10, %v1632_v52 }
 0x1f2   : > { %v1117_v58 = vpop.permute.xlu0 %1116 }
 0x1f3   : > { %v956_v59 = vpop.permute.xlu1 %955  ;;  %1119 = vst.msk [vmem:[#allocation3 + $0xb0] sm:$0xff] %vm915_vm8, %v1117_v58  ;;  %v2478_v58 = vpack.c.bf16 %v1692_v48, %v1691_v31 }
 0x1f4   : > { %958 = vst.msk [vmem:[#allocation3 + $0xa8] sm:$0xff] %vm915_vm8, %v956_v59  ;;  %v2504_v59 = vpack.c.bf16 %v1738_v57, %v1737_v56  ;;  %v1739_v57 = vld [vmem:[%s3391_s5 + $0x1b0] sm:$0xff] }
 0x1f5   : > { %v1155_v60 = vld [vmem:[#allocation3 + $0x98] sm:$0xff]  ;;  %2479 = vmatpush3.bf16.msra.mxu0 %v2478_v58 }
 0x1f6   : > { %1321 = vmatprep.mubr.f32.mxu1 %v1155_v60  ;;  %v1540_v60 = vld [vmem:[#allocation4 + $0x2] sm:$0xf]  ;;  %v1740_v58 = vld [vmem:[%s3391_s5 + $0x1b8] sm:$0xff] }
 0x1f7   : > { %1322 = vmatmul.mubr.f32.gmra.mrb[12].mxu1 %v1154_v62  ;;  %v2480_v62 = vpack.c.bf16 %v1710_v51, %v1709_v50  ;;  %1541 = vst.msk [vmem:[#allocation5 + $0x8] sm:$0xf] %vm1497_vm11, %v1540_v60 }
 0x1f9   : > { %2481 = vmatprep.subr.bf16.mxu0 %v2480_v62 }
 0x1fa   : > { %v1158_v63 = vld [vmem:[#allocation3 + $0xb0] sm:$0xff] }
 0x1fb   : > { %v1157_v1 = vld [vmem:[#allocation3 + $0xa8] sm:$0xff]  ;;  %1326 = vmatprep.mubr.f32.mxu1 %v1158_v63  ;;  %v1693_v63 = vld [vmem:[%s3391_s5 + $0x40] sm:$0xff] }
 0x1fc   : > { %1327 = vmatmul.mubr.f32.gmra.mrb[14].mxu1 %v1157_v1  ;;  %v1694_v1 = vld [vmem:[%s3391_s5 + $0x48] sm:$0xff] }
 0x1fd   : > { %2387 = vmatprep.mubr.msk.f32.mxu1 %vm758_vm4, %v1138_v2  ;;  %v1711_v2 = vld [vmem:[%s3391_s5 + $0xd0] sm:$0xff] }
 0x200   : > { %2388 = vmatmul.mubr.msk.f32.vlgmr.msra.gmra.mrb[16].mxu1 %vm758_vm4, %v1141_v9  ;;  %v1712_v9 = vld [vmem:[%s3391_s5 + $0xd8] sm:$0xff] }
 0x201   : > { %2390 = vmatprep.mubr.msk.f32.mxu1 %vm758_vm4, %v1144_v53  ;;  %2499 = vmatpush3.bf16.msra.mxu1 %v2498_v40  ;;  %v2482_v53 = vpack.c.bf16 %v1694_v1, %v1693_v63  ;;  %v2508_v63 = vpack.c.bf16 %v1740_v58, %v1739_v57  ;;  %v1723_v1 = vld [vmem:[%s3391_s5 + $0x130] sm:$0xff] }
 0x202   : > { %2501 = vmatprep.subr.bf16.mxu1 %v2500_v0 }
 0x203   : > { %2483 = vmatpush3.bf16.msra.mxu0 %v2482_v53 }
 0x204   : > { %2391 = vmatmul.mubr.msk.f32.gmra.mrb[18].mxu1 %vm758_vm4, %v1147_v15  ;;  %v2484_v15 = vpack.c.bf16 %v1712_v9, %v1711_v2  ;;  %v1724_v2 = vld [vmem:[%s3391_s5 + $0x138] sm:$0xff] }
 0x205   : > { %2393 = vmatprep.mubr.msk.f32.mxu1 %vm758_vm4, %v1150_v54  ;;  %2503 = vmatpush3.bf16.msra.mxu1 %v2502_v55  ;;  %v1695_v54 = vld [vmem:[%s3391_s5 + $0x50] sm:$0xff] }
 0x206   : > { %2505 = vmatprep.subr.bf16.mxu1 %v2504_v59  ;;  %2485 = vmatprep.subr.bf16.mxu0 %v2484_v15  ;;  %v2510_v15 = vpack.c.bf16 %v1724_v2, %v1723_v1 }
 0x208   : > { %2394 = vmatmul.mubr.msk.f32.gmra.mrb[20].mxu1 %vm758_vm4, %v1153_v3  ;;  %v1696_v3 = vld [vmem:[%s3391_s5 + $0x58] sm:$0xff] }
 0x209   : > { %2396 = vmatprep.mubr.msk.f32.mxu1 %vm758_vm4, %v1156_v4  ;;  %v2486_v7 = vpack.c.bf16 %v1696_v3, %v1695_v54 }
 0x20b   : > { %2487 = vmatpush3.bf16.msra.mxu0 %v2486_v7 }
 0x20c   : > { %2397 = vmatmul.mubr.msk.f32.gmra.mrb[22].mxu1 %vm758_vm4, %v1159_v5 }
 0x221   : > { %v1515_v37 = vpop.permute.xlu0 %1514 }
 0x222   : > { %1518 = vst.msk [vmem:[#allocation5] sm:$0xf] %vm1517_vm12, %v1515_v37 }
 0x224   : > { %v1658_v42 = vpop.permute.xlu1 %1657 }
 0x225   : > { %1660 = vst.msk [vmem:[#allocation5 + $0x40] sm:$0xf0] %vm1525_vm13, %v1658_v42 }
 0x287   : > { %v2205_v23 = vpop.f32.mrb[0].mxu1 }
 0x288   : > { %v2206_v27 = vpop.f32.mrb[1].mxu1 }
 0x289   : > { %v3127_v46 = vadd.f32 %v2206_v27, %v2205_v23  ;;  %v2121_v23 = vld [vmem:[%s3390_s4] ss:$0 sm:$0xff] }
 0x28b   : > { %v1294_v27 = vadd.f32 %v3127_v46, %v2121_v23  ;;  %v1721_v46 = vld [vmem:[%s3391_s5 + $0x120] sm:$0xff] }
 0x28c   : > { %v2506_v47 = vpack.c.bf16 %v1722_v43, %v1721_v46  ;;  %v1727_v43 = vld [vmem:[%s3391_s5 + $0x150] sm:$0xff] }
 0x28e   : > { %2507 = vmatpush3.bf16.msra.mxu1 %v2506_v47 }
 0x28f   : > { %2509 = vmatprep.subr.bf16.mxu1 %v2508_v63 }
 0x292   : > { %2511 = vmatpush3.bf16.msra.mxu1 %v2510_v15  ;;  %v1748_v15 = vld [vmem:[%s3391_s5 + $0x1f8] sm:$0xff] }
 0x293   : > { %v2208_v4 = vpop.f32.mrb[2].mxu1 }
 0x294   : > { %v2209_v5 = vpop.f32.mrb[3].mxu1 }
 0x295   : > { %v2210_v6 = vadd.f32 %v2209_v5, %v2208_v4 }
 0x297   : > { %v1299_v25 = vadd.f32 %v2210_v6, %v2121_v23 }
 0x29f   : > { %v2211_v8 = vpop.f32.mrb[4].mxu1 }
 0x2a0   : > { %v2212_v10 = vpop.f32.mrb[5].mxu1 }
 0x2a1   : > { %v2213_v11 = vadd.f32 %v2212_v10, %v2211_v8  ;;  %v1713_v8 = vld [vmem:[%s3391_s5 + $0xe0] sm:$0xff]  ;;  %v1714_v10 = vld [vmem:[%s3391_s5 + $0xe8] sm:$0xff] }
 0x2a3   : > { %v1304_v35 = vadd.f32 %v2213_v11, %v2121_v23  ;;  %v1697_v11 = vld [vmem:[%s3391_s5 + $0x60] sm:$0xff] }
 0x2ab   : > { %v2214_v12 = vpop.f32.mrb[6].mxu1 }
 0x2ac   : > { %v2215_v36 = vpop.f32.mrb[7].mxu1 }
 0x2ad   : > { %v2216_v13 = vadd.f32 %v2215_v36, %v2214_v12 }
 0x2af   : > { %v1309_v48 = vadd.f32 %v2216_v13, %v2121_v23 }
 0x2b7   : > { %v2217_v14 = vpop.f32.mrb[8].mxu1 }
 0x2b8   : > { %v2218_v45 = vpop.f32.mrb[9].mxu1 }
 0x2b9   : > { %v2219_v16 = vadd.f32 %v2218_v45, %v2217_v14  ;;  %v2488_v14 = vpack.c.bf16 %v1714_v10, %v1713_v8  ;;  %v1698_v45 = vld [vmem:[%s3391_s5 + $0x68] sm:$0xff] }
 0x2bb   : > { %v1314_v52 = vadd.f32 %v2219_v16, %v2121_v23  ;;  %v1741_v16 = vld [vmem:[%s3391_s5 + $0x1c0] sm:$0xff]  ;;  %2489 = vmatprep.subr.bf16.mxu0 %v2488_v14  ;;  %v1731_v14 = vld [vmem:[%s3391_s5 + $0x170] sm:$0xff] }
 0x2c3   : > { %v2220_v17 = vpop.f32.mrb[10].mxu1 }
 0x2c4   : > { %v2221_v33 = vpop.f32.mrb[11].mxu1 }
 0x2c5   : > { %v2222_v18 = vadd.f32 %v2221_v33, %v2220_v17  ;;  %v1742_v17 = vld [vmem:[%s3391_s5 + $0x1c8] sm:$0xff] }
 0x2c7   : > { %v1319_v44 = vadd.f32 %v2222_v18, %v2121_v23  ;;  %v2490_v18 = vpack.c.bf16 %v1698_v45, %v1697_v11  ;;  %v1749_v11 = vld [vmem:[%s3391_s5 + $0x200] sm:$0xff]  ;;  %v1732_v45 = vld [vmem:[%s3391_s5 + $0x178] sm:$0xff] }
 0x2c9   : > { %2491 = vmatpush3.bf16.msra.mxu0 %v2490_v18 }
 0x2ca   : > { %v2223_v38 = vpop.f32.mrb[12].mxu1 }
 0x2cb   : > { %v2224_v19 = vpop.f32.mrb[13].mxu1 }
 0x2cc   : > { %v2225_v20 = vadd.f32 %v2224_v19, %v2223_v38  ;;  %v2512_v38 = vpack.c.bf16 %v1742_v17, %v1741_v16  ;;  %v1725_v19 = vld [vmem:[%s3391_s5 + $0x140] sm:$0xff] }
 0x2ce   : > { %v1324_v5 = vadd.f32 %v2225_v20, %v2121_v23  ;;  %v1726_v20 = vld [vmem:[%s3391_s5 + $0x148] sm:$0xff]  ;;  %2513 = vmatprep.subr.bf16.mxu1 %v2512_v38 }
 0x2cf   : > { %v2226_v21 = vpop.f32.mrb[14].mxu1 }
 0x2d0   : > { %v2227_v22 = vpop.f32.mrb[15].mxu1 }
 0x2d1   : > { %v2228_v24 = vadd.f32 %v2227_v22, %v2226_v21 }
 0x2d3   : > { %v2389_v26 = vpop.f32.mrb[16].mxu1  ;;  %v1329_v53 = vadd.f32 %v2228_v24, %v2121_v23  ;;  %v2514_v23 = vpack.c.bf16 %v1726_v20, %v1725_v19  ;;  %v1715_v24 = vld [vmem:[%s3391_s5 + $0xf0] sm:$0xff] }
 0x2d4   : > { %v1404_v28 = vadd.f32 %v2389_v26, %v1299_v25  ;;  %v1398_v29 = vpop.f32.mrb[17].mxu1  ;;  %v1716_v25 = vld [vmem:[%s3391_s5 + $0xf8] sm:$0xff]  ;;  %v1743_v26 = vld [vmem:[%s3391_s5 + $0x1d0] sm:$0xff] }
 0x2d5   : > { %v1399_v30 = vadd.f32 %v1398_v29, %v1294_v27  ;;  %2515 = vmatpush3.bf16.msra.mxu1 %v2514_v23  ;;  %v2492_v29 = vpack.c.bf16 %v1716_v25, %v1715_v24 }
 0x2d6   : > { %v1438_v31 = vmax.f32 %v1404_v28, 0.0 }
 0x2d7   : > { %v1437_v32 = vmax.f32 %v1399_v30, 0.0  ;;  %v2392_v34 = vpop.f32.mrb[18].mxu1  ;;  %v1744_v30 = vld [vmem:[%s3391_s5 + $0x1d8] sm:$0xff]  ;;  %2493 = vmatprep.subr.bf16.mxu0 %v2492_v29 }
 0x2d8   : > { %v1414_v39 = vadd.f32 %v2392_v34, %v1309_v48  ;;  %v1408_v40 = vpop.f32.mrb[19].mxu1  ;;  %v1700_v48 = vld [vmem:[%s3391_s5 + $0x78] sm:$0xff] }
 0x2d9   : > { %v1452_v41 = vmax.f32 %v1437_v32, %v1438_v31  ;;  %v1409_v61 = vadd.f32 %v1408_v40, %v1304_v35  ;;  %v1699_v31 = vld [vmem:[%s3391_s5 + $0x70] sm:$0xff]  ;;  %v2516_v35 = vpack.c.bf16 %v1744_v30, %v1743_v26 }
 0x2da   : > { %v1440_v0 = vmax.f32 %v1414_v39, 0.0  ;;  %v2494_v37 = vpack.c.bf16 %v1700_v48, %v1699_v31 }
 0x2db   : > { %v1454_v49 = vrot.slane %v1452_v41, 1  ;;  %v1439_v50 = vmax.f32 %v1409_v61, 0.0  ;;  %v2395_v51 = vpop.f32.mrb[20].mxu1  ;;  %2517 = vmatprep.subr.bf16.mxu1 %v2516_v35 }
 0x2dc   : > { %v1424_v55 = vadd.f32 %v2395_v51, %v1319_v44  ;;  %v1418_v56 = vpop.f32.mrb[21].mxu1  ;;  %2495 = vmatpush3.bf16.msra.mxu0 %v2494_v37  ;;  %v1746_v51 = vld [vmem:[%s3391_s5 + $0x1e8] sm:$0xff] }
 0x2dd   : > { %v1456_v59 = vmax.f32 %v1452_v41, %v1454_v49  ;;  %v1466_v60 = vmax.f32 %v1439_v50, %v1440_v0  ;;  %v1419_v62 = vadd.f32 %v1418_v56, %v1314_v52  ;;  %v1728_v0 = vld [vmem:[%s3391_s5 + $0x158] sm:$0xff]  ;;  %v1745_v50 = vld [vmem:[%s3391_s5 + $0x1e0] sm:$0xff] }
 0x2de   : > { %v1442_v9 = vmax.f32 %v1424_v55, 0.0  ;;  %v2518_v49 = vpack.c.bf16 %v1728_v0, %v1727_v43  ;;  %v2520_v56 = vpack.c.bf16 %v1746_v51, %v1745_v50  ;;  %v1752_v43 = vld [vmem:[%s3391_s5 + $0x218] sm:$0xff]  ;;  %v1753_v51 = vld [vmem:[%s3391_s5 + $0x220] sm:$0xff] }
 0x2df   : > { %1459 = vst.msk [vmem:[#allocation4 + $0x9] sm:$0x1] %vm1458_vm14, %v1456_v59  ;;  %v1468_v54 = vrot.slane %v1466_v60, 1  ;;  %v1441_v3 = vmax.f32 %v1419_v62, 0.0  ;;  %v2398_v4 = vpop.f32.mrb[22].mxu1 }
 0x2e0   : > { %1461 = vst.msk [vmem:[#allocation4 + $0x8] sm:$0x4] %vm1460_vm15, %v1456_v59  ;;  %v1434_v6 = vadd.f32 %v2398_v4, %v1329_v53  ;;  %v1428_v7 = vpop.f32.mrb[23].mxu1  ;;  %2519 = vmatpush3.bf16.msra.mxu1 %v2518_v49  ;;  %v1747_v53 = vld [vmem:[%s3391_s5 + $0x1f0] sm:$0xff] }
 0x2e1   : > { %1463 = vst.msk [vmem:[#allocation4 + $0x7] sm:$0x10] %vm1462_vm0, %v1456_v59  ;;  %v1470_v12 = vmax.f32 %v1466_v60, %v1468_v54  ;;  %v1476_v36 = vmax.f32 %v1441_v3, %v1442_v9  ;;  %v1429_v13 = vadd.f32 %v1428_v7, %v1324_v5  ;;  %v1729_v60 = vld [vmem:[%s3391_s5 + $0x160] sm:$0xff]  ;;  %2521 = vmatprep.subr.bf16.mxu1 %v2520_v56  ;;  %v1730_v9 = vld [vmem:[%s3391_s5 + $0x168] sm:$0xff] }
 0x2e2   : > { %1465 = vst.msk [vmem:[#allocation4 + $0x6] sm:$0x40] %vm1464_vm1, %v1456_v59  ;;  %v1444_v33 = vmax.f32 %v1434_v6, 0.0  ;;  %v2522_v3 = vpack.c.bf16 %v1730_v9, %v1729_v60  ;;  %v2524_v4 = vpack.c.bf16 %v1748_v15, %v1747_v53 }
 0x2e3   : > { %1472 = vst.msk [vmem:[#allocation4 + $0x11] sm:$0x1] %vm1458_vm14, %v1470_v12  ;;  %v1478_v21 = vrot.slane %v1476_v36, 1  ;;  %v1443_v22 = vmax.f32 %v1429_v13, 0.0 }
 0x2e4   : > { %1473 = vst.msk [vmem:[#allocation4 + $0x10] sm:$0x4] %vm1460_vm15, %v1470_v12  ;;  %2523 = vmatpush3.bf16.msra.mxu1 %v2522_v3 }
 0x2e5   : > { %1474 = vst.msk [vmem:[#allocation4 + $0xf] sm:$0x10] %vm1462_vm0, %v1470_v12  ;;  %v1480_v27 = vmax.f32 %v1476_v36, %v1478_v21  ;;  %v1486_v28 = vmax.f32 %v1443_v22, %v1444_v33  ;;  %2525 = vmatprep.subr.bf16.mxu1 %v2524_v4  ;;  %v2526_v33 = vpack.c.bf16 %v1732_v45, %v1731_v14 }
 0x2e6   : > { %1475 = vst.msk [vmem:[#allocation4 + $0xe] sm:$0x40] %vm1464_vm1, %v1470_v12  ;;  %v1750_v12 = vld [vmem:[%s3391_s5 + $0x208] sm:$0xff] }
 0x2e7   : > { %1482 = vst.msk [vmem:[#allocation4 + $0x19] sm:$0x1] %vm1458_vm14, %v1480_v27  ;;  %v1488_v39 = vrot.slane %v1486_v28, 1  ;;  %v3314_v13 = vpack.c.bf16 %v1750_v12, %v1749_v11  ;;  %v2130_v11 = vld [vmem:[%s3392_s6] ss:$0 sm:$0xff] }
 0x2e8   : > { %v1554_v32 = vld [vmem:[#allocation4 + $0x8] sm:$0xf]  ;;  %1483 = vst.msk [vmem:[#allocation4 + $0x18] sm:$0x4] %vm1460_vm15, %v1480_v27  ;;  %2527 = vmatpush3.bf16.msra.mxu1 %v2526_v33 }
 0x2e9   : > { %v1519_v34 = vld [vmem:[#allocation4 + $0x9] sm:$0xf]  ;;  %1484 = vst.msk [vmem:[#allocation4 + $0x17] sm:$0x10] %vm1462_vm0, %v1480_v27  ;;  %1556 = vrot.lane.b32.xlu0 %v1554_v32, %s2567_s20  ;;  %v1490_v44 = vmax.f32 %v1486_v28, %v1488_v39  ;;  %2529 = vmatprep.subr.bf16.mxu0 %v3314_v13 }
 0x2ea   : > { %1485 = vst.msk [vmem:[#allocation4 + $0x16] sm:$0x40] %vm1464_vm1, %v1480_v27  ;;  %v1521_v40 = vrot.slane %v1519_v34, 4  ;;  %v1499_v41 = vld [vmem:[#allocation4 + $0x8] sm:$0xf] }
 0x2eb   : > { %v1580_v61 = vld [vmem:[#allocation4 + $0x9] sm:$0xf]  ;;  %v1501_v42 = vrot.slane %v1499_v41, 4  ;;  %1492 = vst.msk [vmem:[#allocation4 + $0x21] sm:$0x1] %vm1458_vm14, %v1490_v44 }
 0x2ec   : > { %1581 = vst.msk [vmem:[#allocation5 + $0x10] sm:$0xf] %vm1497_vm11, %v1580_v61  ;;  %v1542_v46 = vld [vmem:[#allocation4 + $0xa] sm:$0xf]  ;;  %1522 = vrot.lane.b32.xlu1 %v1521_v40, %s2567_s20  ;;  %v1560_v55 = vld [vmem:[#allocation4 + $0x10] sm:$0xf] }
 0x2ed   : > { %v1544_v47 = vrot.slane %v1542_v46, 4  ;;  %v1594_v52 = vld [vmem:[#allocation4 + $0xa] sm:$0xf]  ;;  %1504 = vst.msk [vmem:[#allocation5] sm:$0xf0] %vm1503_vm10, %v1501_v42  ;;  %v1562_v57 = vrot.slane %v1560_v55, 4 }
 0x2ee   : > { %1493 = vst.msk [vmem:[#allocation4 + $0x20] sm:$0x4] %vm1460_vm15, %v1490_v44  ;;  %1596 = vrot.lane.b32.xlu0 %v1594_v52, %s2567_s20  ;;  %v1600_v58 = vld [vmem:[#allocation4 + $0x12] sm:$0xf]  ;;  %v1754_v52 = vld [vmem:[%s3391_s5 + $0x228] sm:$0xff] }
 0x2ef   : > { %1494 = vst.msk [vmem:[#allocation4 + $0x1f] sm:$0x10] %vm1462_vm0, %v1490_v44  ;;  %v1620_v59 = vld [vmem:[#allocation4 + $0x10] sm:$0xf]  ;;  %v1602_v5 = vrot.slane %v1600_v58, 4 }
 0x2f0   : > { %1495 = vst.msk [vmem:[#allocation4 + $0x1e] sm:$0x40] %vm1464_vm1, %v1490_v44  ;;  %v1582_v62 = vld [vmem:[#allocation4 + $0x11] sm:$0xf]  ;;  %1563 = vrot.lane.b32.xlu1 %v1562_v57, %s2567_s20  ;;  %v1622_v7 = vld [vmem:[#allocation4 + $0x18] sm:$0xf]  ;;  %v2536_v57 = vpack.c.bf16 %v1754_v52, %v1753_v51 }
 0x2f1   : > { %1546 = vst.msk [vmem:[#allocation5 + $0x8] sm:$0xf0] %vm1503_vm10, %v1544_v47  ;;  %v1505_v63 = vld [vmem:[#allocation4 + $0x10] sm:$0xf]  ;;  %v1584_v2 = vrot.slane %v1582_v62, 4  ;;  %v1624_v8 = vrot.slane %v1622_v7, 4 }
 0x2f2   : > { %1621 = vst.msk [vmem:[#allocation5 + $0x18] sm:$0xf] %vm1497_vm11, %v1620_v59  ;;  %v1547_v1 = vld [vmem:[#allocation4 + $0x12] sm:$0xf]  ;;  %1506 = vst.msk [vmem:[#allocation5 + $0x28] sm:$0xf] %vm1497_vm11, %v1505_v63 }
 0x2f3   : > { %1548 = vst.msk [vmem:[#allocation5 + $0x30] sm:$0xf] %vm1497_vm11, %v1547_v1  ;;  %v1635_v54 = vld [vmem:[#allocation4 + $0x11] sm:$0xf]  ;;  %v1641_v6 = vld [vmem:[#allocation4 + $0x19] sm:$0xf] }
 0x2f4   : > { %1637 = vrot.lane.b32.xlu0 %v1635_v54, %s2567_s20  ;;  %1586 = vst.msk [vmem:[#allocation5 + $0x10] sm:$0xf0] %vm1503_vm10, %v1584_v2  ;;  %v1507_v10 = vld [vmem:[#allocation4 + $0x18] sm:$0xf]  ;;  %1603 = vrot.lane.b32.xlu1 %v1602_v5, %s2567_s20  ;;  %v1527_v17 = vld [vmem:[#allocation4 + $0x11] sm:$0xf] }
 0x2f5   : > { %v1509_v36 = vrot.slane %v1507_v10, 4  ;;  %v1549_v16 = vld [vmem:[#allocation4 + $0x1a] sm:$0xf]  ;;  %1626 = vst.msk [vmem:[#allocation5 + $0x18] sm:$0xf0] %vm1503_vm10, %v1624_v8  ;;  %v1643_v18 = vrot.slane %v1641_v6, 4 }
 0x2f6   : > { %v1627_v38 = vld [vmem:[#allocation4 + $0x20] sm:$0xf]  ;;  %v1551_v19 = vrot.slane %v1549_v16, 4  ;;  %v1533_v20 = vld [vmem:[#allocation4 + $0x19] sm:$0xf]  ;;  %v1751_v46 = vld [vmem:[%s3391_s5 + $0x210] sm:$0xff] }
 0x2f7   : > { %1511 = vst.msk [vmem:[#allocation5 + $0x28] sm:$0xf0] %vm1503_vm10, %v1509_v36  ;;  %v1587_v21 = vld [vmem:[#allocation4 + $0x19] sm:$0xf]  ;;  %v1589_v22 = vld [vmem:[#allocation4 + $0x21] sm:$0xf]  ;;  %v2532_v49 = vpack.c.bf16 %v1752_v43, %v1751_v46 }
 0x2f8   : > { %1529 = vrot.lane.b32.xlu0 %v1527_v17, %s2567_s20  ;;  %1628 = vst.msk [vmem:[#allocation5 + $0x40] sm:$0xf] %vm1497_vm11, %v1627_v38  ;;  %1644 = vrot.lane.b32.xlu1 %v1643_v18, %s2567_s20  ;;  %1588 = vst.msk [vmem:[#allocation5 + $0x38] sm:$0xf] %vm1497_vm11, %v1587_v21  ;;  %v1591_v23 = vrot.slane %v1589_v22, 4  ;;  %v1535_v28 = vrot.slane %v1533_v20, 4 }
 0x2f9   : > { %1553 = vst.msk [vmem:[#allocation5 + $0x30] sm:$0xf0] %vm1503_vm10, %v1551_v19  ;;  %v1661_v24 = vld [vmem:[#allocation4 + $0x12] sm:$0xf]  ;;  %v1567_v25 = vld [vmem:[#allocation4 + $0x18] sm:$0xf] }
 0x2fa   : > { %1662 = vst.msk [vmem:[#allocation5 + $0x20] sm:$0xf] %vm1497_vm11, %v1661_v24  ;;  %v1663_v26 = vld [vmem:[#allocation4 + $0x1a] sm:$0xf]  ;;  %v1668_v27 = vld [vmem:[#allocation4 + $0x22] sm:$0xf] }
 0x2fb   : > { %1593 = vst.msk [vmem:[#allocation5 + $0x38] sm:$0xf0] %vm1503_vm10, %v1591_v23  ;;  %v1665_v29 = vrot.slane %v1663_v26, 4  ;;  %v1573_v30 = vld [vmem:[#allocation4 + $0x20] sm:$0xf]  ;;  %v1755_v58 = vld [vmem:[%s3391_s5 + $0x230] sm:$0xff] }
 0x2fc   : > { %1569 = vrot.lane.b32.xlu0 %v1567_v25, %s2567_s20  ;;  %1669 = vst.msk [vmem:[#allocation5 + $0x48] sm:$0xf] %vm1497_vm11, %v1668_v27  ;;  %1536 = vrot.lane.b32.xlu1 %v1535_v28, %s2567_s20  ;;  %v1648_v31 = vld [vmem:[#allocation4 + $0x21] sm:$0xf]  ;;  %v1575_v48 = vrot.slane %v1573_v30, 4  ;;  %v1756_v59 = vld [vmem:[%s3391_s5 + $0x238] sm:$0xff] }
 0x2fd   : > { %1667 = vst.msk [vmem:[#allocation5 + $0x20] sm:$0xf0] %vm1503_vm10, %v1665_v29  ;;  %v1613_v32 = vld [vmem:[#allocation4 + $0x22] sm:$0xf]  ;;  %v1607_v34 = vld [vmem:[#allocation4 + $0x1a] sm:$0xf]  ;;  %v2540_v1 = vpack.c.bf16 %v1756_v59, %v1755_v58 }
 0x2fe   : > { %v1615_v35 = vrot.slane %v1613_v32, 4  ;;  %v2133_v25 = vld [vmem:[%s3393_s7] ss:$0 sm:$0xff] }
 0x300   : > { %1650 = vrot.lane.b32.xlu0 %v1648_v31, %s2567_s20  ;;  %1576 = vrot.lane.b32.xlu1 %v1575_v48, %s2567_s20  ;;  %v2134_v31 = vld [vmem:[#allocation6] ss:$0 sm:$0xff] }
 0x303   : > { %v1684_v6 = vld [vmem:[#allocation5 + $0x48] sm:$0xff] }
 0x304   : > { %1609 = vrot.lane.b32.xlu0 %v1607_v34, %s2567_s20  ;;  %1616 = vrot.lane.b32.xlu1 %v1615_v35, %s2567_s20  ;;  %v1679_v4 = vld [vmem:[#allocation5 + $0x20] sm:$0xff] }
 0x35b   : > { %v1557_v37 = vpop.permute.xlu0 %1556 }
 0x35c   : > { %1559 = vst.msk [vmem:[#allocation5 + $0x8] sm:$0xf] %vm1517_vm12, %v1557_v37 }
 0x35e   : > { %v1523_v39 = vpop.permute.xlu1 %1522 }
 0x35f   : > { %1526 = vst.msk [vmem:[#allocation5] sm:$0xf0] %vm1525_vm13, %v1523_v39 }
 0x360   : > { %v1597_v40 = vpop.permute.xlu0 %1596 }
 0x361   : > { %1599 = vst.msk [vmem:[#allocation5 + $0x10] sm:$0xf] %vm1517_vm12, %v1597_v40 }
 0x362   : > { %v1564_v41 = vpop.permute.xlu1 %1563 }
 0x363   : > { %1566 = vst.msk [vmem:[#allocation5 + $0x8] sm:$0xf0] %vm1525_vm13, %v1564_v41 }
 0x366   : > { %v1638_v61 = vpop.permute.xlu0 %1637  ;;  %v1604_v42 = vpop.permute.xlu1 %1603  ;;  %v1675_v50 = vld [vmem:[#allocation5] sm:$0xff] }
 0x367   : > { %1640 = vst.msk [vmem:[#allocation5 + $0x18] sm:$0xf] %vm1517_vm12, %v1638_v61 }
 0x368   : > { %1606 = vst.msk [vmem:[#allocation5 + $0x10] sm:$0xf0] %vm1525_vm13, %v1604_v42 }
 0x36a   : > { %v1530_v0 = vpop.permute.xlu0 %1529  ;;  %v1645_v44 = vpop.permute.xlu1 %1644  ;;  %v1676_v47 = vld [vmem:[#allocation5 + $0x8] sm:$0xff] }
 0x36b   : > { %1532 = vst.msk [vmem:[#allocation5 + $0x28] sm:$0xf] %vm1517_vm12, %v1530_v0  ;;  %1835 = vmatprep.mubr.f32.mxu0 %v1676_v47 }
 0x36c   : > { %1647 = vst.msk [vmem:[#allocation5 + $0x18] sm:$0xf0] %vm1525_vm13, %v1645_v44  ;;  %1836 = vmatmul.mubr.f32.vlgmr.msra.gmra.mrb[32].mxu0 %v1675_v50 }
 0x36d   : > { %2531 = vmatpush3.bf16.msra.mxu0 %v3314_v13 }
 0x36e   : > { %v1570_v55 = vpop.permute.xlu0 %1569  ;;  %v1537_v56 = vpop.permute.xlu1 %1536  ;;  %2533 = vmatprep.subr.bf16.mxu0 %v2532_v49 }
 0x36f   : > { %1572 = vst.msk [vmem:[#allocation5 + $0x30] sm:$0xf] %vm1517_vm12, %v1570_v55  ;;  %v1677_v2 = vld [vmem:[#allocation5 + $0x10] sm:$0xff] }
 0x370   : > { %1539 = vst.msk [vmem:[#allocation5 + $0x28] sm:$0xf0] %vm1525_vm13, %v1537_v56 }
 0x371   : > { %2535 = vmatpush3.bf16.msra.mxu0 %v2532_v49 }
 0x372   : > { %v1651_v60 = vpop.permute.xlu0 %1650  ;;  %v1577_v62 = vpop.permute.xlu1 %1576  ;;  %2537 = vmatprep.subr.bf16.mxu0 %v2536_v57 }
 0x373   : > { %1653 = vst.msk [vmem:[#allocation5 + $0x40] sm:$0xf] %vm1517_vm12, %v1651_v60  ;;  %v1678_v63 = vld [vmem:[#allocation5 + $0x18] sm:$0xff] }
 0x374   : > { %1579 = vst.msk [vmem:[#allocation5 + $0x30] sm:$0xf0] %vm1525_vm13, %v1577_v62  ;;  %1910 = vmatprep.mubr.f32.mxu1 %v1678_v63 }
 0x375   : > { %1911 = vmatmul.mubr.f32.vlgmr.msra.gmra.mrb[24].mxu1 %v1677_v2  ;;  %2539 = vmatpush3.bf16.msra.mxu0 %v2536_v57 }
 0x376   : > { %v1610_v9 = vpop.permute.xlu0 %1609  ;;  %v1617_v53 = vpop.permute.xlu1 %1616  ;;  %2541 = vmatprep.subr.bf16.mxu0 %v2540_v1 }
 0x377   : > { %1612 = vst.msk [vmem:[#allocation5 + $0x38] sm:$0xf] %vm1517_vm12, %v1610_v9  ;;  %v1680_v3 = vld [vmem:[#allocation5 + $0x28] sm:$0xff] }
 0x378   : > { %1619 = vst.msk [vmem:[#allocation5 + $0x38] sm:$0xf0] %vm1525_vm13, %v1617_v53 }
 0x379   : > { %2543 = vmatpush3.bf16.msra.mxu0 %v2540_v1 }
 0x37a   : > { %v1683_v15 = vld [vmem:[#allocation5 + $0x40] sm:$0xff] }
 0x37b   : > { %1915 = vmatprep.mubr.f32.mxu1 %v1683_v15  ;;  %v1681_v54 = vld [vmem:[#allocation5 + $0x30] sm:$0xff] }
 0x37c   : > { %1840 = vmatprep.mubr.f32.mxu0 %v1681_v54 }
 0x37d   : > { %1841 = vmatmul.mubr.f32.gmra.mrb[34].mxu0 %v1680_v3 }
 0x37e   : > { %2415 = vmatprep.mubr.msk.f32.mxu0 %vm1764_vm2, %v1679_v4 }
 0x37f   : > { %v1682_v5 = vld [vmem:[#allocation5 + $0x38] sm:$0xff] }
 0x380   : > { %1916 = vmatmul.mubr.f32.gmra.mrb[26].mxu1 %v1682_v5 }
 0x381   : > { %2416 = vmatmul.mubr.msk.f32.vlgmr.msra.gmra.mrb[36].mxu0 %vm1764_vm2, %v1684_v6 }
 0x43f   : > { %v2273_v7 = vpop.f32.mrb[32].mxu0 }
 0x440   : > { %v2274_v8 = vpop.f32.mrb[33].mxu0 }
 0x441   : > { %v2275_v10 = vadd.f32 %v2274_v8, %v2273_v7 }
 0x443   : > { %v1838_v13 = vadd.f32 %v2275_v10, %v2130_v11 }
 0x448   : > { %v2311_v12 = vpop.f32.mrb[24].mxu1 }
 0x449   : > { %v2312_v36 = vpop.f32.mrb[25].mxu1 }
 0x44a   : > { %v2313_v14 = vadd.f32 %v2312_v36, %v2311_v12 }
 0x44c   : > { %v1913_v45 = vadd.f32 %v2313_v14, %v1838_v13 }
 0x450   : > { %v2276_v16 = vpop.f32.mrb[34].mxu0 }
 0x451   : > { %v2277_v17 = vpop.f32.mrb[35].mxu0 }
 0x452   : > { %v2278_v33 = vadd.f32 %v2277_v17, %v2276_v16 }
 0x453   : > { %v2314_v18 = vpop.f32.mrb[26].mxu1 }
 0x454   : > { %v1843_v38 = vadd.f32 %v2278_v33, %v2130_v11  ;;  %v2315_v19 = vpop.f32.mrb[27].mxu1  ;;  %v2417_v20 = vpop.f32.mrb[36].mxu0 }
 0x455   : > { %v2316_v21 = vadd.f32 %v2315_v19, %v2314_v18  ;;  %v1987_v22 = vpop.f32.mrb[37].mxu0 }
 0x456   : > { %v1988_v23 = vadd.f32 %v1987_v22, %v1913_v45 }
 0x457   : > { %v1918_v24 = vadd.f32 %v2316_v21, %v1843_v38 }
 0x458   : > { %v1996_v26 = vmax.f32 %v1988_v23, 0.0 }
 0x459   : > { %v1993_v27 = vadd.f32 %v2417_v20, %v1918_v24 }
 0x45a   : > { %v2005_v28 = vmul.f32 %v2133_v25, %v1996_v26 }
 0x45b   : > { %v1997_v29 = vmax.f32 %v1993_v27, 0.0 }
 0x45c   : > { %2007 = vadd.xlane.f32.xlu0 %v2005_v28 }
 0x45d   : > { %v2006_v30 = vmul.f32 %v2133_v25, %v1997_v29 }
 0x45f   : > { %2009 = vadd.xlane.f32.xlu1 %v2006_v30 }
 0x4e9   : > { %v2008_v48 = vpop.xlane.xlu0 %2007 }
 0x4ea   : > { %v2018_v32 = vadd.f32 %v2134_v31, %v2008_v48 }
 0x4ec   : > { %2021 = vst.msk [vmem:[%s334_s24] sm:$0xff] %vm2020_vm3, %v2018_v32  ;;  %v2010_v34 = vpop.xlane.xlu1 %2009 }
 0x4ed   : > { %v2019_v35 = vadd.f32 %v2134_v31, %v2010_v34 }
 0x4ef   : > { %2022 = vst.msk [vmem:[%s334_s24 + $0x8] sm:$0xff] %vm2020_vm3, %v2019_v35 }
 0x4f0 PF: > { %s21_s11 = sadd.s32 1, %s2563_s11  }
 0x4f1   : > { %p18_p4 = scmp.ge.s32.totalorder %s21_s11, 4  }
 0x4f3   :  { %20 = sbr.rel (!%p18_p4) target bundleno = 3 (0x3), region = 100 }

</bundles_post_ra>
